<compile_context>
chip_gen: v7x
topology: tpu7x:2x2x1
jax: 0.10.0
libtpu: 0.0.40
codegen_flags: <defaults>
</compile_context>

<pallas_src>
import functools

import jax
import jax.numpy as jnp
from jax import lax
from jax.experimental import pallas as pl
from jax.experimental.pallas import tpu as pltpu


def _upsample_conv_concat_kernel(x_ref, f_ref, w_ref, b_ref, o_ref, *,
                                 cin, cout, use_mxu):
    # x_ref: (1, Cin, t_h, W)        input tile at original resolution
    # f_ref: (1, Fc, 2*t_h, 2*W)     skip feature-map tile (already at 2x res)
    # w_ref: (Cout, Cin)             [MXU path]   or (Cin, Cout, 1, 1) [VPU path]
    # b_ref: (Cout, 1, 1)            bias, f32
    # o_ref: (1, Cout+Fc, 2*t_h, 2*W) final fused output tile
    x = x_ref[0]                      # (Cin, t_h, W)
    t_h, w = x.shape[1], x.shape[2]

    if use_mxu:
        xf = x.reshape(cin, t_h * w)
        acc = jnp.dot(w_ref[...], xf, preferred_element_type=jnp.float32)
        acc = acc.reshape(cout, t_h, w)            # (Cout, t_h, W) f32
    else:
        # Small-channel fast path: Cin broadcast-FMAs on the VPU (MXU idle,
        # no reshapes needed).
        wf = w_ref[...].astype(jnp.float32)        # (Cin, Cout, 1, 1)
        xf = x.astype(jnp.float32)                 # (Cin, t_h, W)
        acc = wf[0] * xf[0]                        # (Cout, t_h, W)
        for ci in range(1, cin):
            acc = acc + wf[ci] * xf[ci]

    y = acc + b_ref[...]                           # (Cout, t_h, W) f32
    # Fused nearest x2 upsample: lane interleave then sublane duplicate.
    y = jnp.repeat(y, 2, axis=-1)                  # (Cout, t_h, 2W)
    y = jnp.repeat(y, 2, axis=-2)                  # (Cout, 2*t_h, 2W)

    # Write conv result into channels [0:Cout], skip connection into the rest.
    o_ref[0, :cout] = y.astype(o_ref.dtype)
    o_ref[0, cout:] = f_ref[0]


def _vmem_capacity_bytes():
    try:
        return int(pltpu.get_tpu_info().vmem_capacity_bytes)
    except Exception:
        return 64 * 1024 * 1024       # conservative default (v7x per-TC)


def upsample_forward(x, feature_map, weight, bias):
    """Fused Pallas equivalent of UpSample.forward.

    x:           (N, Cin, H, W)
    feature_map: (N, Fc, 2H, 2W)
    weight:      (Cout, Cin, 1, 1)   (PyTorch Conv2d layout)
    bias:        (Cout,)
    returns:     (N, Cout + Fc, 2H, 2W)
    """
    N, Cin, H, W = x.shape
    Cout = weight.shape[0]
    Fc = feature_map.shape[1]
    assert feature_map.shape == (N, Fc, 2 * H, 2 * W), feature_map.shape
    C_total = Cout + Fc

    out_dtype = x.dtype
    fmap = feature_map.astype(out_dtype)
    in_b = jnp.dtype(x.dtype).itemsize
    out_b = jnp.dtype(out_dtype).itemsize

    # Small-channel fast path selection (static at trace time).
    use_mxu = not (Cin <= 16 and Cin * Cout <= 256)

    # ---- per-generation VMEM budget & H-tile selection ----
    cap = _vmem_capacity_bytes()
    vmem_limit = max(32 * 1024 * 1024, min(int(cap * 0.85), cap - (8 << 20)))
    block_budget = int(vmem_limit * 0.7)

    # Resident (constant-index) weight/bias blocks, padded to (8,128) tiles, x2 buffers.
    if use_mxu:
        w_bytes = ((Cout + 7) // 8 * 8) * ((Cin + 127) // 128 * 128) * 4
    else:
        w_bytes = Cin * Cout * 8 * 128 * 4
    b_bytes = Cout * 8 * 128 * 4
    resident = 2 * (w_bytes + b_bytes)

    # Per original-H-row cost: double-buffered x / skip / out blocks + f32 intermediates.
    per_h = 2 * W * (Cin * in_b + 4 * Fc * out_b + 4 * C_total * out_b)
    per_h += W * (Cin * 4 + 4 * Cout + 16 * Cout)
    avail = max(block_budget - resident, 8 * per_h)
    t_h = max(avail // per_h, 8)
    if t_h >= H:
        t_h = H
    else:
        t_h = max(8, (t_h // 8) * 8)
    # v7x has 2 TensorCores: keep >= 2 parallel grid steps when N == 1.
    if N == 1 and t_h >= H and H > 8:
        t_h = min(H, max(8, ((H + 1) // 2 + 7) // 8 * 8))

    n_h = pl.cdiv(H, t_h)   # ragged last block is masked by Pallas

    if use_mxu:
        w_arg = weight.reshape(Cout, Cin).astype(x.dtype)
        w_spec = pl.BlockSpec((Cout, Cin), lambda n, j: (0, 0))
    else:
        w_arg = weight.reshape(Cout, Cin).T.reshape(Cin, Cout, 1, 1).astype(jnp.float32)
        w_spec = pl.BlockSpec((Cin, Cout, 1, 1), lambda n, j: (0, 0, 0, 0))
    b_arg = bias.reshape(Cout, 1, 1).astype(jnp.float32)

    kernel = functools.partial(_upsample_conv_concat_kernel,
                               cin=Cin, cout=Cout, use_mxu=use_mxu)

    out = pl.pallas_call(
        kernel,
        out_shape=jax.ShapeDtypeStruct((N, C_total, 2 * H, 2 * W), out_dtype),
        grid_spec=pltpu.PrefetchScalarGridSpec(
            num_scalar_prefetch=0,
            grid=(N, n_h),
            in_specs=[
                pl.BlockSpec((1, Cin, t_h, W), lambda n, j: (n, 0, j, 0)),
                pl.BlockSpec((1, Fc, 2 * t_h, 2 * W), lambda n, j: (n, 0, j, 0)),
                w_spec,                                          # resident weight
                pl.BlockSpec((Cout, 1, 1), lambda n, j: (0, 0, 0)),  # resident bias
            ],
            out_specs=pl.BlockSpec((1, C_total, 2 * t_h, 2 * W),
                                   lambda n, j: (n, 0, j, 0)),
        ),
        compiler_params=pltpu.CompilerParams(
            dimension_semantics=("parallel", "parallel"),
            vmem_limit_bytes=int(vmem_limit),
        ),
    )(x, fmap, w_arg, b_arg)
    return out


if __name__ == "__main__":
    key = jax.random.PRNGKey(0)
    k_x, k_f, k_w, k_b = jax.random.split(key, 4)

    N, C, H, W = 2, 4, 16, 16
    Cout = C // 2

    x = jax.random.normal(k_x, (N, C, H, W), dtype=jnp.float32)
    feature_map = jax.random.normal(k_f, (N, Cout, 2 * H, 2 * W), dtype=jnp.float32)

    # Deterministic Conv2d(channel, channel//2, 1, 1) params (PyTorch-style shapes).
    fan_in = C * 1 * 1
    bound = 1.0 / (fan_in ** 0.5)
    weight = jax.random.uniform(k_w, (Cout, C, 1, 1), jnp.float32, -bound, bound)
    bias = jax.random.uniform(k_b, (Cout,), jnp.float32, -bound, bound)

    out = upsample_forward(x, feature_map, weight, bias)
    out = jax.block_until_ready(out)
    assert out.shape == (N, C, 2 * H, 2 * W), out.shape

    # Pure-JAX reference of the ORIGINAL op order (upsample -> conv -> concat),
    # with highest-precision matmul so the reference itself is not the error source.
    up_ref = jnp.repeat(jnp.repeat(x, 2, axis=2), 2, axis=3)
    conv_ref = jnp.einsum("nchw,oc->nohw", up_ref, weight.reshape(Cout, C),
                          precision=lax.Precision.HIGHEST) + bias.reshape(1, Cout, 1, 1)
    ref = jnp.concatenate((conv_ref, feature_map), axis=1)
    assert jnp.allclose(out, ref, atol=1e-5, rtol=1e-5)

    print("KERNEL_OK")
</pallas_src>

<mosaic_0001>
module attributes {stable_mosaic.version = 11 : i64} {
  func.func @_upsample_conv_concat_kernel(%arg0: i32, %arg1: i32, %arg2: memref<1x4x16x16xf32, #tpu.memory_space<vmem>>, %arg3: memref<1x2x32x32xf32, #tpu.memory_space<vmem>>, %arg4: memref<4x2x1x1xf32, #tpu.memory_space<vmem>>, %arg5: memref<2x1x1xf32, #tpu.memory_space<vmem>>, %arg6: memref<1x4x32x32xf32, #tpu.memory_space<vmem>>) attributes {dimension_semantics = [#tpu.dimension_semantics<parallel>, #tpu.dimension_semantics<parallel>], iteration_bounds = array<i64: 2, 1>, scalar_prefetch = 0 : i64, scratch_operands = 0 : i64, tpu.core_type = #tpu.core_type<tc>, window_params = [{transform_indices = @transform_0, window_bounds = array<i64: 1, 4, 16, 16>}, {transform_indices = @transform_1, window_bounds = array<i64: 1, 2, 32, 32>}, {pipeline_mode = #tpu.pipeline_mode<synchronous>, transform_indices = @transform_2, window_bounds = array<i64: 4, 2, 1, 1>}, {pipeline_mode = #tpu.pipeline_mode<synchronous>, transform_indices = @transform_3, window_bounds = array<i64: 2, 1, 1>}, {transform_indices = @transform_4, window_bounds = array<i64: 1, 4, 32, 32>}]} {
    %c0 = arith.constant 0 : index
    %c0_0 = arith.constant 0 : index
    %c0_1 = arith.constant 0 : index
    %c0_2 = arith.constant 0 : index
    %0 = vector.load %arg2[%c0, %c0_0, %c0_1, %c0_2] : memref<1x4x16x16xf32, #tpu.memory_space<vmem>>, vector<1x4x16x16xf32>
    %1 = vector.shape_cast %0 : vector<1x4x16x16xf32> to vector<4x16x16xf32>
    %c0_3 = arith.constant 0 : index
    %c0_4 = arith.constant 0 : index
    %c0_5 = arith.constant 0 : index
    %c0_6 = arith.constant 0 : index
    %2 = vector.load %arg4[%c0_3, %c0_4, %c0_5, %c0_6] : memref<4x2x1x1xf32, #tpu.memory_space<vmem>>, vector<4x2x1x1xf32>
    %3 = vector.extract_strided_slice %2 {offsets = [0, 0, 0, 0], sizes = [1, 2, 1, 1], strides = [1, 1, 1, 1]} : vector<4x2x1x1xf32> to vector<1x2x1x1xf32>
    %4 = vector.shape_cast %3 : vector<1x2x1x1xf32> to vector<2x1x1xf32>
    %5 = vector.extract_strided_slice %1 {offsets = [0, 0, 0], sizes = [1, 16, 16], strides = [1, 1, 1]} : vector<4x16x16xf32> to vector<1x16x16xf32>
    %6 = vector.shape_cast %5 : vector<1x16x16xf32> to vector<16x16xf32>
    %7 = vector.shape_cast %6 : vector<16x16xf32> to vector<1x16x16xf32>
    %8 = vector.broadcast %4 : vector<2x1x1xf32> to vector<2x16x16xf32>
    %9 = vector.broadcast %7 : vector<1x16x16xf32> to vector<2x16x16xf32>
    %10 = arith.mulf %8, %9 : vector<2x16x16xf32>
    %11 = vector.extract_strided_slice %2 {offsets = [1, 0, 0, 0], sizes = [1, 2, 1, 1], strides = [1, 1, 1, 1]} : vector<4x2x1x1xf32> to vector<1x2x1x1xf32>
    %12 = vector.shape_cast %11 : vector<1x2x1x1xf32> to vector<2x1x1xf32>
    %13 = vector.extract_strided_slice %1 {offsets = [1, 0, 0], sizes = [1, 16, 16], strides = [1, 1, 1]} : vector<4x16x16xf32> to vector<1x16x16xf32>
    %14 = vector.shape_cast %13 : vector<1x16x16xf32> to vector<16x16xf32>
    %15 = vector.shape_cast %14 : vector<16x16xf32> to vector<1x16x16xf32>
    %16 = vector.broadcast %12 : vector<2x1x1xf32> to vector<2x16x16xf32>
    %17 = vector.broadcast %15 : vector<1x16x16xf32> to vector<2x16x16xf32>
    %18 = arith.mulf %16, %17 : vector<2x16x16xf32>
    %19 = arith.addf %10, %18 : vector<2x16x16xf32>
    %20 = vector.extract_strided_slice %2 {offsets = [2, 0, 0, 0], sizes = [1, 2, 1, 1], strides = [1, 1, 1, 1]} : vector<4x2x1x1xf32> to vector<1x2x1x1xf32>
    %21 = vector.shape_cast %20 : vector<1x2x1x1xf32> to vector<2x1x1xf32>
    %22 = vector.extract_strided_slice %1 {offsets = [2, 0, 0], sizes = [1, 16, 16], strides = [1, 1, 1]} : vector<4x16x16xf32> to vector<1x16x16xf32>
    %23 = vector.shape_cast %22 : vector<1x16x16xf32> to vector<16x16xf32>
    %24 = vector.shape_cast %23 : vector<16x16xf32> to vector<1x16x16xf32>
    %25 = vector.broadcast %21 : vector<2x1x1xf32> to vector<2x16x16xf32>
    %26 = vector.broadcast %24 : vector<1x16x16xf32> to vector<2x16x16xf32>
    %27 = arith.mulf %25, %26 : vector<2x16x16xf32>
    %28 = arith.addf %19, %27 : vector<2x16x16xf32>
    %29 = vector.extract_strided_slice %2 {offsets = [3, 0, 0, 0], sizes = [1, 2, 1, 1], strides = [1, 1, 1, 1]} : vector<4x2x1x1xf32> to vector<1x2x1x1xf32>
    %30 = vector.shape_cast %29 : vector<1x2x1x1xf32> to vector<2x1x1xf32>
    %31 = vector.extract_strided_slice %1 {offsets = [3, 0, 0], sizes = [1, 16, 16], strides = [1, 1, 1]} : vector<4x16x16xf32> to vector<1x16x16xf32>
    %32 = vector.shape_cast %31 : vector<1x16x16xf32> to vector<16x16xf32>
    %33 = vector.shape_cast %32 : vector<16x16xf32> to vector<1x16x16xf32>
    %34 = vector.broadcast %30 : vector<2x1x1xf32> to vector<2x16x16xf32>
    %35 = vector.broadcast %33 : vector<1x16x16xf32> to vector<2x16x16xf32>
    %36 = arith.mulf %34, %35 : vector<2x16x16xf32>
    %37 = arith.addf %28, %36 : vector<2x16x16xf32>
    %c0_7 = arith.constant 0 : index
    %c0_8 = arith.constant 0 : index
    %c0_9 = arith.constant 0 : index
    %38 = vector.load %arg5[%c0_7, %c0_8, %c0_9] : memref<2x1x1xf32, #tpu.memory_space<vmem>>, vector<2x1x1xf32>
    %39 = vector.broadcast %38 : vector<2x1x1xf32> to vector<2x16x16xf32>
    %40 = arith.addf %37, %39 : vector<2x16x16xf32>
    %41 = vector.shape_cast %40 : vector<2x16x16xf32> to vector<2x16x16x1xf32>
    %42 = vector.broadcast %41 : vector<2x16x16x1xf32> to vector<2x16x16x2xf32>
    %43 = vector.shape_cast %42 : vector<2x16x16x2xf32> to vector<2x16x32xf32>
    %44 = vector.shape_cast %43 : vector<2x16x32xf32> to vector<2x16x1x32xf32>
    %45 = vector.broadcast %44 : vector<2x16x1x32xf32> to vector<2x16x2x32xf32>
    %46 = vector.shape_cast %45 : vector<2x16x2x32xf32> to vector<2x32x32xf32>
    %c0_10 = arith.constant 0 : index
    %c0_11 = arith.constant 0 : index
    %c0_12 = arith.constant 0 : index
    %c0_13 = arith.constant 0 : index
    %47 = vector.load %arg6[%c0_10, %c0_11, %c0_12, %c0_13] : memref<1x4x32x32xf32, #tpu.memory_space<vmem>>, vector<1x2x32x32xf32>
    %48 = vector.shape_cast %47 : vector<1x2x32x32xf32> to vector<2x32x32xf32>
    %49 = vector.shape_cast %46 : vector<2x32x32xf32> to vector<1x2x32x32xf32>
    tpu.vector_store %arg6[%c0_10, %c0_11, %c0_12, %c0_13], %49 {strides = array<i32>} : memref<1x4x32x32xf32, #tpu.memory_space<vmem>>, vector<1x2x32x32xf32>,
    %c0_14 = arith.constant 0 : index
    %c0_15 = arith.constant 0 : index
    %c0_16 = arith.constant 0 : index
    %c0_17 = arith.constant 0 : index
    %50 = vector.load %arg3[%c0_14, %c0_15, %c0_16, %c0_17] : memref<1x2x32x32xf32, #tpu.memory_space<vmem>>, vector<1x2x32x32xf32>
    %51 = vector.shape_cast %50 : vector<1x2x32x32xf32> to vector<2x32x32xf32>
    %c0_18 = arith.constant 0 : index
    %c2 = arith.constant 2 : index
    %c0_19 = arith.constant 0 : index
    %c0_20 = arith.constant 0 : index
    %52 = vector.load %arg6[%c0_18, %c2, %c0_19, %c0_20] : memref<1x4x32x32xf32, #tpu.memory_space<vmem>>, vector<1x2x32x32xf32>
    %53 = vector.shape_cast %52 : vector<1x2x32x32xf32> to vector<2x32x32xf32>
    %54 = vector.shape_cast %51 : vector<2x32x32xf32> to vector<1x2x32x32xf32>
    tpu.vector_store %arg6[%c0_18, %c2, %c0_19, %c0_20], %54 {strides = array<i32>} : memref<1x4x32x32xf32, #tpu.memory_space<vmem>>, vector<1x2x32x32xf32>,
    return
  }
  func.func @transform_0(%arg0: i32, %arg1: i32) -> (i32, i32, i32, i32) {
    %c0_i32 = arith.constant 0 : i32
    %c0_i32_0 = arith.constant 0 : i32
    %c0_i32_1 = arith.constant 0 : i32
    return %arg0, %c0_i32, %arg1, %c0_i32_0 : i32, i32, i32, i32
  }
  func.func @transform_1(%arg0: i32, %arg1: i32) -> (i32, i32, i32, i32) {
    %c0_i32 = arith.constant 0 : i32
    %c0_i32_0 = arith.constant 0 : i32
    %c0_i32_1 = arith.constant 0 : i32
    return %arg0, %c0_i32, %arg1, %c0_i32_0 : i32, i32, i32, i32
  }
  func.func @transform_2(%arg0: i32, %arg1: i32) -> (i32, i32, i32, i32) {
    %c0_i32 = arith.constant 0 : i32
    %c0_i32_0 = arith.constant 0 : i32
    %c0_i32_1 = arith.constant 0 : i32
    %c0_i32_2 = arith.constant 0 : i32
    %c0_i32_3 = arith.constant 0 : i32
    return %c0_i32, %c0_i32_0, %c0_i32_1, %c0_i32_2 : i32, i32, i32, i32
  }
  func.func @transform_3(%arg0: i32, %arg1: i32) -> (i32, i32, i32) {
    %c0_i32 = arith.constant 0 : i32
    %c0_i32_0 = arith.constant 0 : i32
    %c0_i32_1 = arith.constant 0 : i32
    %c0_i32_2 = arith.constant 0 : i32
    return %c0_i32, %c0_i32_0, %c0_i32_1 : i32, i32, i32
  }
  func.func @transform_4(%arg0: i32, %arg1: i32) -> (i32, i32, i32, i32) {
    %c0_i32 = arith.constant 0 : i32
    %c0_i32_0 = arith.constant 0 : i32
    %c0_i32_1 = arith.constant 0 : i32
    return %arg0, %c0_i32, %arg1, %c0_i32_0 : i32, i32, i32, i32
  }
}

</mosaic_0001>

<bundles_post_ra>
// kernel: tpu_custom_call.1
= control target key start
LH: loop header
LB: loop body
LE: loop exit
PB: predicated region body
PF: predicated region fallthrough
CT: control target
= control target key end

     0   :  { %9 = vsyncpa [#allocation3], 0  ;;  %s12688_s0 = inlined_call_operand.hbm [shape: f32[2,4,16,16], index: 0, kind: input, shape index: {}]   ;;  %s12689_s1 = inlined_call_operand.hbm [shape: f32[2,2,32,32], index: 1, kind: input, shape index: {}]   ;;  %s12690_s2 = inlined_call_operand.vmem [shape: f32[4,2,1,1], index: 2, kind: input, shape index: {}]   ;;  %s12691_s3 = inlined_call_operand.vmem [shape: f32[2,1,1], index: 3, kind: input, shape index: {}]   ;;  %s12692_s4 = inlined_call_operand.hbm [shape: f32[2,4,32,32], index: 4, kind: output, shape index: {}]  }
   0x1   :  { %11 = vsyncpa [#allocation3 + $0x1], 0 }
   0x2   :  { %12 = vsyncpa [#allocation6], 0 }
   0x3   :  { %14 = vsyncpa [#allocation6 + $0x1], 0 }
   0x4   :  { %15 = vsyncpa [#allocation4], 0 }
   0x5   :  { %17 = vsyncpa [#allocation4 + $0x1], 0  ;;  %s7112_s15 = smov 0   ;;  %s7114_s16 = smov 0  }
   0x6   :  { %s7116_s17 = smov 0   ;;  %s7118_s18 = smov 0  }
   0x7   :  { %s7120_s19 = smov 0   ;;  %s7122_s20 = smov 0  }
   0x8 LB: > { %s6783_s21 = sadd.s32 4294967295, %s7060_s20   ;;  %s6784_s22 = sadd.s32 4294967294, %s7060_s20   ;;  %s7060_s20 = sphi %s7122_s20, %s23_s20   ;;  %s7056_s19 = sphi %s7120_s19, %s13837_s19   ;;  %s7052_s18 = sphi %s7118_s18, %s13836_s18   ;;  %s7048_s17 = sphi %s7116_s17, %s13835_s17   ;;  %s7044_s16 = sphi %s7114_s16, %s13834_s16   ;;  %s7040_s15 = sphi %s7112_s15, %s13833_s15  }
   0x9   : > { %s35_s23 = sadd.s32 1, %s7056_s19  ;;  %s44_s24 = sadd.s32 1, %s7048_s17 }
   0xa   : > { %p37_p0 = scmp.ge.s32.totalorder %s35_s23, 2  ;;  %p51_p1 = scmp.ne.s32.totalorder %s7048_s17, %s7044_s16 }
   0xb   : > { %p52_p2 = scmp.eq.s32.totalorder %s7060_s20, 0  ;;  %p57_p3 = scmp.ne.s32.totalorder %s7044_s16, %s7040_s15 }
   0xc   : > { %s13839_s23 = smov (%p37_p0, %s35_s23), 0  ;;  %p58_p5 = scmp.eq.s32.totalorder %s6783_s21, 0 }
   0xd   : > { %p7153_p4 = por %p52_p2, %p51_p1  ;;  %s39_s26 = ssub.s32 %s7056_s19, %s13839_s23 }
   0xe   : > { %p153_p6 = scmp.eq.s32.totalorder %s6783_s21, 1  ;;  %p42_p7 = scmp.eq.s32.totalorder %s39_s26, 0 }
   0xf   : > { %p7159_p8 = por %p58_p5, %p57_p3  ;;  %p159_p10 = scmp.eq.s32.totalorder %s6784_s22, 1 }
  0x10   : > { %p7163_p9 = por %p153_p6, %p51_p1  ;;  %p6840_p13 = scmp.lt.s32.totalorder %s7060_s20, 2 }
  0x11   : > { %s12803_s27 = scalar_select %p7159_p8, 1, 0 }
  0x12   : > { %s12804_s28 = scalar_select %p7163_p9, 1, 0 }
  0x13   : > { %s7168_s29 = scalar_select %p42_p7, %s7048_s17, %s44_s24  }
  0x14   : > { %p7170_p11 = por %p159_p10, %p57_p3  ;;  %s7177_s5 = sand.u32 1, %s7048_s17  }
  0x15   : > { %s6787_s6 = sshll.u32 %s7177_s5, 6  ;;  %s6820_s7 = sshll.u32 %s7056_s19, 10 }
  0x16   : > { %s12805_s30 = scalar_select %p7170_p11, 1, 0 }
  0x17   : > { %s7186_s10 = scalar_lea.hbm %s12688_s0, %s6820_s7  ;;  %s189_s11 = scalar_lea.vmem [#allocation2], %s6787_s6 }
  0x18   : > { %s198_s12 = sshll.u32 %s189_s11, 4  ;;  %p7194_p0 = pnand %p6840_p13, %p7153_p4  ;;  %s7190_s12 = int_to_ptr.vmem [resolvable:$true] %s198_s12 }
  0x19   : > { %s186_s14 = scalar_lea.sflag [#allocation3], %s7177_s5  ;;  %s6914_s21 = scalar_lea.hbm %s7186_s10, 1024 }
  0x1a   : > { %p6915_p2 = scmp.ne.s32.totalorder %s7186_s10, %s6914_s21  ;;  %p6916_p3 = pneg %p7194_p0 }
  0x1b   : > { %s6919_s25 = scalar_lea.hbm %s12688_s0, 2048  ;;  %p6920_p4 = scmp.lt.u32.totalorder %s7186_s10, %s12688_s0 }
  0x1c   : > { %p6917_p5 = pnand %p6916_p3, %p6915_p2  ;;  %p6921_p7 = scmp.lt.u32.totalorder %s6919_s25, %s6914_s21 }
  0x1d   : > { %p6923_p13 = scmp.lt.u32.totalorder %s6914_s21, %s7186_s10 }
  0x1e   : > { %p6918_p6 = pneg %p6917_p5  ;;  %p6922_p10 = por %p6921_p7, %p6920_p4 }
  0x20   : > { %p6924_p12 = por %p6923_p13, %p6922_p10 }
  0x22   : > { %p6925_p1 = pnand %p6924_p12, %p6918_p6 }
  0x24   : > { %6928 = shalt.err (!%p6925_p1)
}
  0x25   : > { %s6929_s9 = scalar_lea.vmem %s7190_s12, 1024  ;;  %s7062_s11 = smov [#allocation2]  }
  0x26   : > { %p6930_p2 = scmp.ne.s32.totalorder %s7190_s12, %s6929_s9  ;;  %s6934_s22 = sshll.u32 %s7062_s11, 4  ;;  %s6935_s22 = int_to_ptr.vmem [resolvable:$false] %s6934_s22 }
  0x27   : > { %s6936_s24 = scalar_lea.vmem %s6935_s22, 2048  ;;  %p6937_p9 = scmp.lt.s32.totalorder %s7190_s12, %s6935_s22 }
  0x28   : > { %p6932_p5 = pnand %p6930_p2, %p6916_p3  ;;  %p6938_p4 = scmp.lt.s32.totalorder %s6936_s24, %s6929_s9 }
  0x2a   : > { %p6933_p11 = pneg %p6932_p5  ;;  %p6939_p7 = por %p6938_p4, %p6937_p9 }
  0x2c   : > { %p6940_p10 = pnand %p6939_p7, %p6933_p11 }
  0x2e   : > { %6943 = shalt.err (!%p6940_p10)
}
  0x2f   : > { %s12694_s21 = smov 128   ;;  %s7064_s25 = smov 8  }
  0x30   : > { %6832 = dma.hbm_to_vmem [thread:$0]  (!%p7194_p0), %s7186_s10, 1024, %s7190_s12, %s186_s14, %s12694_s21, %s12694_s21, %s7064_s25  }
  0x31   : > { %p229_p9 = scmp.lt.s32.totalorder %s7060_s20, 3  ;;  %s7236_s9 = scalar_lea.hbm %s12689_s1, %s6820_s7 }
  0x32   : > { %p12807_p11 = scmp.ge.s32.totalorder %s7060_s20, 1  ;;  %s212_s22 = scalar_lea.vmem [#allocation5], %s6787_s6 }
  0x33   : > { %s221_s24 = sshll.u32 %s212_s22, 4  ;;  %s209_s10 = scalar_lea.sflag [#allocation6], %s7177_s5  ;;  %s7246_s24 = int_to_ptr.vmem [resolvable:$true] %s221_s24 }
  0x34   : > { %p7240_p12 = pnand %p12807_p11, %p229_p9  ;;  %s6944_s12 = scalar_lea.hbm %s7236_s9, 1024 }
  0x35   : > { %p6945_p1 = scmp.ne.s32.totalorder %s7236_s9, %s6944_s12  ;;  %s6949_s26 = scalar_lea.hbm %s12689_s1, 2048 }
  0x36   : > { %p6950_p2 = scmp.lt.u32.totalorder %s7236_s9, %s12689_s1  ;;  %p6951_p5 = scmp.lt.u32.totalorder %s6949_s26, %s6944_s12 }
  0x37   : > { %p6947_p6 = pnand %p6945_p1, %p6916_p3  ;;  %p6953_p7 = scmp.lt.u32.totalorder %s6944_s12, %s7236_s9 }
  0x38   : > { %p6952_p4 = por %p6951_p5, %p6950_p2 }
  0x39   : > { %p6948_p13 = pneg %p6947_p6 }
  0x3a   : > { %p6954_p10 = por %p6953_p7, %p6952_p4 }
  0x3c   : > { %p6955_p9 = pnand %p6954_p10, %p6948_p13 }
  0x3e   : > { %6958 = shalt.err (!%p6955_p9)
}
  0x3f   : > { %s6959_s6 = scalar_lea.vmem %s7246_s24, 1024  ;;  %s7065_s22 = smov [#allocation5]  }
  0x40   : > { %p6960_p11 = scmp.ne.s32.totalorder %s7246_s24, %s6959_s6  ;;  %s6964_s7 = sshll.u32 %s7065_s22, 4  ;;  %s6965_s7 = int_to_ptr.vmem [resolvable:$false] %s6964_s7 }
  0x41   : > { %s6966_s21 = scalar_lea.vmem %s6965_s7, 2048  ;;  %p6967_p8 = scmp.lt.s32.totalorder %s7246_s24, %s6965_s7 }
  0x42   : > { %p6962_p1 = pnand %p6960_p11, %p6916_p3  ;;  %p6968_p2 = scmp.lt.s32.totalorder %s6966_s21, %s6959_s6 }
  0x44   : > { %p6963_p6 = pneg %p6962_p1  ;;  %p6969_p5 = por %p6968_p2, %p6967_p8 }
  0x46   : > { %p6970_p4 = pnand %p6969_p5, %p6963_p6 }
  0x48   : > { %6973 = shalt.err (!%p6970_p4)
}
  0x49   : > { %s12809_s12 = smov 128   ;;  %233 = sbr.rel (%p7240_p12) target bundleno = 1542 (0x606), region = 36 }
  0x4a   : > { %6835 = dma.hbm_to_vmem [thread:$0]  (!%p7194_p0), %s7236_s9, 1024, %s7246_s24, %s209_s10, %s12809_s12, %s12809_s12, %s7064_s25  }
  0x50   : > { %s7280_s14 = sand.u32 1, %s7044_s16   ;;  %p12810_p8 = scmp.ne.s32.totalorder %s12803_s27, 0 }
  0x51   : > { %s6794_s26 = sshll.u32 %s7280_s14, 6  ;;  %s236_s8 = scalar_lea.sflag [#allocation3], %s7280_s14 }
  0x52   : > { %s7284_s13 = scalar_lea.vmem [#allocation2], %s6794_s26 }
  0x53   : > { %7027 = dma.done.wait (%p12810_p8), %s236_s8, 1024  }
  0x54   : > { %7029 = vsyncadd (%p12810_p8), %s236_s8, 4294966272  ;;  %s245_s5 = scalar_lea.sflag [#allocation6], %s7280_s14  ;;  %s7291_s25 = scalar_lea.vmem [#allocation5], %s6794_s26 }
  0x55   : > { %7031 = dma.done.wait (%p12810_p8), %s245_s5, 1024  }
  0x56   : > { %7033 = vsyncadd (%p12810_p8), %s245_s5, 4294966272  ;;  %v7066_v0 = vmov 0   ;;  %v6799_v1 = vld [vmem:[%s12690_s2 + $0x2] ss:$0 sm:$0xff]  ;;  %v6797_v2 = vld [vmem:[%s12690_s2] ss:$0 sm:$0xff]  ;;  %v421_v25 = vlaneseq }
  0x57   : > { %6913 = vset.pattern.permute.xlu1 %v7066_v0  ;;  %6912 = vset.pattern.permute.xlu0 %v7066_v0  ;;  %v6800_v3 = vld [vmem:[%s12690_s2 + $0x3] ss:$0 sm:$0xff]  ;;  %v6798_v4 = vld [vmem:[%s12690_s2 + $0x1] ss:$0 sm:$0xff]  ;;  %v6802_v5 = vld [vmem:[%s12690_s2 + $0x5] ss:$0 sm:$0xff] }
  0x58   : > { %330 = vperm.xlu1 %6913, %v6799_v1   ;;  %308 = vperm.xlu0 %6912, %v6797_v2   ;;  %v6801_v6 = vld [vmem:[%s12690_s2 + $0x4] ss:$0 sm:$0xff]  ;;  %v6804_v7 = vld [vmem:[%s12690_s2 + $0x7] ss:$0 sm:$0xff]  ;;  %v6803_v8 = vld [vmem:[%s12690_s2 + $0x6] ss:$0 sm:$0xff] }
  0x59   : > { %v6806_v9 = vld [vmem:[%s12691_s3 + $0x1] ss:$0 sm:$0xff]  ;;  %v6805_v10 = vld [vmem:[%s12691_s3] ss:$0 sm:$0xff]  ;;  %v283_v13 = vld [vmem:[%s7284_s13 + $0x10] sm:$0xff]  ;;  %v7350_v40 = vshrl.u32 %v421_v25, 7 }
  0x5a   : > { %v7333_v14 = vld [vmem:[%s7284_s13 + $0x18] sm:$0xff]  ;;  %v281_v15 = vld [vmem:[%s7284_s13] sm:$0xff]  ;;  %v7337_v16 = vld [vmem:[%s7284_s13 + $0x8] sm:$0xff]  ;;  %s7071_s27 = smov 4   ;;  %s7072_s21 = smov 6   ;;  %vm5829_vm0 = vcmask 15360  }
  0x5b   : > { %v285_v23 = vld [vmem:[%s7284_s13 + $0x20] sm:$0xff]  ;;  %v7343_v24 = vld [vmem:[%s7284_s13 + $0x28] sm:$0xff]  ;;  %v287_v35 = vld [vmem:[%s7284_s13 + $0x30] sm:$0xff]  ;;  %v7353_v50 = vsub.s32 0, %v7350_v40  ;;  %v434_v56 = vsub.s32 1, %v7350_v40  ;;  %v445_v57 = vsub.s32 2, %v7350_v40 }
  0x5c   : > { %334 = vperm.xlu1 %6913, %v6800_v3   ;;  %312 = vperm.xlu0 %6912, %v6798_v4   ;;  %v288_v36 = vld [vmem:[%s7284_s13 + $0x38] sm:$0xff]  ;;  %v456_v58 = vsub.s32 3, %v7350_v40  ;;  %v467_v59 = vsub.s32 4, %v7350_v40  ;;  %v7363_v60 = vsub.s32 5, %v7350_v40  ;;  %v7366_v61 = vsub.s32 6, %v7350_v40  ;;  %s7070_s13 = smov 2  }
  0x5d   : > { %12811 = vst [vmem:[#allocation11_spill] sm:$0xff] %v7353_v50  ;;  %v7371_v63 = vsub.s32 7, %v7350_v40  ;;  %s7073_s12 = smov 8   ;;  %s7074_s26 = smov 10   ;;  %vm5862_vm1 = vcmask 31744   ;;  %vm5895_vm2 = vcmask 48128  }
  0x5e   : > { %s7075_s8 = smov 12   ;;  %s7076_s5 = smov 14   ;;  %vm5928_vm3 = vcmask 64512   ;;  %vm5961_vm4 = vcmask 80896   ;;  %vm5994_vm5 = vcmask 97280   ;;  %vm6027_vm6 = vcmask 113664  }
  0x5f   : > { %s7077_s9 = smov 16   ;;  %s7078_s11 = smov 18   ;;  %vm6060_vm7 = vcmask 130048   ;;  %vm6093_vm8 = vcmask 146432   ;;  %vm6126_vm9 = vcmask 162816   ;;  %vm6159_vm10 = vcmask 179200  }
  0x60   : > { %360 = vperm.xlu1 %6913, %v6802_v5   ;;  %356 = vperm.xlu0 %6912, %v6801_v6   ;;  %s7079_s24 = smov 20   ;;  %s7080_s10 = smov 22   ;;  %vm6192_vm11 = vcmask 195584   ;;  %vm6225_vm12 = vcmask 211968   ;;  %vm6258_vm13 = vcmask 228352   ;;  %vm6628_vm14 = vcmask 261120  }
  0x61   : > { %s7081_s6 = smov 24   ;;  %s7082_s22 = smov 26   ;;  %vm6291_vm15 = vcmask 244736  }
  0x62   : > { %s7083_s7 = smov 28   ;;  %p13830_p3 = scmp.ne.s32.totalorder %s12804_s28, 0 }
  0x64   : > { %386 = vperm.xlu1 %6913, %v6804_v7   ;;  %382 = vperm.xlu0 %6912, %v6803_v8  }
  0x68   : > { %414 = vperm.xlu1 %6913, %v6806_v9   ;;  %410 = vperm.xlu0 %6912, %v6805_v10  }
  0xd7   : > { %v7327_v11 = vpop.permute.xlu1 %330  ;;  %v7329_v12 = vpop.permute.xlu0 %308 }
  0xd8   : > { %v337_v26 = vmul.f32 %v7327_v11, %v283_v13  ;;  %v315_v27 = vmul.f32 %v7329_v12, %v281_v15 }
  0xda   : > { %v341_v37 = vadd.f32 %v337_v26, %v315_v27 }
  0xdb   : > { %v335_v17 = vpop.permute.xlu1 %334  ;;  %v313_v18 = vpop.permute.xlu0 %312 }
  0xdc   : > { %v339_v19 = vmul.f32 %v335_v17, %v283_v13  ;;  %v340_v20 = vmul.f32 %v335_v17, %v7333_v14  ;;  %v317_v21 = vmul.f32 %v313_v18, %v281_v15  ;;  %v318_v22 = vmul.f32 %v313_v18, %v7337_v16 }
  0xde   : > { %v343_v28 = vadd.f32 %v339_v19, %v317_v21  ;;  %v344_v29 = vadd.f32 %v340_v20, %v318_v22  ;;  %v338_v21 = vmul.f32 %v7327_v11, %v7333_v14  ;;  %v316_v22 = vmul.f32 %v7329_v12, %v7337_v16 }
  0xdf   : > { %v361_v30 = vpop.permute.xlu1 %360  ;;  %v357_v31 = vpop.permute.xlu0 %356 }
  0xe0   : > { %v365_v32 = vmul.f32 %v361_v30, %v285_v23  ;;  %v366_v33 = vmul.f32 %v361_v30, %v7343_v24  ;;  %v363_v34 = vmul.f32 %v357_v31, %v285_v23  ;;  %v364_v25 = vmul.f32 %v357_v31, %v7343_v24 }
  0xe1   : > { %v342_v26 = vadd.f32 %v338_v21, %v316_v22 }
  0xe2   : > { %v369_v38 = vadd.f32 %v365_v32, %v343_v28  ;;  %v370_v39 = vadd.f32 %v366_v33, %v344_v29  ;;  %v367_v43 = vadd.f32 %v363_v34, %v341_v37 }
  0xe3   : > { %v387_v41 = vpop.permute.xlu1 %386  ;;  %v383_v42 = vpop.permute.xlu0 %382  ;;  %v368_v29 = vadd.f32 %v364_v25, %v342_v26 }
  0xe4   : > { %v391_v44 = vmul.f32 %v387_v41, %v287_v35  ;;  %v392_v45 = vmul.f32 %v387_v41, %v288_v36  ;;  %v389_v46 = vmul.f32 %v383_v42, %v287_v35  ;;  %v390_v27 = vmul.f32 %v383_v42, %v288_v36 }
  0xe6   : > { %v395_v47 = vadd.f32 %v391_v44, %v369_v38  ;;  %v396_v48 = vadd.f32 %v392_v45, %v370_v39  ;;  %v393_v49 = vadd.f32 %v389_v46, %v367_v43  ;;  %v394_v30 = vadd.f32 %v390_v27, %v368_v29 }
  0xe7   : > { %v415_v51 = vpop.permute.xlu1 %414  ;;  %v411_v52 = vpop.permute.xlu0 %410  ;;  %v7067_v39 = vmov 1983009808   ;;  %v7068_v43 = vmov 1934713408  }
  0xe8   : > { %v417_v53 = vadd.f32 %v411_v52, %v393_v49  ;;  %v7355_v54 = vadd.f32 %v415_v51, %v395_v47  ;;  %v7368_v62 = vadd.f32 %v415_v51, %v396_v48  ;;  %v418_v11 = vadd.f32 %v411_v52, %v394_v30 }
  0xe9   : > { %v775_v41 = vunpack.c.l.s4 %v7067_v39  ;;  %v790_v44 = vunpack.c.l.s4 %v7068_v43 }
  0xea   : > { %v424_v55 = vrot.slane %v417_v53, %v7353_v50  ;;  %v435_v0 = vrot.slane %v417_v53, %v434_v56  ;;  %v7374_v1 = vrot.slane %v7355_v54, %v434_v56  ;;  %v7377_v2 = vrot.slane %v7355_v54, %v445_v57 }
  0xeb   : > { %v7380_v3 = vrot.slane %v7355_v54, %v456_v58  ;;  %v7383_v4 = vrot.slane %v7355_v54, %v467_v59  ;;  %v7387_v5 = vrot.slane %v7355_v54, %v7363_v60  ;;  %v7391_v6 = vrot.slane %v7355_v54, %v7366_v61 }
  0xec   : > { %430 = vbcast.lane.b32.xlu1 %v424_v55, 264  ;;  %426 = vbcast.lane.b32.xlu0 %v424_v55, 256  ;;  %v7395_v7 = vrot.slane %v7355_v54, %v7371_v63  ;;  %v7398_v8 = vrot.slane %v7368_v62, %v434_v56  ;;  %v7401_v9 = vrot.slane %v7368_v62, %v445_v57  ;;  %v776_v42 = vunpack.c.0.s8 %v775_v41 }
  0xed   : > { %v7404_v10 = vrot.slane %v7368_v62, %v456_v58  ;;  %v7407_v13 = vrot.slane %v7368_v62, %v467_v59  ;;  %v7411_v15 = vrot.slane %v7368_v62, %v7363_v60  ;;  %v446_v17 = vrot.slane %v417_v53, %v445_v57 }
  0xee   : > { %v7415_v18 = vrot.slane %v7368_v62, %v7366_v61  ;;  %v7419_v19 = vrot.slane %v7368_v62, %v7371_v63  ;;  %v457_v20 = vrot.slane %v417_v53, %v456_v58  ;;  %v468_v23 = vrot.slane %v417_v53, %v467_v59 }
  0xef   : > { %v479_v28 = vrot.slane %v417_v53, %v7363_v60  ;;  %v490_v32 = vrot.slane %v417_v53, %v7366_v61  ;;  %v501_v12 = vrot.slane %v417_v53, %v7371_v63  ;;  %v512_v14 = vrot.slane %v418_v11, %v7353_v50 }
  0xf0   : > { %441 = vbcast.lane.b32.xlu1 %v435_v0, 264  ;;  %437 = vbcast.lane.b32.xlu0 %v435_v0, 256  ;;  %v523_v16 = vrot.slane %v418_v11, %v434_v56  ;;  %v534_v24 = vrot.slane %v418_v11, %v445_v57  ;;  %v545_v31 = vrot.slane %v418_v11, %v456_v58  ;;  %v791_v46 = vunpack.c.0.s8 %v790_v44 }
  0xf1   : > { %v556_v33 = vrot.slane %v418_v11, %v467_v59  ;;  %v567_v34 = vrot.slane %v418_v11, %v7363_v60  ;;  %v578_v35 = vrot.slane %v418_v11, %v7366_v61  ;;  %v589_v36 = vrot.slane %v418_v11, %v7371_v63 }
  0xf2   : > { %v600_v37 = vrot.slane %v7355_v54, %v7353_v50  ;;  %v688_v38 = vrot.slane %v7368_v62, %v7353_v50  ;;  %v7460_v45 = vsub.s32 %v776_v42, %v7350_v40  ;;  %v7469_v49 = vsub.s32 %v791_v46, %v7350_v40 }
  0xf3   : > { %v12777_v62 = vmov 0.0  }
  0xf4   : > { %452 = vbcast.lane.b32.xlu1 %v446_v17, 264  ;;  %448 = vbcast.lane.b32.xlu0 %v446_v17, 256  ;;  %12812 = vst [vmem:[#allocation12_spill] sm:$0xff] %v7460_v45 }
  0xf8   : > { %463 = vbcast.lane.b32.xlu1 %v457_v20, 264  ;;  %459 = vbcast.lane.b32.xlu0 %v457_v20, 256 }
  0xfc   : > { %474 = vbcast.lane.b32.xlu1 %v468_v23, 264  ;;  %470 = vbcast.lane.b32.xlu0 %v468_v23, 256 }
 0x100   : > { %485 = vbcast.lane.b32.xlu1 %v479_v28, 264  ;;  %481 = vbcast.lane.b32.xlu0 %v479_v28, 256 }
 0x104   : > { %496 = vbcast.lane.b32.xlu1 %v490_v32, 264  ;;  %492 = vbcast.lane.b32.xlu0 %v490_v32, 256 }
 0x108   : > { %507 = vbcast.lane.b32.xlu1 %v501_v12, 264  ;;  %503 = vbcast.lane.b32.xlu0 %v501_v12, 256 }
 0x10c   : > { %518 = vbcast.lane.b32.xlu1 %v512_v14, 264  ;;  %514 = vbcast.lane.b32.xlu0 %v512_v14, 256 }
 0x110   : > { %529 = vbcast.lane.b32.xlu1 %v523_v16, 264  ;;  %525 = vbcast.lane.b32.xlu0 %v523_v16, 256 }
 0x114   : > { %540 = vbcast.lane.b32.xlu1 %v534_v24, 264  ;;  %536 = vbcast.lane.b32.xlu0 %v534_v24, 256 }
 0x118   : > { %551 = vbcast.lane.b32.xlu1 %v545_v31, 264  ;;  %547 = vbcast.lane.b32.xlu0 %v545_v31, 256 }
 0x11c   : > { %562 = vbcast.lane.b32.xlu1 %v556_v33, 264  ;;  %558 = vbcast.lane.b32.xlu0 %v556_v33, 256 }
 0x120   : > { %573 = vbcast.lane.b32.xlu1 %v567_v34, 264  ;;  %569 = vbcast.lane.b32.xlu0 %v567_v34, 256 }
 0x124   : > { %584 = vbcast.lane.b32.xlu1 %v578_v35, 264  ;;  %580 = vbcast.lane.b32.xlu0 %v578_v35, 256 }
 0x128   : > { %595 = vbcast.lane.b32.xlu1 %v589_v36, 264  ;;  %591 = vbcast.lane.b32.xlu0 %v589_v36, 256 }
 0x12c   : > { %606 = vbcast.lane.b32.xlu1 %v600_v37, 264  ;;  %602 = vbcast.lane.b32.xlu0 %v600_v37, 256 }
 0x130   : > { %617 = vbcast.lane.b32.xlu1 %v7374_v1, 264  ;;  %613 = vbcast.lane.b32.xlu0 %v7374_v1, 256 }
 0x134   : > { %628 = vbcast.lane.b32.xlu1 %v7377_v2, 264  ;;  %624 = vbcast.lane.b32.xlu0 %v7377_v2, 256 }
 0x138   : > { %639 = vbcast.lane.b32.xlu1 %v7380_v3, 264  ;;  %635 = vbcast.lane.b32.xlu0 %v7380_v3, 256 }
 0x13c   : > { %650 = vbcast.lane.b32.xlu1 %v7383_v4, 264  ;;  %646 = vbcast.lane.b32.xlu0 %v7383_v4, 256 }
 0x140   : > { %661 = vbcast.lane.b32.xlu1 %v7387_v5, 264  ;;  %657 = vbcast.lane.b32.xlu0 %v7387_v5, 256 }
 0x144   : > { %672 = vbcast.lane.b32.xlu1 %v7391_v6, 264  ;;  %668 = vbcast.lane.b32.xlu0 %v7391_v6, 256 }
 0x148   : > { %683 = vbcast.lane.b32.xlu1 %v7395_v7, 264  ;;  %679 = vbcast.lane.b32.xlu0 %v7395_v7, 256 }
 0x14c   : > { %694 = vbcast.lane.b32.xlu1 %v688_v38, 264  ;;  %690 = vbcast.lane.b32.xlu0 %v688_v38, 256 }
 0x150   : > { %705 = vbcast.lane.b32.xlu1 %v7398_v8, 264  ;;  %701 = vbcast.lane.b32.xlu0 %v7398_v8, 256 }
 0x154   : > { %716 = vbcast.lane.b32.xlu1 %v7401_v9, 264  ;;  %712 = vbcast.lane.b32.xlu0 %v7401_v9, 256 }
 0x158   : > { %727 = vbcast.lane.b32.xlu1 %v7404_v10, 264  ;;  %723 = vbcast.lane.b32.xlu0 %v7404_v10, 256 }
 0x15c   : > { %738 = vbcast.lane.b32.xlu1 %v7407_v13, 264  ;;  %734 = vbcast.lane.b32.xlu0 %v7407_v13, 256 }
 0x15e   : > { %v7462_v47 = vpop.permute.xlu1 %430  ;;  %v7464_v48 = vpop.permute.xlu0 %426 }
 0x15f   : > { %12813 = vst [vmem:[#allocation13_spill] sm:$0xff] %v7462_v47  ;;  %v7473_v51 = vrot.slane %v7464_v48, %v7460_v45 }
 0x160   : > { %749 = vbcast.lane.b32.xlu1 %v7411_v15, 264  ;;  %745 = vbcast.lane.b32.xlu0 %v7411_v15, 256 }
 0x161   : > { %v7487_v40 = vrot.slane %v7473_v51, %v7469_v49 }
 0x162   : > { %v7475_v52 = vpop.permute.xlu1 %441  ;;  %v7477_v53 = vpop.permute.xlu0 %437 }
 0x163   : > { %12814 = vst [vmem:[#allocation14_spill] sm:$0xff] %v7475_v52  ;;  %v7481_v54 = vrot.slane %v7477_v53, %v7460_v45  ;;  %12815 = vst [vmem:[#allocation15_spill] sm:$0xff] %v7487_v40  ;;  %v818_v63 = vcombine.high %v7487_v40, %v12777_v62 }
 0x164   : > { %760 = vbcast.lane.b32.xlu1 %v7415_v18, 264  ;;  %756 = vbcast.lane.b32.xlu0 %v7415_v18, 256 }
 0x165   : > { %v7491_v55 = vrot.slane %v7481_v54, %v7469_v49 }
 0x166   : > { %v7493_v56 = vpop.permute.xlu1 %452  ;;  %v7495_v57 = vpop.permute.xlu0 %448 }
 0x167   : > { %12816 = vst [vmem:[#allocation16_spill] sm:$0xff] %v7491_v55  ;;  %12817 = vst [vmem:[#allocation17_spill] sm:$0xff] %v7493_v56  ;;  %v7499_v58 = vrot.slane %v7495_v57, %v7460_v45  ;;  %v916_v0 = vcombine.high %v7491_v55, %v12777_v62 }
 0x168   : > { %771 = vbcast.lane.b32.xlu1 %v7419_v19, 264  ;;  %767 = vbcast.lane.b32.xlu0 %v7419_v19, 256 }
 0x169   : > { %v7505_v59 = vrot.slane %v7499_v58, %v7469_v49 }
 0x16a   : > { %v7507_v60 = vpop.permute.xlu1 %463  ;;  %v7509_v61 = vpop.permute.xlu0 %459 }
 0x16b   : > { %12818 = vst [vmem:[#allocation18_spill] sm:$0xff] %v7505_v59  ;;  %12819 = vst [vmem:[#allocation19_spill] sm:$0xff] %v7507_v60  ;;  %v7517_v1 = vrot.slane %v7509_v61, %v7460_v45  ;;  %v1014_v5 = vcombine.high %v7505_v59, %v12777_v62 }
 0x16c   : > { %3941 = vrot.lane.b32.xlu0 %v818_v63, %s7070_s13  ;;  %3943 = vrot.lane.b32.xlu1 %v916_v0, %s7070_s13 }
 0x16d   : > { %v7523_v2 = vrot.slane %v7517_v1, %v7469_v49 }
 0x16e   : > { %v7525_v3 = vpop.permute.xlu1 %474  ;;  %v7527_v4 = vpop.permute.xlu0 %470 }
 0x16f   : > { %12820 = vst [vmem:[#allocation20_spill] sm:$0xff] %v7523_v2  ;;  %12821 = vst [vmem:[#allocation21_spill] sm:$0xff] %v7525_v3  ;;  %v7533_v6 = vrot.slane %v7527_v4, %v7460_v45  ;;  %v1112_v7 = vcombine.high %v7523_v2, %v12777_v62 }
 0x170   : > { %3945 = vrot.lane.b32.xlu0 %v1014_v5, %s7070_s13 }
 0x171   : > { %v7540_v8 = vrot.slane %v7533_v6, %v7469_v49  ;;  %3947 = vrot.lane.b32.xlu1 %v1112_v7, %s7070_s13 }
 0x172   : > { %v7543_v9 = vpop.permute.xlu0 %481  ;;  %v7545_v10 = vpop.permute.xlu1 %485 }
 0x173   : > { %12822 = vst [vmem:[#allocation22_spill] sm:$0xff] %v7540_v8  ;;  %12823 = vst [vmem:[#allocation23_spill] sm:$0xff] %v7545_v10  ;;  %v7549_v13 = vrot.slane %v7543_v9, %v7460_v45  ;;  %v1210_v15 = vcombine.high %v7540_v8, %v12777_v62 }
 0x175   : > { %v7555_v17 = vrot.slane %v7549_v13, %v7469_v49  ;;  %3949 = vrot.lane.b32.xlu0 %v1210_v15, %s7070_s13 }
 0x176   : > { %v7558_v18 = vpop.permute.xlu0 %492  ;;  %v7566_v21 = vpop.permute.xlu1 %496 }
 0x177   : > { %12824 = vst [vmem:[#allocation24_spill] sm:$0xff] %v7555_v17  ;;  %v7562_v19 = vrot.slane %v7558_v18, %v7460_v45  ;;  %v1308_v20 = vcombine.high %v7555_v17, %v12777_v62  ;;  %12825 = vst [vmem:[#allocation25_spill] sm:$0xff] %v7566_v21 }
 0x179   : > { %v7570_v22 = vrot.slane %v7562_v19, %v7469_v49  ;;  %3951 = vrot.lane.b32.xlu1 %v1308_v20, %s7070_s13 }
 0x17a   : > { %v7573_v23 = vpop.permute.xlu0 %503  ;;  %v7588_v29 = vpop.permute.xlu1 %507 }
 0x17b   : > { %12826 = vst [vmem:[#allocation26_spill] sm:$0xff] %v7570_v22  ;;  %v7577_v25 = vrot.slane %v7573_v23, %v7460_v45  ;;  %v1406_v26 = vcombine.high %v7570_v22, %v12777_v62  ;;  %12828 = vst [vmem:[#allocation28_spill] sm:$0xff] %v7588_v29 }
 0x17d   : > { %v7583_v27 = vrot.slane %v7577_v25, %v7469_v49  ;;  %3953 = vrot.lane.b32.xlu0 %v1406_v26, %s7070_s13 }
 0x17e   : > { %v7586_v28 = vpop.permute.xlu0 %514  ;;  %v7609_v24 = vpop.permute.xlu1 %518 }
 0x17f   : > { %12827 = vst [vmem:[#allocation27_spill] sm:$0xff] %v7583_v27  ;;  %v7592_v30 = vrot.slane %v7586_v28, %v7460_v45  ;;  %v1504_v32 = vcombine.high %v7583_v27, %v12777_v62  ;;  %12830 = vst [vmem:[#allocation30_spill] sm:$0xff] %v7609_v24 }
 0x181   : > { %v7598_v11 = vrot.slane %v7592_v30, %v7469_v49  ;;  %3955 = vrot.lane.b32.xlu1 %v1504_v32, %s7070_s13 }
 0x182   : > { %v7601_v12 = vpop.permute.xlu0 %525  ;;  %v7631_v38 = vpop.permute.xlu1 %529 }
 0x183   : > { %12829 = vst [vmem:[#allocation29_spill] sm:$0xff] %v7598_v11  ;;  %v7605_v14 = vrot.slane %v7601_v12, %v7460_v45  ;;  %v1602_v16 = vcombine.high %v7598_v11, %v12777_v62  ;;  %12833 = vst [vmem:[#allocation33_spill] sm:$0xff] %v7631_v38 }
 0x185   : > { %v7613_v31 = vrot.slane %v7605_v14, %v7469_v49  ;;  %3957 = vrot.lane.b32.xlu0 %v1602_v16, %s7070_s13 }
 0x186   : > { %v7616_v33 = vpop.permute.xlu0 %536  ;;  %v7652_v63 = vpop.permute.xlu1 %540 }
 0x187   : > { %12831 = vst [vmem:[#allocation31_spill] sm:$0xff] %v7613_v31  ;;  %v7620_v34 = vrot.slane %v7616_v33, %v7460_v45  ;;  %v1700_v35 = vcombine.high %v7613_v31, %v12777_v62  ;;  %12835 = vst [vmem:[#allocation35_spill] sm:$0xff] %v7652_v63 }
 0x189   : > { %v7626_v36 = vrot.slane %v7620_v34, %v7469_v49  ;;  %3959 = vrot.lane.b32.xlu1 %v1700_v35, %s7070_s13 }
 0x18a   : > { %v7629_v37 = vpop.permute.xlu0 %547  ;;  %v7674_v32 = vpop.permute.xlu1 %551 }
 0x18b   : > { %12832 = vst [vmem:[#allocation32_spill] sm:$0xff] %v7626_v36  ;;  %v7635_v39 = vrot.slane %v7629_v37, %v7460_v45  ;;  %v1798_v41 = vcombine.high %v7626_v36, %v12777_v62  ;;  %12838 = vst [vmem:[#allocation38_spill] sm:$0xff] %v7674_v32 }
 0x18d   : > { %v7641_v42 = vrot.slane %v7635_v39, %v7469_v49  ;;  %3961 = vrot.lane.b32.xlu0 %v1798_v41, %s7070_s13 }
 0x18e   : > { %v7644_v43 = vpop.permute.xlu0 %558 }
 0x18f   : > { %12834 = vst [vmem:[#allocation34_spill] sm:$0xff] %v7641_v42  ;;  %v7648_v44 = vrot.slane %v7644_v43, %v7460_v45  ;;  %v1896_v46 = vcombine.high %v7641_v42, %v12777_v62 }
 0x191   : > { %v7656_v0 = vrot.slane %v7648_v44, %v7469_v49  ;;  %3963 = vrot.lane.b32.xlu1 %v1896_v46, %s7070_s13 }
 0x192   : > { %v7659_v5 = vpop.permute.xlu0 %569 }
 0x193   : > { %12836 = vst [vmem:[#allocation36_spill] sm:$0xff] %v7656_v0  ;;  %v7663_v7 = vrot.slane %v7659_v5, %v7460_v45  ;;  %v1994_v15 = vcombine.high %v7656_v0, %v12777_v62  ;;  %v7695_v0 = vpop.permute.xlu1 %562 }
 0x194   : > { %12840 = vst [vmem:[#allocation40_spill] sm:$0xff] %v7695_v0 }
 0x195   : > { %v7669_v20 = vrot.slane %v7663_v7, %v7469_v49  ;;  %3965 = vrot.lane.b32.xlu0 %v1994_v15, %s7070_s13 }
 0x196   : > { %v7672_v26 = vpop.permute.xlu0 %580 }
 0x197   : > { %12837 = vst [vmem:[#allocation37_spill] sm:$0xff] %v7669_v20  ;;  %v7678_v16 = vrot.slane %v7672_v26, %v7460_v45  ;;  %v2092_v35 = vcombine.high %v7669_v20, %v12777_v62  ;;  %v7717_v11 = vpop.permute.xlu1 %573 }
 0x198   : > { %12843 = vst [vmem:[#allocation43_spill] sm:$0xff] %v7717_v11 }
 0x199   : > { %v7684_v41 = vrot.slane %v7678_v16, %v7469_v49  ;;  %3967 = vrot.lane.b32.xlu1 %v2092_v35, %s7070_s13 }
 0x19a   : > { %v7687_v46 = vpop.permute.xlu0 %591 }
 0x19b   : > { %12839 = vst [vmem:[#allocation39_spill] sm:$0xff] %v7684_v41  ;;  %v7691_v15 = vrot.slane %v7687_v46, %v7460_v45  ;;  %v2190_v50 = vcombine.high %v7684_v41, %v12777_v62  ;;  %v7738_v8 = vpop.permute.xlu1 %584 }
 0x19c   : > { %12845 = vst [vmem:[#allocation45_spill] sm:$0xff] %v7738_v8 }
 0x19d   : > { %v7699_v20 = vrot.slane %v7691_v15, %v7469_v49  ;;  %3969 = vrot.lane.b32.xlu0 %v2190_v50, %s7070_s13 }
 0x19e   : > { %v7702_v42 = vpop.permute.xlu0 %602 }
 0x19f   : > { %12841 = vst [vmem:[#allocation41_spill] sm:$0xff] %v7699_v20  ;;  %v7706_v35 = vrot.slane %v7702_v42, %v7460_v45  ;;  %v2288_v36 = vcombine.high %v7699_v20, %v12777_v62  ;;  %v7760_v55 = vpop.permute.xlu1 %595 }
 0x1a0   : > { %12848 = vst [vmem:[#allocation48_spill] sm:$0xff] %v7760_v55 }
 0x1a1   : > { %v7712_v41 = vrot.slane %v7706_v35, %v7469_v49  ;;  %3971 = vrot.lane.b32.xlu1 %v2288_v36, %s7070_s13 }
 0x1a2   : > { %v7715_v31 = vpop.permute.xlu0 %613 }
 0x1a3   : > { %12842 = vst [vmem:[#allocation42_spill] sm:$0xff] %v7712_v41  ;;  %v7721_v50 = vrot.slane %v7715_v31, %v7460_v45  ;;  %v2386_v27 = vcombine.high %v7712_v41, %v12777_v62  ;;  %v7781_v0 = vpop.permute.xlu1 %606 }
 0x1a4   : > { %12850 = vst [vmem:[#allocation50_spill] sm:$0xff] %v7781_v0 }
 0x1a5   : > { %v7727_v20 = vrot.slane %v7721_v50, %v7469_v49  ;;  %3973 = vrot.lane.b32.xlu0 %v2386_v27, %s7070_s13 }
 0x1a6   : > { %v7730_v22 = vpop.permute.xlu0 %624 }
 0x1a7   : > { %12844 = vst [vmem:[#allocation44_spill] sm:$0xff] %v7727_v20  ;;  %v7734_v36 = vrot.slane %v7730_v22, %v7460_v45  ;;  %v2484_v17 = vcombine.high %v7727_v20, %v12777_v62  ;;  %v7803_v38 = vpop.permute.xlu1 %617 }
 0x1a8   : > { %12855 = vst [vmem:[#allocation55_spill] sm:$0xff] %v7803_v38 }
 0x1a9   : > { %v7742_v41 = vrot.slane %v7734_v36, %v7469_v49  ;;  %3975 = vrot.lane.b32.xlu1 %v2484_v17, %s7070_s13 }
 0x1aa   : > { %v7745_v2 = vpop.permute.xlu0 %635 }
 0x1ab   : > { %12846 = vst [vmem:[#allocation46_spill] sm:$0xff] %v7742_v41  ;;  %v7749_v27 = vrot.slane %v7745_v2, %v7460_v45  ;;  %v2582_v59 = vcombine.high %v7742_v41, %v12777_v62  ;;  %v7824_v21 = vpop.permute.xlu1 %628 }
 0x1ac   : > { %12858 = vst [vmem:[#allocation58_spill] sm:$0xff] %v7824_v21 }
 0x1ad   : > { %v7755_v20 = vrot.slane %v7749_v27, %v7469_v49  ;;  %3977 = vrot.lane.b32.xlu0 %v2582_v59, %s7070_s13 }
 0x1ae   : > { %v7758_v40 = vpop.permute.xlu0 %646 }
 0x1af   : > { %12847 = vst [vmem:[#allocation47_spill] sm:$0xff] %v7755_v20  ;;  %v7764_v17 = vrot.slane %v7758_v40, %v7460_v45  ;;  %v2680_v8 = vcombine.high %v7755_v20, %v12777_v62  ;;  %v7846_v60 = vpop.permute.xlu1 %639 }
 0x1b0   : > { %12863 = vst [vmem:[#allocation63_spill] sm:$0xff] %v7846_v60 }
 0x1b1   : > { %v7770_v41 = vrot.slane %v7764_v17, %v7469_v49  ;;  %3979 = vrot.lane.b32.xlu1 %v2680_v8, %s7070_s13 }
 0x1b2   : > { %v7773_v11 = vpop.permute.xlu0 %657 }
 0x1b3   : > { %12849 = vst [vmem:[#allocation49_spill] sm:$0xff] %v7770_v41  ;;  %v7777_v59 = vrot.slane %v7773_v11, %v7460_v45  ;;  %v2778_v55 = vcombine.high %v7770_v41, %v12777_v62  ;;  %v7867_v47 = vpop.permute.xlu1 %650 }
 0x1b4   : > { %12866 = vst [vmem:[#allocation66_spill] sm:$0xff] %v7867_v47 }
 0x1b5   : > { %v7785_v20 = vrot.slane %v7777_v59, %v7469_v49  ;;  %3981 = vrot.lane.b32.xlu0 %v2778_v55, %s7070_s13 }
 0x1b6   : > { %v7788_v32 = vpop.permute.xlu0 %668 }
 0x1b7   : > { %12851 = vst [vmem:[#allocation51_spill] sm:$0xff] %v7785_v20  ;;  %12852 = vst [vmem:[#allocation52_spill] sm:$0xff] %v7788_v32  ;;  %v7792_v8 = vrot.slane %v7788_v32, %v7460_v45  ;;  %v2876_v63 = vcombine.high %v7785_v20, %v12777_v62  ;;  %v984_v32 = vcombine.high %v7499_v58, %v12777_v62 }
 0x1b8   : > { %v1180_v58 = vcombine.high %v7533_v6, %v12777_v62  ;;  %v1376_v6 = vcombine.high %v7562_v19, %v12777_v62 }
 0x1b9   : > { %v7798_v41 = vrot.slane %v7792_v8, %v7469_v49  ;;  %3983 = vrot.lane.b32.xlu1 %v2876_v63, %s7070_s13 }
 0x1ba   : > { %v7801_v0 = vpop.permute.xlu0 %679  ;;  %v7983_v19 = vrot.slane %v1376_v6, %v7469_v49 }
 0x1bb   : > { %12853 = vst [vmem:[#allocation53_spill] sm:$0xff] %v7798_v41  ;;  %12854 = vst [vmem:[#allocation54_spill] sm:$0xff] %v7801_v0  ;;  %v7807_v55 = vrot.slane %v7801_v0, %v7460_v45  ;;  %v2974_v24 = vcombine.high %v7798_v41, %v12777_v62 }
 0x1bd   : > { %v7813_v20 = vrot.slane %v7807_v55, %v7469_v49  ;;  %3985 = vrot.lane.b32.xlu0 %v2974_v24, %s7070_s13 }
 0x1be   : > { %v7816_v29 = vpop.permute.xlu0 %690 }
 0x1bf   : > { %12856 = vst [vmem:[#allocation56_spill] sm:$0xff] %v7813_v20  ;;  %12857 = vst [vmem:[#allocation57_spill] sm:$0xff] %v7816_v29  ;;  %v7820_v63 = vrot.slane %v7816_v29, %v7460_v45  ;;  %v3072_v38 = vcombine.high %v7813_v20, %v12777_v62 }
 0x1c1   : > { %v7828_v41 = vrot.slane %v7820_v63, %v7469_v49  ;;  %3987 = vrot.lane.b32.xlu1 %v3072_v38, %s7070_s13 }
 0x1c2   : > { %v7831_v10 = vpop.permute.xlu0 %701 }
 0x1c3   : > { %12859 = vst [vmem:[#allocation59_spill] sm:$0xff] %v7828_v41  ;;  %12860 = vst [vmem:[#allocation60_spill] sm:$0xff] %v7831_v10  ;;  %v7835_v24 = vrot.slane %v7831_v10, %v7460_v45  ;;  %v3170_v3 = vcombine.high %v7828_v41, %v12777_v62  ;;  %v7889_v10 = vpop.permute.xlu1 %661 }
 0x1c4   : > { %12871 = vst [vmem:[#allocation71_spill] sm:$0xff] %v7889_v10 }
 0x1c5   : > { %v7841_v20 = vrot.slane %v7835_v24, %v7469_v49  ;;  %3989 = vrot.lane.b32.xlu0 %v3170_v3, %s7070_s13 }
 0x1c6   : > { %v7844_v21 = vpop.permute.xlu0 %712 }
 0x1c7   : > { %12861 = vst [vmem:[#allocation61_spill] sm:$0xff] %v7841_v20  ;;  %12862 = vst [vmem:[#allocation62_spill] sm:$0xff] %v7844_v21  ;;  %v7850_v38 = vrot.slane %v7844_v21, %v7460_v45  ;;  %v3268_v56 = vcombine.high %v7841_v20, %v12777_v62 }
 0x1c9   : > { %v7856_v41 = vrot.slane %v7850_v38, %v7469_v49  ;;  %3991 = vrot.lane.b32.xlu1 %v3268_v56, %s7070_s13 }
 0x1ca   : > { %v7859_v52 = vpop.permute.xlu0 %723 }
 0x1cb   : > { %12864 = vst [vmem:[#allocation64_spill] sm:$0xff] %v7856_v41  ;;  %12865 = vst [vmem:[#allocation65_spill] sm:$0xff] %v7859_v52  ;;  %v7863_v3 = vrot.slane %v7859_v52, %v7460_v45  ;;  %v3366_v60 = vcombine.high %v7856_v41, %v12777_v62 }
 0x1cd   : > { %v7871_v20 = vrot.slane %v7863_v3, %v7469_v49  ;;  %3993 = vrot.lane.b32.xlu0 %v3366_v60, %s7070_s13 }
 0x1ce   : > { %v7874_v21 = vpop.permute.xlu0 %734 }
 0x1cf   : > { %12867 = vst [vmem:[#allocation67_spill] sm:$0xff] %v7871_v20  ;;  %12868 = vst [vmem:[#allocation68_spill] sm:$0xff] %v7874_v21  ;;  %v7878_v56 = vrot.slane %v7874_v21, %v7460_v45  ;;  %v3464_v52 = vcombine.high %v7871_v20, %v12777_v62 }
 0x1d1   : > { %v7884_v41 = vrot.slane %v7878_v56, %v7469_v49  ;;  %3995 = vrot.lane.b32.xlu1 %v3464_v52, %s7070_s13 }
 0x1d2   : > { %v7887_v47 = vpop.permute.xlu0 %745 }
 0x1d3   : > { %12869 = vst [vmem:[#allocation69_spill] sm:$0xff] %v7884_v41  ;;  %12870 = vst [vmem:[#allocation70_spill] sm:$0xff] %v7887_v47  ;;  %v7893_v60 = vrot.slane %v7887_v47, %v7460_v45  ;;  %v3562_v21 = vcombine.high %v7884_v41, %v12777_v62  ;;  %v7910_v47 = vpop.permute.xlu1 %672 }
 0x1d4   : > { %12874 = vst [vmem:[#allocation74_spill] sm:$0xff] %v7910_v47 }
 0x1d5   : > { %v7899_v20 = vrot.slane %v7893_v60, %v7469_v49  ;;  %3997 = vrot.lane.b32.xlu0 %v3562_v21, %s7070_s13  ;;  %v788_v21 = vcombine.high %v7473_v51, %v12777_v62 }
 0x1d6   : > { %v7902_v29 = vpop.permute.xlu0 %756 }
 0x1d7   : > { %12872 = vst [vmem:[#allocation72_spill] sm:$0xff] %v7899_v20  ;;  %12873 = vst [vmem:[#allocation73_spill] sm:$0xff] %v7902_v29  ;;  %v7906_v52 = vrot.slane %v7902_v29, %v7460_v45  ;;  %v3660_v10 = vcombine.high %v7899_v20, %v12777_v62  ;;  %v7936_v51 = vpop.permute.xlu1 %683 }
 0x1d8   : > { %12878 = vst [vmem:[#allocation78_spill] sm:$0xff] %v7936_v51 }
 0x1d9   : > { %v7914_v41 = vrot.slane %v7906_v52, %v7469_v49  ;;  %3999 = vrot.lane.b32.xlu1 %v3660_v10, %s7070_s13  ;;  %v886_v10 = vcombine.high %v7481_v54, %v12777_v62  ;;  %v1082_v54 = vcombine.high %v7517_v1, %v12777_v62  ;;  %v1278_v1 = vcombine.high %v7549_v13, %v12777_v62 }
 0x1da   : > { %v7917_v0 = vpop.permute.xlu0 %767  ;;  %v1572_v13 = vcombine.high %v7592_v30, %v12777_v62  ;;  %v1768_v30 = vcombine.high %v7620_v34, %v12777_v62  ;;  %v1964_v34 = vcombine.high %v7648_v44, %v12777_v62 }
 0x1db   : > { %12875 = vst [vmem:[#allocation75_spill] sm:$0xff] %v7914_v41  ;;  %12876 = vst [vmem:[#allocation76_spill] sm:$0xff] %v7917_v0  ;;  %v7923_v29 = vrot.slane %v7917_v0, %v7460_v45  ;;  %v3758_v20 = vcombine.high %v7914_v41, %v12777_v62  ;;  %v7939_v0 = vrot.slane %v788_v21, %v7469_v49  ;;  %v7956_v51 = vpop.permute.xlu1 %694 }
 0x1dc   : > { %v7954_v21 = vrot.slane %v886_v10, %v7469_v49  ;;  %12879 = vst [vmem:[#allocation79_spill] sm:$0xff] %v7956_v51  ;;  %v1474_v10 = vcombine.high %v7577_v25, %v12777_v62  ;;  %v1670_v25 = vcombine.high %v7605_v14, %v12777_v62  ;;  %v1866_v14 = vcombine.high %v7635_v39, %v12777_v62 }
 0x1dd   : > { %v7929_v47 = vrot.slane %v7923_v29, %v7469_v49  ;;  %4001 = vrot.lane.b32.xlu0 %v3758_v20, %s7070_s13  ;;  %v7951_v20 = vrot.slane %v984_v32, %v7469_v49  ;;  %v7967_v32 = vrot.slane %v1180_v58, %v7469_v49  ;;  %v7997_v58 = vrot.slane %v1572_v13, %v7469_v49 }
 0x1de   : > { %v8000_v6 = vrot.slane %v1474_v10, %v7469_v49  ;;  %v8013_v13 = vrot.slane %v1768_v30, %v7469_v49  ;;  %v8016_v10 = vrot.slane %v1670_v25, %v7469_v49  ;;  %v2160_v39 = vcombine.high %v7678_v16, %v12777_v62 }
 0x1df   : > { %12877 = vst [vmem:[#allocation77_spill] sm:$0xff] %v7929_v47  ;;  %v3856_v41 = vcombine.high %v7929_v47, %v12777_v62  ;;  %v7980_v47 = vpop.permute.xlu1 %705  ;;  %v8029_v44 = vrot.slane %v1964_v34, %v7469_v49  ;;  %v8032_v25 = vrot.slane %v1866_v14, %v7469_v49  ;;  %v2356_v16 = vcombine.high %v7706_v35, %v12777_v62 }
 0x1e0   : > { %12880 = vst [vmem:[#allocation80_spill] sm:$0xff] %v7980_v47  ;;  %v8043_v30 = vrot.slane %v2160_v39, %v7469_v49  ;;  %v2552_v35 = vcombine.high %v7734_v36, %v12777_v62 }
 0x1e1   : > { %4069 = vrot.lane.b32.xlu0 %v7939_v0, %s7071_s27  ;;  %4003 = vrot.lane.b32.xlu1 %v3856_v41, %s7070_s13  ;;  %v7970_v41 = vrot.slane %v1082_v54, %v7469_v49  ;;  %v7986_v54 = vrot.slane %v1278_v1, %v7469_v49  ;;  %v8059_v39 = vrot.slane %v2356_v16, %v7469_v49  ;;  %s7084_s13 = smov 30  }
 0x1e2   : > { %v8075_v36 = vrot.slane %v2552_v35, %v7469_v49 }
 0x1e3   : > { %v8002_v1 = vpop.permute.xlu1 %716 }
 0x1e4   : > { %12881 = vst [vmem:[#allocation81_spill] sm:$0xff] %v8002_v1  ;;  %v2062_v1 = vcombine.high %v7663_v7, %v12777_v62  ;;  %v2258_v7 = vcombine.high %v7691_v15, %v12777_v62  ;;  %v2454_v15 = vcombine.high %v7721_v50, %v12777_v62  ;;  %v2748_v50 = vcombine.high %v7764_v17, %v12777_v62 }
 0x1e5   : > { %4073 = vrot.lane.b32.xlu0 %v7951_v20, %s7071_s27  ;;  %4071 = vrot.lane.b32.xlu1 %v7954_v21, %s7071_s27  ;;  %v2944_v17 = vcombine.high %v7792_v8, %v12777_v62  ;;  %v3140_v8 = vcombine.high %v7820_v63, %v12777_v62  ;;  %v8120_v63 = vpop.permute.xlu0 %3941 }
 0x1e6   : > { %v8046_v34 = vrot.slane %v2062_v1, %v7469_v49  ;;  %v8062_v1 = vrot.slane %v2258_v7, %v7469_v49  ;;  %v8078_v7 = vrot.slane %v2454_v15, %v7469_v49  ;;  %v8089_v16 = vrot.slane %v2748_v50, %v7469_v49  ;;  %12887 = vst [vmem:[#allocation87_spill] sm:$0xff] %v8120_v63 }
 0x1e7   : > { %v8026_v47 = vpop.permute.xlu1 %727  ;;  %v8105_v50 = vrot.slane %v2944_v17, %v7469_v49  ;;  %v8123_v17 = vrot.slane %v3140_v8, %v7469_v49 }
 0x1e8   : > { %12882 = vst [vmem:[#allocation82_spill] sm:$0xff] %v8026_v47 }
 0x1e9   : > { %4077 = vrot.lane.b32.xlu0 %v7967_v32, %s7071_s27  ;;  %4075 = vrot.lane.b32.xlu1 %v7970_v41, %s7071_s27 }
 0x1eb   : > { %v8048_v14 = vpop.permute.xlu1 %738 }
 0x1ec   : > { %12883 = vst [vmem:[#allocation83_spill] sm:$0xff] %v8048_v14  ;;  %v2650_v14 = vcombine.high %v7749_v27, %v12777_v62  ;;  %v2846_v27 = vcombine.high %v7777_v59, %v12777_v62  ;;  %v3042_v59 = vcombine.high %v7807_v55, %v12777_v62  ;;  %v3336_v55 = vcombine.high %v7850_v38, %v12777_v62 }
 0x1ed   : > { %4081 = vrot.lane.b32.xlu0 %v7983_v19, %s7071_s27  ;;  %4079 = vrot.lane.b32.xlu1 %v7986_v54, %s7071_s27  ;;  %v3532_v38 = vcombine.high %v7878_v56, %v12777_v62  ;;  %v3728_v56 = vcombine.high %v7906_v52, %v12777_v62 }
 0x1ee   : > { %v8092_v35 = vrot.slane %v2650_v14, %v7469_v49  ;;  %v8108_v14 = vrot.slane %v2846_v27, %v7469_v49  ;;  %v8126_v27 = vrot.slane %v3042_v59, %v7469_v49  ;;  %v8137_v63 = vrot.slane %v3336_v55, %v7469_v49 }
 0x1ef   : > { %v8072_v47 = vpop.permute.xlu1 %749  ;;  %v8155_v55 = vrot.slane %v3532_v38, %v7469_v49  ;;  %v8171_v52 = vrot.slane %v3728_v56, %v7469_v49 }
 0x1f0   : > { %12884 = vst [vmem:[#allocation84_spill] sm:$0xff] %v8072_v47 }
 0x1f1   : > { %4085 = vrot.lane.b32.xlu0 %v7997_v58, %s7071_s27  ;;  %4083 = vrot.lane.b32.xlu1 %v8000_v6, %s7071_s27 }
 0x1f3   : > { %v8094_v15 = vpop.permute.xlu1 %760 }
 0x1f4   : > { %12885 = vst [vmem:[#allocation85_spill] sm:$0xff] %v8094_v15  ;;  %v3238_v15 = vcombine.high %v7835_v24, %v12777_v62  ;;  %v3434_v24 = vcombine.high %v7863_v3, %v12777_v62  ;;  %v3630_v3 = vcombine.high %v7893_v60, %v12777_v62 }
 0x1f5   : > { %4089 = vrot.lane.b32.xlu0 %v8013_v13, %s7071_s27  ;;  %4087 = vrot.lane.b32.xlu1 %v8016_v10, %s7071_s27 }
 0x1f6   : > { %v8140_v8 = vrot.slane %v3238_v15, %v7469_v49  ;;  %v8158_v15 = vrot.slane %v3434_v24, %v7469_v49  ;;  %v8174_v38 = vrot.slane %v3630_v3, %v7469_v49 }
 0x1f7   : > { %v8118_v47 = vpop.permute.xlu1 %771 }
 0x1f8   : > { %12886 = vst [vmem:[#allocation86_spill] sm:$0xff] %v8118_v47  ;;  %v8144_v47 = vpop.permute.xlu0 %3945 }
 0x1f9   : > { %4093 = vrot.lane.b32.xlu0 %v8029_v44, %s7071_s27  ;;  %4091 = vrot.lane.b32.xlu1 %v8032_v25, %s7071_s27  ;;  %12889 = vst [vmem:[#allocation89_spill] sm:$0xff] %v8144_v47  ;;  %v3826_v47 = vcombine.high %v7923_v29, %v12777_v62  ;;  %v819_v29 = vcombine.high %v7939_v0, %v12777_v62 }
 0x1fb   : > { %v8142_v59 = vpop.permute.xlu1 %3943 }
 0x1fc   : > { %12888 = vst [vmem:[#allocation88_spill] sm:$0xff] %v8142_v59  ;;  %v8168_v60 = vpop.permute.xlu0 %3949 }
 0x1fd   : > { %4097 = vrot.lane.b32.xlu0 %v8043_v30, %s7071_s27  ;;  %4095 = vrot.lane.b32.xlu1 %v8046_v34, %s7071_s27  ;;  %12891 = vst [vmem:[#allocation91_spill] sm:$0xff] %v8168_v60  ;;  %v8187_v60 = vrot.slane %v3826_v47, %v7469_v49 }
 0x1ff   : > { %v8166_v59 = vpop.permute.xlu1 %3947 }
 0x200   : > { %12890 = vst [vmem:[#allocation90_spill] sm:$0xff] %v8166_v59  ;;  %v8182_v51 = vpop.permute.xlu0 %3953 }
 0x201   : > { %4101 = vrot.lane.b32.xlu0 %v8059_v39, %s7071_s27  ;;  %4099 = vrot.lane.b32.xlu1 %v8062_v1, %s7071_s27  ;;  %12893 = vst [vmem:[#allocation93_spill] sm:$0xff] %v8182_v51  ;;  %v917_v51 = vcombine.high %v7954_v21, %v12777_v62 }
 0x203   : > { %v8180_v24 = vpop.permute.xlu1 %3951 }
 0x204   : > { %12892 = vst [vmem:[#allocation92_spill] sm:$0xff] %v8180_v24  ;;  %v8194_v56 = vpop.permute.xlu0 %3957  ;;  %v1015_v24 = vcombine.high %v7951_v20, %v12777_v62 }
 0x205   : > { %4105 = vrot.lane.b32.xlu0 %v8075_v36, %s7071_s27  ;;  %4103 = vrot.lane.b32.xlu1 %v8078_v7, %s7071_s27  ;;  %12895 = vst [vmem:[#allocation95_spill] sm:$0xff] %v8194_v56  ;;  %v1113_v56 = vcombine.high %v7970_v41, %v12777_v62 }
 0x207   : > { %v8192_v3 = vpop.permute.xlu1 %3955 }
 0x208   : > { %12894 = vst [vmem:[#allocation94_spill] sm:$0xff] %v8192_v3  ;;  %v8204_v0 = vpop.permute.xlu0 %3961 }
 0x209   : > { %4109 = vrot.lane.b32.xlu0 %v8089_v16, %s7071_s27  ;;  %4107 = vrot.lane.b32.xlu1 %v8092_v35, %s7071_s27  ;;  %12897 = vst [vmem:[#allocation97_spill] sm:$0xff] %v8204_v0 }
 0x20b   : > { %v8202_v47 = vpop.permute.xlu1 %3959 }
 0x20c   : > { %12896 = vst [vmem:[#allocation96_spill] sm:$0xff] %v8202_v47  ;;  %v8214_v21 = vpop.permute.xlu0 %3965 }
 0x20d   : > { %4113 = vrot.lane.b32.xlu0 %v8105_v50, %s7071_s27  ;;  %4111 = vrot.lane.b32.xlu1 %v8108_v14, %s7071_s27  ;;  %12899 = vst [vmem:[#allocation99_spill] sm:$0xff] %v8214_v21 }
 0x20f   : > { %v8212_v20 = vpop.permute.xlu1 %3963 }
 0x210   : > { %12898 = vst [vmem:[#allocation98_spill] sm:$0xff] %v8212_v20  ;;  %v8224_v41 = vpop.permute.xlu0 %3969 }
 0x211   : > { %4117 = vrot.lane.b32.xlu0 %v8123_v17, %s7071_s27  ;;  %4115 = vrot.lane.b32.xlu1 %v8126_v27, %s7071_s27  ;;  %12901 = vst [vmem:[#allocation101_spill] sm:$0xff] %v8224_v41 }
 0x215   : > { %4121 = vrot.lane.b32.xlu0 %v8137_v63, %s7071_s27  ;;  %4119 = vrot.lane.b32.xlu1 %v8140_v8, %s7071_s27 }
 0x219   : > { %4125 = vrot.lane.b32.xlu0 %v8155_v55, %s7071_s27  ;;  %4123 = vrot.lane.b32.xlu1 %v8158_v15, %s7071_s27 }
 0x21d   : > { %4129 = vrot.lane.b32.xlu0 %v8171_v52, %s7071_s27  ;;  %4127 = vrot.lane.b32.xlu1 %v8174_v38, %s7071_s27 }
 0x221   : > { %4197 = vrot.lane.b32.xlu0 %v819_v29, %s7072_s21  ;;  %4131 = vrot.lane.b32.xlu1 %v8187_v60, %s7071_s27  ;;  %v1211_v29 = vcombine.high %v7967_v32, %v12777_v62  ;;  %v8222_v32 = vpop.permute.xlu1 %3967  ;;  %s6796_s27 = sshll.u32 %s7280_s14, 7 }
 0x222   : > { %12900 = vst [vmem:[#allocation100_spill] sm:$0xff] %v8222_v32 }
 0x225   : > { %4201 = vrot.lane.b32.xlu0 %v1015_v24, %s7072_s21  ;;  %4199 = vrot.lane.b32.xlu1 %v917_v51, %s7072_s21  ;;  %v1407_v51 = vcombine.high %v7983_v19, %v12777_v62  ;;  %v1309_v24 = vcombine.high %v7986_v54, %v12777_v62  ;;  %v8232_v19 = vpop.permute.xlu1 %3971  ;;  %v8234_v54 = vpop.permute.xlu0 %3973 }
 0x226   : > { %12902 = vst [vmem:[#allocation102_spill] sm:$0xff] %v8232_v19  ;;  %12903 = vst [vmem:[#allocation103_spill] sm:$0xff] %v8234_v54 }
 0x229   : > { %4205 = vrot.lane.b32.xlu0 %v1211_v29, %s7072_s21  ;;  %4203 = vrot.lane.b32.xlu1 %v1113_v56, %s7072_s21  ;;  %v1603_v56 = vcombine.high %v7997_v58, %v12777_v62  ;;  %v1505_v29 = vcombine.high %v8000_v6, %v12777_v62  ;;  %v8242_v58 = vpop.permute.xlu1 %3975  ;;  %v8244_v6 = vpop.permute.xlu0 %3977 }
 0x22a   : > { %12904 = vst [vmem:[#allocation104_spill] sm:$0xff] %v8242_v58  ;;  %12905 = vst [vmem:[#allocation105_spill] sm:$0xff] %v8244_v6 }
 0x22d   : > { %4209 = vrot.lane.b32.xlu0 %v1407_v51, %s7072_s21  ;;  %4207 = vrot.lane.b32.xlu1 %v1309_v24, %s7072_s21  ;;  %v1799_v51 = vcombine.high %v8013_v13, %v12777_v62  ;;  %v1701_v24 = vcombine.high %v8016_v10, %v12777_v62  ;;  %v8252_v13 = vpop.permute.xlu1 %3979  ;;  %v8254_v10 = vpop.permute.xlu0 %3981 }
 0x22e   : > { %12906 = vst [vmem:[#allocation106_spill] sm:$0xff] %v8252_v13  ;;  %12907 = vst [vmem:[#allocation107_spill] sm:$0xff] %v8254_v10 }
 0x231   : > { %4213 = vrot.lane.b32.xlu0 %v1603_v56, %s7072_s21  ;;  %4211 = vrot.lane.b32.xlu1 %v1505_v29, %s7072_s21  ;;  %v1995_v56 = vcombine.high %v8029_v44, %v12777_v62  ;;  %v1897_v29 = vcombine.high %v8032_v25, %v12777_v62  ;;  %v8262_v44 = vpop.permute.xlu1 %3983  ;;  %v8264_v25 = vpop.permute.xlu0 %3985 }
 0x232   : > { %12908 = vst [vmem:[#allocation108_spill] sm:$0xff] %v8262_v44  ;;  %12909 = vst [vmem:[#allocation109_spill] sm:$0xff] %v8264_v25 }
 0x235   : > { %4217 = vrot.lane.b32.xlu0 %v1799_v51, %s7072_s21  ;;  %4215 = vrot.lane.b32.xlu1 %v1701_v24, %s7072_s21  ;;  %v2191_v51 = vcombine.high %v8043_v30, %v12777_v62  ;;  %v2093_v24 = vcombine.high %v8046_v34, %v12777_v62  ;;  %v8272_v30 = vpop.permute.xlu1 %3987 }
 0x236   : > { %12910 = vst [vmem:[#allocation110_spill] sm:$0xff] %v8272_v30 }
 0x237   : > { %v8274_v34 = vpop.permute.xlu0 %3989 }
 0x238   : > { %12911 = vst [vmem:[#allocation111_spill] sm:$0xff] %v8274_v34 }
 0x239   : > { %4221 = vrot.lane.b32.xlu0 %v1995_v56, %s7072_s21  ;;  %4219 = vrot.lane.b32.xlu1 %v1897_v29, %s7072_s21  ;;  %v2387_v56 = vcombine.high %v8059_v39, %v12777_v62  ;;  %v2289_v29 = vcombine.high %v8062_v1, %v12777_v62 }
 0x23b   : > { %v8282_v39 = vpop.permute.xlu1 %3991 }
 0x23c   : > { %12912 = vst [vmem:[#allocation112_spill] sm:$0xff] %v8282_v39 }
 0x23d   : > { %4225 = vrot.lane.b32.xlu0 %v2191_v51, %s7072_s21  ;;  %4223 = vrot.lane.b32.xlu1 %v2093_v24, %s7072_s21  ;;  %v2583_v51 = vcombine.high %v8075_v36, %v12777_v62  ;;  %v2485_v24 = vcombine.high %v8078_v7, %v12777_v62 }
 0x23f   : > { %v8284_v1 = vpop.permute.xlu0 %3993 }
 0x240   : > { %12913 = vst [vmem:[#allocation113_spill] sm:$0xff] %v8284_v1 }
 0x241   : > { %4229 = vrot.lane.b32.xlu0 %v2387_v56, %s7072_s21  ;;  %4227 = vrot.lane.b32.xlu1 %v2289_v29, %s7072_s21  ;;  %v2779_v56 = vcombine.high %v8089_v16, %v12777_v62  ;;  %v2681_v29 = vcombine.high %v8092_v35, %v12777_v62 }
 0x243   : > { %v8292_v36 = vpop.permute.xlu1 %3995 }
 0x244   : > { %12914 = vst [vmem:[#allocation114_spill] sm:$0xff] %v8292_v36 }
 0x245   : > { %4233 = vrot.lane.b32.xlu0 %v2583_v51, %s7072_s21  ;;  %4231 = vrot.lane.b32.xlu1 %v2485_v24, %s7072_s21  ;;  %v2975_v51 = vcombine.high %v8105_v50, %v12777_v62  ;;  %v2877_v24 = vcombine.high %v8108_v14, %v12777_v62 }
 0x247   : > { %v8294_v7 = vpop.permute.xlu0 %3997 }
 0x248   : > { %12915 = vst [vmem:[#allocation115_spill] sm:$0xff] %v8294_v7 }
 0x249   : > { %4237 = vrot.lane.b32.xlu0 %v2779_v56, %s7072_s21  ;;  %4235 = vrot.lane.b32.xlu1 %v2681_v29, %s7072_s21  ;;  %v3171_v56 = vcombine.high %v8123_v17, %v12777_v62  ;;  %v3073_v29 = vcombine.high %v8126_v27, %v12777_v62  ;;  %v773_v17 = vcombine.high %v7464_v48, %v12777_v62 }
 0x24a   : > { %v969_v48 = vcombine.high %v7495_v57, %v12777_v62  ;;  %v1067_v57 = vcombine.high %v7509_v61, %v12777_v62 }
 0x24b   : > { %v8302_v16 = vpop.permute.xlu1 %3999 }
 0x24c   : > { %12916 = vst [vmem:[#allocation116_spill] sm:$0xff] %v8302_v16  ;;  %v8375_v61 = vrot.slane %v1067_v57, %v7460_v45 }
 0x24d   : > { %4241 = vrot.lane.b32.xlu0 %v2975_v51, %s7072_s21  ;;  %4239 = vrot.lane.b32.xlu1 %v2877_v24, %s7072_s21  ;;  %v3367_v51 = vcombine.high %v8137_v63, %v12777_v62  ;;  %v3269_v24 = vcombine.high %v8140_v8, %v12777_v62  ;;  %v3465_v63 = vcombine.high %v8158_v15, %v12777_v62 }
 0x24e   : > { %v871_v8 = vcombine.high %v7477_v53, %v12777_v62  ;;  %v3661_v15 = vcombine.high %v8174_v38, %v12777_v62  ;;  %v3857_v38 = vcombine.high %v8187_v60, %v12777_v62  ;;  %v1361_v60 = vcombine.high %v7558_v18, %v12777_v62 }
 0x24f   : > { %v8304_v35 = vpop.permute.xlu0 %4001  ;;  %v1459_v18 = vcombine.high %v7573_v23, %v12777_v62  ;;  %v8416_v16 = vrot.slane %v8375_v61, %v7469_v49 }
 0x250   : > { %12917 = vst [vmem:[#allocation117_spill] sm:$0xff] %v8304_v35  ;;  %v8352_v53 = vrot.slane %v871_v8, %v7460_v45 }
 0x251   : > { %4245 = vrot.lane.b32.xlu0 %v3171_v56, %s7072_s21  ;;  %4243 = vrot.lane.b32.xlu1 %v3073_v29, %s7072_s21  ;;  %v3563_v29 = vcombine.high %v8155_v55, %v12777_v62  ;;  %v3759_v55 = vcombine.high %v8171_v52, %v12777_v62  ;;  %v8427_v23 = vrot.slane %v1459_v18, %v7460_v45 }
 0x253   : > { %v8312_v50 = vpop.permute.xlu1 %4003  ;;  %v8314_v14 = vpop.permute.xlu0 %4069  ;;  %v8468_v30 = vrot.slane %v8427_v23, %v7469_v49 }
 0x254   : > { %12918 = vst [vmem:[#allocation118_spill] sm:$0xff] %v8312_v50  ;;  %12919 = vst [vmem:[#allocation119_spill] sm:$0xff] %v8314_v14 }
 0x255   : > { %4249 = vrot.lane.b32.xlu0 %v3367_v51, %s7072_s21  ;;  %4247 = vrot.lane.b32.xlu1 %v3269_v24, %s7072_s21  ;;  %v8337_v51 = vrot.slane %v773_v17, %v7460_v45  ;;  %v8357_v17 = vrot.slane %v969_v48, %v7460_v45 }
 0x257   : > { %v8324_v27 = vpop.permute.xlu1 %4071  ;;  %v8326_v56 = vpop.permute.xlu0 %4073  ;;  %v8369_v8 = vrot.slane %v8337_v51, %v7469_v49  ;;  %v8394_v57 = vrot.slane %v8357_v17, %v7469_v49 }
 0x258   : > { %12920 = vst [vmem:[#allocation120_spill] sm:$0xff] %v8324_v27  ;;  %12921 = vst [vmem:[#allocation121_spill] sm:$0xff] %v8326_v56 }
 0x259   : > { %4253 = vrot.lane.b32.xlu0 %v3563_v29, %s7072_s21  ;;  %4251 = vrot.lane.b32.xlu1 %v3465_v63, %s7072_s21  ;;  %v1165_v29 = vcombine.high %v7527_v4, %v12777_v62  ;;  %v1263_v4 = vcombine.high %v7543_v9, %v12777_v62 }
 0x25b   : > { %v8341_v24 = vpop.permute.xlu1 %4075  ;;  %v8343_v56 = vpop.permute.xlu0 %4077  ;;  %v8380_v48 = vrot.slane %v1165_v29, %v7460_v45  ;;  %v8401_v9 = vrot.slane %v1263_v4, %v7460_v45  ;;  %v8406_v29 = vrot.slane %v1361_v60, %v7460_v45 }
 0x25c   : > { %12922 = vst [vmem:[#allocation122_spill] sm:$0xff] %v8341_v24  ;;  %12923 = vst [vmem:[#allocation123_spill] sm:$0xff] %v8343_v56 }
 0x25d   : > { %4257 = vrot.lane.b32.xlu0 %v3759_v55, %s7072_s21  ;;  %4255 = vrot.lane.b32.xlu1 %v3661_v15, %s7072_s21  ;;  %v8420_v4 = vrot.slane %v8380_v48, %v7469_v49  ;;  %v8442_v1 = vrot.slane %v8401_v9, %v7469_v49  ;;  %v8446_v18 = vrot.slane %v8406_v29, %v7469_v49 }
 0x25f   : > { %v8361_v52 = vpop.permute.xlu1 %4079  ;;  %v8363_v63 = vpop.permute.xlu0 %4081 }
 0x260   : > { %12924 = vst [vmem:[#allocation124_spill] sm:$0xff] %v8361_v52  ;;  %12925 = vst [vmem:[#allocation125_spill] sm:$0xff] %v8363_v63 }
 0x261   : > { %4259 = vrot.lane.b32.xlu1 %v3857_v38, %s7072_s21  ;;  %4325 = vrot.lane.b32.xlu0 %v8369_v8, %s7073_s12  ;;  %v8390_v38 = vrot.slane %v8352_v53, %v7469_v49  ;;  %s11651_s21 = scalar_lea.vmem [#allocation7], %s6796_s27 }
 0x263   : > { %v8384_v55 = vpop.permute.xlu1 %4083  ;;  %v8386_v15 = vpop.permute.xlu0 %4085 }
 0x264   : > { %12926 = vst [vmem:[#allocation126_spill] sm:$0xff] %v8384_v55  ;;  %12927 = vst [vmem:[#allocation127_spill] sm:$0xff] %v8386_v15  ;;  %v1557_v55 = vcombine.high %v7586_v28, %v12777_v62  ;;  %v1655_v28 = vcombine.high %v7601_v12, %v12777_v62 }
 0x265   : > { %4327 = vrot.lane.b32.xlu1 %v8390_v38, %s7073_s12  ;;  %4329 = vrot.lane.b32.xlu0 %v8394_v57, %s7073_s12 }
 0x266   : > { %v8432_v60 = vrot.slane %v1557_v55, %v7460_v45  ;;  %v8453_v12 = vrot.slane %v1655_v28, %v7460_v45 }
 0x267   : > { %v8410_v63 = vpop.permute.xlu1 %4087  ;;  %v8412_v24 = vpop.permute.xlu0 %4089 }
 0x268   : > { %12928 = vst [vmem:[#allocation128_spill] sm:$0xff] %v8410_v63  ;;  %12929 = vst [vmem:[#allocation129_spill] sm:$0xff] %v8412_v24  ;;  %v1753_v24 = vcombine.high %v7616_v33, %v12777_v62  ;;  %v1851_v33 = vcombine.high %v7629_v37, %v12777_v62  ;;  %v8472_v28 = vrot.slane %v8432_v60, %v7469_v49 }
 0x269   : > { %4331 = vrot.lane.b32.xlu1 %v8416_v16, %s7073_s12  ;;  %4333 = vrot.lane.b32.xlu0 %v8420_v4, %s7073_s12  ;;  %v8494_v10 = vrot.slane %v8453_v12, %v7469_v49 }
 0x26a   : > { %v8458_v55 = vrot.slane %v1753_v24, %v7460_v45  ;;  %v8479_v37 = vrot.slane %v1851_v33, %v7460_v45 }
 0x26b   : > { %v8436_v7 = vpop.permute.xlu1 %4091  ;;  %v8438_v36 = vpop.permute.xlu0 %4093 }
 0x26c   : > { %12930 = vst [vmem:[#allocation130_spill] sm:$0xff] %v8436_v7  ;;  %12931 = vst [vmem:[#allocation131_spill] sm:$0xff] %v8438_v36  ;;  %v1949_v7 = vcombine.high %v7644_v43, %v12777_v62  ;;  %v2047_v43 = vcombine.high %v7659_v5, %v12777_v62  ;;  %v8498_v33 = vrot.slane %v8458_v55, %v7469_v49 }
 0x26d   : > { %4335 = vrot.lane.b32.xlu1 %v8442_v1, %s7073_s12  ;;  %4337 = vrot.lane.b32.xlu0 %v8446_v18, %s7073_s12  ;;  %v8520_v13 = vrot.slane %v8479_v37, %v7469_v49 }
 0x26e   : > { %v8484_v24 = vrot.slane %v1949_v7, %v7460_v45  ;;  %v8505_v5 = vrot.slane %v2047_v43, %v7460_v45 }
 0x26f   : > { %v8462_v39 = vpop.permute.xlu1 %4095  ;;  %v8464_v34 = vpop.permute.xlu0 %4097 }
 0x270   : > { %12932 = vst [vmem:[#allocation132_spill] sm:$0xff] %v8462_v39  ;;  %12933 = vst [vmem:[#allocation133_spill] sm:$0xff] %v8464_v34  ;;  %v2145_v34 = vcombine.high %v7672_v26, %v12777_v62  ;;  %v2243_v26 = vcombine.high %v7687_v46, %v12777_v62  ;;  %v8524_v43 = vrot.slane %v8484_v24, %v7469_v49 }
 0x271   : > { %4339 = vrot.lane.b32.xlu1 %v8468_v30, %s7073_s12  ;;  %4341 = vrot.lane.b32.xlu0 %v8472_v28, %s7073_s12  ;;  %v2439_v46 = vcombine.high %v7715_v31, %v12777_v62  ;;  %v8546_v58 = vrot.slane %v8505_v5, %v7469_v49  ;;  %v2635_v31 = vcombine.high %v7745_v2, %v12777_v62 }
 0x272   : > { %v8510_v7 = vrot.slane %v2145_v34, %v7460_v45  ;;  %v2831_v2 = vcombine.high %v7773_v11, %v12777_v62 }
 0x273   : > { %v8488_v25 = vpop.permute.xlu1 %4099  ;;  %v8490_v44 = vpop.permute.xlu0 %4101 }
 0x274   : > { %12934 = vst [vmem:[#allocation134_spill] sm:$0xff] %v8488_v25  ;;  %12935 = vst [vmem:[#allocation135_spill] sm:$0xff] %v8490_v44  ;;  %v2341_v25 = vcombine.high %v7702_v42, %v12777_v62  ;;  %v8531_v42 = vrot.slane %v2243_v26, %v7460_v45  ;;  %v8550_v26 = vrot.slane %v8510_v7, %v7469_v49 }
 0x275   : > { %4343 = vrot.lane.b32.xlu1 %v8494_v10, %s7073_s12  ;;  %4345 = vrot.lane.b32.xlu0 %v8498_v33, %s7073_s12  ;;  %v8609_v11 = vrot.slane %v2831_v2, %v7460_v45 }
 0x276   : > { %v8536_v34 = vrot.slane %v2341_v25, %v7460_v45  ;;  %v8572_v54 = vrot.slane %v8531_v42, %v7469_v49 }
 0x277   : > { %v8514_v44 = vpop.permute.xlu1 %4103  ;;  %v8516_v39 = vpop.permute.xlu0 %4105  ;;  %v8650_v32 = vrot.slane %v8609_v11, %v7469_v49 }
 0x278   : > { %12936 = vst [vmem:[#allocation136_spill] sm:$0xff] %v8514_v44  ;;  %12937 = vst [vmem:[#allocation137_spill] sm:$0xff] %v8516_v39  ;;  %v2537_v39 = vcombine.high %v7730_v22, %v12777_v62  ;;  %v8557_v22 = vrot.slane %v2439_v46, %v7460_v45  ;;  %v8576_v46 = vrot.slane %v8536_v34, %v7469_v49 }
 0x279   : > { %4347 = vrot.lane.b32.xlu1 %v8520_v13, %s7073_s12  ;;  %4349 = vrot.lane.b32.xlu0 %v8524_v43, %s7073_s12 }
 0x27a   : > { %v8562_v25 = vrot.slane %v2537_v39, %v7460_v45  ;;  %v8598_v52 = vrot.slane %v8557_v22, %v7469_v49 }
 0x27b   : > { %v8540_v44 = vpop.permute.xlu1 %4107  ;;  %v8542_v6 = vpop.permute.xlu0 %4109 }
 0x27c   : > { %12938 = vst [vmem:[#allocation138_spill] sm:$0xff] %v8540_v44  ;;  %12939 = vst [vmem:[#allocation139_spill] sm:$0xff] %v8542_v6  ;;  %v2733_v44 = vcombine.high %v7758_v40, %v12777_v62  ;;  %v8583_v40 = vrot.slane %v2635_v31, %v7460_v45  ;;  %v8602_v31 = vrot.slane %v8562_v25, %v7469_v49 }
 0x27d   : > { %4351 = vrot.lane.b32.xlu1 %v8546_v58, %s7073_s12  ;;  %4353 = vrot.lane.b32.xlu0 %v8550_v26, %s7073_s12 }
 0x27e   : > { %v8588_v39 = vrot.slane %v2733_v44, %v7460_v45  ;;  %v12945_v44 = vld [vmem:[#allocation54_spill] sm:$0xff]  ;;  %v8624_v50 = vrot.slane %v8583_v40, %v7469_v49 }
 0x27f   : > { %v8566_v6 = vpop.permute.xlu1 %4111  ;;  %v8568_v36 = vpop.permute.xlu0 %4113 }
 0x280   : > { %12940 = vst [vmem:[#allocation140_spill] sm:$0xff] %v8566_v6  ;;  %12941 = vst [vmem:[#allocation141_spill] sm:$0xff] %v8568_v36  ;;  %v12942_v36 = vld [vmem:[#allocation52_spill] sm:$0xff]  ;;  %v8628_v2 = vrot.slane %v8588_v39, %v7469_v49 }
 0x281   : > { %4355 = vrot.lane.b32.xlu1 %v8572_v54, %s7073_s12  ;;  %4357 = vrot.lane.b32.xlu0 %v8576_v46, %s7073_s12  ;;  %v2929_v6 = vcombine.high %v12942_v36, %v12777_v62  ;;  %v3027_v36 = vcombine.high %v12945_v44, %v12777_v62 }
 0x283   : > { %v8592_v63 = vpop.permute.xlu1 %4115  ;;  %v8594_v15 = vpop.permute.xlu0 %4117 }
 0x284   : > { %12943 = vst [vmem:[#allocation52_spill] sm:$0xff] %v8592_v63  ;;  %12944 = vst [vmem:[#allocation142_spill] sm:$0xff] %v8594_v15  ;;  %v8614_v63 = vrot.slane %v2929_v6, %v7460_v45  ;;  %v12947_v15 = vld [vmem:[#allocation57_spill] sm:$0xff]  ;;  %v8635_v6 = vrot.slane %v3027_v36, %v7460_v45 }
 0x285   : > { %4359 = vrot.lane.b32.xlu1 %v8598_v52, %s7073_s12  ;;  %4361 = vrot.lane.b32.xlu0 %v8602_v31, %s7073_s12  ;;  %v3125_v56 = vcombine.high %v12947_v15, %v12777_v62  ;;  %v12951_v15 = vld [vmem:[#allocation60_spill] sm:$0xff] }
 0x286   : > { %12946 = vst [vmem:[#allocation54_spill] sm:$0xff] %v8614_v63  ;;  %12950 = vst [vmem:[#allocation144_spill] sm:$0xff] %v8635_v6  ;;  %v3223_v44 = vcombine.high %v12951_v15, %v12777_v62  ;;  %v8654_v36 = vrot.slane %v8614_v63, %v7469_v49  ;;  %v8676_v47 = vrot.slane %v8635_v6, %v7469_v49 }
 0x287   : > { %v8618_v27 = vpop.permute.xlu1 %4119  ;;  %v8620_v14 = vpop.permute.xlu0 %4121 }
 0x288   : > { %12948 = vst [vmem:[#allocation57_spill] sm:$0xff] %v8618_v27  ;;  %12949 = vst [vmem:[#allocation143_spill] sm:$0xff] %v8620_v14  ;;  %v8640_v14 = vrot.slane %v3125_v56, %v7460_v45  ;;  %v12953_v27 = vld [vmem:[#allocation62_spill] sm:$0xff]  ;;  %v12957_v56 = vld [vmem:[#allocation65_spill] sm:$0xff] }
 0x289   : > { %4363 = vrot.lane.b32.xlu1 %v8624_v50, %s7073_s12  ;;  %4365 = vrot.lane.b32.xlu0 %v8628_v2, %s7073_s12  ;;  %v3321_v35 = vcombine.high %v12953_v27, %v12777_v62  ;;  %v8661_v27 = vrot.slane %v3223_v44, %v7460_v45  ;;  %v3419_v15 = vcombine.high %v12957_v56, %v12777_v62 }
 0x28a   : > { %12952 = vst [vmem:[#allocation60_spill] sm:$0xff] %v8640_v14  ;;  %v8680_v44 = vrot.slane %v8640_v14, %v7469_v49 }
 0x28b   : > { %v8644_v19 = vpop.permute.xlu1 %4123  ;;  %v8646_v41 = vpop.permute.xlu0 %4125  ;;  %12956 = vst [vmem:[#allocation146_spill] sm:$0xff] %v8661_v27  ;;  %v8702_v6 = vrot.slane %v8661_v27, %v7469_v49 }
 0x28c   : > { %12954 = vst [vmem:[#allocation62_spill] sm:$0xff] %v8644_v19  ;;  %12955 = vst [vmem:[#allocation145_spill] sm:$0xff] %v8646_v41  ;;  %v8666_v19 = vrot.slane %v3321_v35, %v7460_v45  ;;  %v12959_v41 = vld [vmem:[#allocation68_spill] sm:$0xff]  ;;  %v12962_v35 = vld [vmem:[#allocation70_spill] sm:$0xff] }
 0x28d   : > { %4367 = vrot.lane.b32.xlu1 %v8650_v32, %s7073_s12  ;;  %4369 = vrot.lane.b32.xlu0 %v8654_v36, %s7073_s12  ;;  %v3517_v21 = vcombine.high %v12959_v41, %v12777_v62  ;;  %v8687_v41 = vrot.slane %v3419_v15, %v7460_v45  ;;  %v3615_v56 = vcombine.high %v12962_v35, %v12777_v62  ;;  %v12968_v35 = vld [vmem:[#allocation76_spill] sm:$0xff] }
 0x28e   : > { %12958 = vst [vmem:[#allocation65_spill] sm:$0xff] %v8666_v19  ;;  %v8706_v15 = vrot.slane %v8666_v19, %v7469_v49 }
 0x28f   : > { %v8670_v20 = vpop.permute.xlu1 %4127  ;;  %v8672_v0 = vpop.permute.xlu0 %4129  ;;  %v8726_v19 = vrot.slane %v8687_v41, %v7469_v49 }
 0x290   : > { %12960 = vst [vmem:[#allocation68_spill] sm:$0xff] %v8670_v20  ;;  %12961 = vst [vmem:[#allocation147_spill] sm:$0xff] %v8672_v0  ;;  %v8692_v20 = vrot.slane %v3517_v21, %v7460_v45  ;;  %v12963_v0 = vld [vmem:[#allocation73_spill] sm:$0xff] }
 0x291   : > { %4371 = vrot.lane.b32.xlu1 %v8676_v47, %s7073_s12  ;;  %4373 = vrot.lane.b32.xlu0 %v8680_v44, %s7073_s12  ;;  %v3713_v3 = vcombine.high %v12963_v0, %v12777_v62  ;;  %v8713_v0 = vrot.slane %v3615_v56, %v7460_v45 }
 0x292   : > { %v8730_v63 = vrot.slane %v8692_v20, %v7469_v49 }
 0x293   : > { %v8696_v59 = vpop.permute.xlu1 %4131  ;;  %v8698_v14 = vpop.permute.xlu0 %4197  ;;  %12966 = vst [vmem:[#allocation148_spill] sm:$0xff] %v8713_v0  ;;  %v8716_v21 = vrot.slane %v3713_v3, %v7460_v45 }
 0x294   : > { %12964 = vst [vmem:[#allocation70_spill] sm:$0xff] %v8696_v59  ;;  %12965 = vst [vmem:[#allocation73_spill] sm:$0xff] %v8698_v14  ;;  %v3811_v14 = vcombine.high %v12968_v35, %v12777_v62  ;;  %v8745_v62 = vrot.slane %v8713_v0, %v7469_v49 }
 0x295   : > { %4375 = vrot.lane.b32.xlu1 %v8702_v6, %s7073_s12  ;;  %4377 = vrot.lane.b32.xlu0 %v8706_v15, %s7073_s12  ;;  %12967 = vst [vmem:[#allocation149_spill] sm:$0xff] %v8716_v21 }
 0x296   : > { %v8737_v3 = vrot.slane %v3811_v14, %v7460_v45 }
 0x297   : > { %v8720_v59 = vpop.permute.xlu1 %4199  ;;  %v8722_v27 = vpop.permute.xlu0 %4201 }
 0x298   : > { %12969 = vst [vmem:[#allocation76_spill] sm:$0xff] %v8720_v59  ;;  %12970 = vst [vmem:[#allocation150_spill] sm:$0xff] %v8722_v27  ;;  %v8749_v27 = vrot.slane %v8716_v21, %v7469_v49 }
 0x299   : > { %4379 = vrot.lane.b32.xlu1 %v8726_v19, %s7073_s12  ;;  %4381 = vrot.lane.b32.xlu0 %v8730_v63, %s7073_s12  ;;  %12971 = vst [vmem:[#allocation151_spill] sm:$0xff] %v8737_v3 }
 0x29b   : > { %v8739_v56 = vpop.permute.xlu1 %4203  ;;  %v8741_v35 = vpop.permute.xlu0 %4205 }
 0x29c   : > { %12972 = vst [vmem:[#allocation152_spill] sm:$0xff] %v8739_v56  ;;  %12973 = vst [vmem:[#allocation153_spill] sm:$0xff] %v8741_v35  ;;  %v8761_v56 = vrot.slane %v8737_v3, %v7469_v49  ;;  %v12976_v35 = vmov 0.0  }
 0x29d   : > { %4383 = vrot.lane.b32.xlu1 %v8745_v62, %s7073_s12  ;;  %4385 = vrot.lane.b32.xlu0 %v8749_v27, %s7073_s12  ;;  %v820_v45 = vcombine.high %v8369_v8, %v12976_v35 }
 0x29f   : > { %v8755_v14 = vpop.permute.xlu1 %4207  ;;  %v8757_v59 = vpop.permute.xlu0 %4209 }
 0x2a0   : > { %12974 = vst [vmem:[#allocation154_spill] sm:$0xff] %v8755_v14  ;;  %12975 = vst [vmem:[#allocation155_spill] sm:$0xff] %v8757_v59  ;;  %v918_v59 = vcombine.high %v8390_v38, %v12976_v35  ;;  %v1016_v14 = vcombine.high %v8394_v57, %v12976_v35 }
 0x2a1   : > { %4387 = vrot.lane.b32.xlu1 %v8761_v56, %s7073_s12  ;;  %4453 = vrot.lane.b32.xlu0 %v820_v45, %s7074_s26  ;;  %v1114_v45 = vcombine.high %v8416_v16, %v12976_v35 }
 0x2a3   : > { %v8768_v21 = vpop.permute.xlu1 %4211  ;;  %v8770_v0 = vpop.permute.xlu0 %4213 }
 0x2a4   : > { %12977 = vst [vmem:[#allocation156_spill] sm:$0xff] %v8768_v21  ;;  %12978 = vst [vmem:[#allocation157_spill] sm:$0xff] %v8770_v0  ;;  %v1212_v21 = vcombine.high %v8420_v4, %v12976_v35 }
 0x2a5   : > { %4455 = vrot.lane.b32.xlu1 %v918_v59, %s7074_s26  ;;  %4457 = vrot.lane.b32.xlu0 %v1016_v14, %s7074_s26  ;;  %v1310_v59 = vcombine.high %v8442_v1, %v12976_v35  ;;  %v1408_v14 = vcombine.high %v8446_v18, %v12976_v35 }
 0x2a7   : > { %v8778_v8 = vpop.permute.xlu1 %4215  ;;  %v8780_v3 = vpop.permute.xlu0 %4217 }
 0x2a8   : > { %12979 = vst [vmem:[#allocation158_spill] sm:$0xff] %v8778_v8  ;;  %12980 = vst [vmem:[#allocation159_spill] sm:$0xff] %v8780_v3 }
 0x2a9   : > { %4459 = vrot.lane.b32.xlu1 %v1114_v45, %s7074_s26  ;;  %4461 = vrot.lane.b32.xlu0 %v1212_v21, %s7074_s26  ;;  %v1506_v21 = vcombine.high %v8468_v30, %v12976_v35  ;;  %v1604_v45 = vcombine.high %v8472_v28, %v12976_v35 }
 0x2ab   : > { %v8788_v38 = vpop.permute.xlu1 %4219  ;;  %v8790_v57 = vpop.permute.xlu0 %4221 }
 0x2ac   : > { %12981 = vst [vmem:[#allocation160_spill] sm:$0xff] %v8788_v38  ;;  %12982 = vst [vmem:[#allocation161_spill] sm:$0xff] %v8790_v57 }
 0x2ad   : > { %4463 = vrot.lane.b32.xlu1 %v1310_v59, %s7074_s26  ;;  %4465 = vrot.lane.b32.xlu0 %v1408_v14, %s7074_s26  ;;  %v1702_v59 = vcombine.high %v8494_v10, %v12976_v35  ;;  %v1800_v14 = vcombine.high %v8498_v33, %v12976_v35 }
 0x2af   : > { %v8798_v16 = vpop.permute.xlu1 %4223  ;;  %v8800_v4 = vpop.permute.xlu0 %4225 }
 0x2b0   : > { %12983 = vst [vmem:[#allocation162_spill] sm:$0xff] %v8798_v16  ;;  %12984 = vst [vmem:[#allocation163_spill] sm:$0xff] %v8800_v4 }
 0x2b1   : > { %4467 = vrot.lane.b32.xlu1 %v1506_v21, %s7074_s26  ;;  %4469 = vrot.lane.b32.xlu0 %v1604_v45, %s7074_s26  ;;  %v1898_v21 = vcombine.high %v8520_v13, %v12976_v35  ;;  %v1996_v45 = vcombine.high %v8524_v43, %v12976_v35 }
 0x2b3   : > { %v8808_v1 = vpop.permute.xlu1 %4227  ;;  %v8810_v18 = vpop.permute.xlu0 %4229 }
 0x2b4   : > { %12985 = vst [vmem:[#allocation164_spill] sm:$0xff] %v8808_v1  ;;  %12986 = vst [vmem:[#allocation165_spill] sm:$0xff] %v8810_v18 }
 0x2b5   : > { %4471 = vrot.lane.b32.xlu1 %v1702_v59, %s7074_s26  ;;  %4473 = vrot.lane.b32.xlu0 %v1800_v14, %s7074_s26  ;;  %v2094_v59 = vcombine.high %v8546_v58, %v12976_v35  ;;  %v2192_v14 = vcombine.high %v8550_v26, %v12976_v35 }
 0x2b7   : > { %v8818_v30 = vpop.permute.xlu1 %4231  ;;  %v8820_v28 = vpop.permute.xlu0 %4233 }
 0x2b8   : > { %12987 = vst [vmem:[#allocation166_spill] sm:$0xff] %v8818_v30  ;;  %12988 = vst [vmem:[#allocation167_spill] sm:$0xff] %v8820_v28 }
 0x2b9   : > { %4475 = vrot.lane.b32.xlu1 %v1898_v21, %s7074_s26  ;;  %4477 = vrot.lane.b32.xlu0 %v1996_v45, %s7074_s26  ;;  %v2290_v21 = vcombine.high %v8572_v54, %v12976_v35  ;;  %v2388_v45 = vcombine.high %v8576_v46, %v12976_v35 }
 0x2bb   : > { %v8828_v10 = vpop.permute.xlu1 %4235  ;;  %v8830_v33 = vpop.permute.xlu0 %4237 }
 0x2bc   : > { %12989 = vst [vmem:[#allocation168_spill] sm:$0xff] %v8828_v10  ;;  %12990 = vst [vmem:[#allocation169_spill] sm:$0xff] %v8830_v33 }
 0x2bd   : > { %4479 = vrot.lane.b32.xlu1 %v2094_v59, %s7074_s26  ;;  %4481 = vrot.lane.b32.xlu0 %v2192_v14, %s7074_s26  ;;  %v2486_v59 = vcombine.high %v8598_v52, %v12976_v35  ;;  %v2584_v14 = vcombine.high %v8602_v31, %v12976_v35 }
 0x2bf   : > { %v8838_v13 = vpop.permute.xlu1 %4239  ;;  %v8840_v43 = vpop.permute.xlu0 %4241 }
 0x2c0   : > { %12991 = vst [vmem:[#allocation170_spill] sm:$0xff] %v8838_v13  ;;  %12992 = vst [vmem:[#allocation171_spill] sm:$0xff] %v8840_v43 }
 0x2c1   : > { %4483 = vrot.lane.b32.xlu1 %v2290_v21, %s7074_s26  ;;  %4485 = vrot.lane.b32.xlu0 %v2388_v45, %s7074_s26  ;;  %v2682_v21 = vcombine.high %v8624_v50, %v12976_v35  ;;  %v2780_v45 = vcombine.high %v8628_v2, %v12976_v35 }
 0x2c3   : > { %v8848_v58 = vpop.permute.xlu1 %4243  ;;  %v8850_v26 = vpop.permute.xlu0 %4245 }
 0x2c4   : > { %12993 = vst [vmem:[#allocation172_spill] sm:$0xff] %v8848_v58  ;;  %12994 = vst [vmem:[#allocation173_spill] sm:$0xff] %v8850_v26 }
 0x2c5   : > { %4487 = vrot.lane.b32.xlu1 %v2486_v59, %s7074_s26  ;;  %4489 = vrot.lane.b32.xlu0 %v2584_v14, %s7074_s26  ;;  %v2878_v59 = vcombine.high %v8650_v32, %v12976_v35  ;;  %v2976_v14 = vcombine.high %v8654_v36, %v12976_v35 }
 0x2c7   : > { %v8858_v54 = vpop.permute.xlu1 %4247  ;;  %v8860_v46 = vpop.permute.xlu0 %4249 }
 0x2c8   : > { %12995 = vst [vmem:[#allocation174_spill] sm:$0xff] %v8858_v54  ;;  %12996 = vst [vmem:[#allocation175_spill] sm:$0xff] %v8860_v46 }
 0x2c9   : > { %4491 = vrot.lane.b32.xlu1 %v2682_v21, %s7074_s26  ;;  %4493 = vrot.lane.b32.xlu0 %v2780_v45, %s7074_s26  ;;  %v3074_v21 = vcombine.high %v8676_v47, %v12976_v35  ;;  %v3172_v45 = vcombine.high %v8680_v44, %v12976_v35 }
 0x2cb   : > { %v8868_v52 = vpop.permute.xlu1 %4251  ;;  %v8870_v31 = vpop.permute.xlu0 %4253 }
 0x2cc   : > { %12997 = vst [vmem:[#allocation176_spill] sm:$0xff] %v8868_v52  ;;  %12998 = vst [vmem:[#allocation177_spill] sm:$0xff] %v8870_v31 }
 0x2cd   : > { %4495 = vrot.lane.b32.xlu1 %v2878_v59, %s7074_s26  ;;  %4497 = vrot.lane.b32.xlu0 %v2976_v14, %s7074_s26  ;;  %v3270_v59 = vcombine.high %v8702_v6, %v12976_v35  ;;  %v3368_v14 = vcombine.high %v8706_v15, %v12976_v35  ;;  %v803_v6 = vcombine.high %v8337_v51, %v12976_v35 }
 0x2ce   : > { %v999_v51 = vcombine.high %v8357_v17, %v12976_v35  ;;  %v1195_v17 = vcombine.high %v8380_v48, %v12976_v35  ;;  %v1391_v48 = vcombine.high %v8406_v29, %v12976_v35  ;;  %v1587_v29 = vcombine.high %v8432_v60, %v12976_v35 }
 0x2cf   : > { %v8878_v50 = vpop.permute.xlu1 %4255  ;;  %v8880_v2 = vpop.permute.xlu0 %4257  ;;  %v1783_v60 = vcombine.high %v8458_v55, %v12976_v35  ;;  %v1979_v55 = vcombine.high %v8484_v24, %v12976_v35  ;;  %v2175_v24 = vcombine.high %v8510_v7, %v12976_v35  ;;  %v2371_v7 = vcombine.high %v8536_v34, %v12976_v35 }
 0x2d0   : > { %12999 = vst [vmem:[#allocation178_spill] sm:$0xff] %v8878_v50  ;;  %13000 = vst [vmem:[#allocation179_spill] sm:$0xff] %v8880_v2  ;;  %v2567_v34 = vcombine.high %v8562_v25, %v12976_v35  ;;  %v2763_v25 = vcombine.high %v8588_v39, %v12976_v35  ;;  %v13027_v39 = vld [vmem:[#allocation54_spill] sm:$0xff] }
 0x2d1   : > { %4499 = vrot.lane.b32.xlu1 %v3074_v21, %s7074_s26  ;;  %4501 = vrot.lane.b32.xlu0 %v3172_v45, %s7074_s26  ;;  %v3466_v21 = vcombine.high %v8726_v19, %v12976_v35  ;;  %v3564_v45 = vcombine.high %v8730_v63, %v12976_v35  ;;  %v3760_v19 = vcombine.high %v8749_v27, %v12976_v35 }
 0x2d2   : > { %v901_v63 = vcombine.high %v8352_v53, %v12976_v35  ;;  %v1097_v53 = vcombine.high %v8375_v61, %v12976_v35  ;;  %v1293_v61 = vcombine.high %v8401_v9, %v12976_v35  ;;  %v1489_v9 = vcombine.high %v8427_v23, %v12976_v35 }
 0x2d3   : > { %v8888_v32 = vpop.permute.xlu1 %4259  ;;  %v8890_v36 = vpop.permute.xlu0 %4325  ;;  %v1685_v23 = vcombine.high %v8453_v12, %v12976_v35  ;;  %v1881_v12 = vcombine.high %v8479_v37, %v12976_v35  ;;  %v2077_v37 = vcombine.high %v8505_v5, %v12976_v35  ;;  %v2273_v5 = vcombine.high %v8531_v42, %v12976_v35 }
 0x2d4   : > { %13001 = vst [vmem:[#allocation180_spill] sm:$0xff] %v8888_v32  ;;  %13002 = vst [vmem:[#allocation181_spill] sm:$0xff] %v8890_v36  ;;  %v2469_v42 = vcombine.high %v8557_v22, %v12976_v35  ;;  %v2665_v22 = vcombine.high %v8583_v40, %v12976_v35  ;;  %v2861_v40 = vcombine.high %v8609_v11, %v12976_v35  ;;  %v13030_v11 = vld [vmem:[#allocation144_spill] sm:$0xff] }
 0x2d5   : > { %4503 = vrot.lane.b32.xlu1 %v3270_v59, %s7074_s26  ;;  %4505 = vrot.lane.b32.xlu0 %v3368_v14, %s7074_s26  ;;  %v3662_v14 = vcombine.high %v8745_v62, %v12976_v35  ;;  %v3858_v62 = vcombine.high %v8761_v56, %v12976_v35  ;;  %v8945_v56 = vrot.slane %v901_v63, %v7469_v49 }
 0x2d6   : > { %v8963_v63 = vrot.slane %v1097_v53, %v7469_v49  ;;  %v8981_v53 = vrot.slane %v1293_v61, %v7469_v49  ;;  %v8999_v61 = vrot.slane %v1489_v9, %v7469_v49  ;;  %v9017_v9 = vrot.slane %v1685_v23, %v7469_v49 }
 0x2d7   : > { %v8898_v47 = vpop.permute.xlu1 %4327  ;;  %v8900_v44 = vpop.permute.xlu0 %4329  ;;  %v9035_v23 = vrot.slane %v1881_v12, %v7469_v49  ;;  %v9053_v12 = vrot.slane %v2077_v37, %v7469_v49  ;;  %v9071_v37 = vrot.slane %v2273_v5, %v7469_v49  ;;  %v9089_v5 = vrot.slane %v2469_v42, %v7469_v49 }
 0x2d8   : > { %13003 = vst [vmem:[#allocation182_spill] sm:$0xff] %v8898_v47  ;;  %13004 = vst [vmem:[#allocation183_spill] sm:$0xff] %v8900_v44  ;;  %v9107_v42 = vrot.slane %v2665_v22, %v7469_v49  ;;  %v3057_v1 = vcombine.high %v13030_v11, %v12976_v35  ;;  %v9125_v22 = vrot.slane %v2861_v40, %v7469_v49  ;;  %v13034_v11 = vld [vmem:[#allocation146_spill] sm:$0xff] }
 0x2d9   : > { %4507 = vrot.lane.b32.xlu1 %v3466_v21, %s7074_s26  ;;  %4509 = vrot.lane.b32.xlu0 %v3564_v45, %s7074_s26  ;;  %v3253_v3 = vcombine.high %v13034_v11, %v12976_v35  ;;  %v3449_v11 = vcombine.high %v8687_v41, %v12976_v35  ;;  %v13040_v41 = vld [vmem:[#allocation148_spill] sm:$0xff]  ;;  %v919_v33 = vcombine.high %v8945_v56, %v12976_v35 }
 0x2da   : > { %v9143_v40 = vrot.slane %v3057_v1, %v7469_v49 }
 0x2db   : > { %v8910_v15 = vpop.permute.xlu1 %4331  ;;  %v8912_v59 = vpop.permute.xlu0 %4333  ;;  %v9161_v1 = vrot.slane %v3253_v3, %v7469_v49  ;;  %v9179_v3 = vrot.slane %v3449_v11, %v7469_v49 }
 0x2dc   : > { %13005 = vst [vmem:[#allocation184_spill] sm:$0xff] %v8910_v15  ;;  %13006 = vst [vmem:[#allocation185_spill] sm:$0xff] %v8912_v59  ;;  %v8931_v15 = vrot.slane %v803_v6, %v7469_v49  ;;  %v8948_v6 = vrot.slane %v999_v51, %v7469_v49  ;;  %v8966_v51 = vrot.slane %v1195_v17, %v7469_v49 }
 0x2dd   : > { %4511 = vrot.lane.b32.xlu1 %v3662_v14, %s7074_s26  ;;  %4513 = vrot.lane.b32.xlu0 %v3760_v19, %s7074_s26  ;;  %v8984_v17 = vrot.slane %v1391_v48, %v7469_v49  ;;  %v9002_v48 = vrot.slane %v1587_v29, %v7469_v49  ;;  %v9020_v29 = vrot.slane %v1783_v60, %v7469_v49 }
 0x2de   : > { %v9038_v60 = vrot.slane %v1979_v55, %v7469_v49  ;;  %v9056_v55 = vrot.slane %v2175_v24, %v7469_v49  ;;  %v9074_v24 = vrot.slane %v2371_v7, %v7469_v49  ;;  %v9092_v7 = vrot.slane %v2567_v34, %v7469_v49 }
 0x2df   : > { %v8924_v21 = vpop.permute.xlu1 %4335  ;;  %v8926_v45 = vpop.permute.xlu0 %4337  ;;  %v9110_v34 = vrot.slane %v2763_v25, %v7469_v49 }
 0x2e0   : > { %13007 = vst [vmem:[#allocation186_spill] sm:$0xff] %v8924_v21  ;;  %13008 = vst [vmem:[#allocation187_spill] sm:$0xff] %v8926_v45 }
 0x2e1   : > { %4515 = vrot.lane.b32.xlu1 %v3858_v62, %s7074_s26  ;;  %4581 = vrot.lane.b32.xlu0 %v8931_v15, %s7075_s8  ;;  %s6670_s26 = sshll.u32 %s11651_s21, 4  ;;  %s12636_s26 = int_to_ptr.vmem [resolvable:$true] %s6670_s26 }
 0x2e3   : > { %v8940_v27 = vpop.permute.xlu1 %4339  ;;  %v8942_v14 = vpop.permute.xlu0 %4341 }
 0x2e4   : > { %13009 = vst [vmem:[#allocation188_spill] sm:$0xff] %v8940_v27  ;;  %13010 = vst [vmem:[#allocation189_spill] sm:$0xff] %v8942_v14  ;;  %v13105_v14 = vld [vmem:[#allocation43_spill] sm:$0xff] }
 0x2e5   : > { %4583 = vrot.lane.b32.xlu1 %v8945_v56, %s7075_s8  ;;  %4585 = vrot.lane.b32.xlu0 %v8948_v6, %s7075_s8 }
 0x2e7   : > { %v8958_v19 = vpop.permute.xlu1 %4343  ;;  %v8960_v62 = vpop.permute.xlu0 %4345 }
 0x2e8   : > { %13011 = vst [vmem:[#allocation190_spill] sm:$0xff] %v8958_v19  ;;  %13012 = vst [vmem:[#allocation191_spill] sm:$0xff] %v8960_v62 }
 0x2e9   : > { %4587 = vrot.lane.b32.xlu1 %v8963_v63, %s7075_s8  ;;  %4589 = vrot.lane.b32.xlu0 %v8966_v51, %s7075_s8 }
 0x2eb   : > { %v8976_v27 = vpop.permute.xlu1 %4347  ;;  %v8978_v62 = vpop.permute.xlu0 %4349 }
 0x2ec   : > { %13013 = vst [vmem:[#allocation192_spill] sm:$0xff] %v8976_v27  ;;  %13014 = vst [vmem:[#allocation193_spill] sm:$0xff] %v8978_v62 }
 0x2ed   : > { %4591 = vrot.lane.b32.xlu1 %v8981_v53, %s7075_s8  ;;  %4593 = vrot.lane.b32.xlu0 %v8984_v17, %s7075_s8 }
 0x2ef   : > { %v8994_v27 = vpop.permute.xlu1 %4351  ;;  %v8996_v45 = vpop.permute.xlu0 %4353 }
 0x2f0   : > { %13015 = vst [vmem:[#allocation194_spill] sm:$0xff] %v8994_v27  ;;  %13016 = vst [vmem:[#allocation195_spill] sm:$0xff] %v8996_v45 }
 0x2f1   : > { %4595 = vrot.lane.b32.xlu1 %v8999_v61, %s7075_s8  ;;  %4597 = vrot.lane.b32.xlu0 %v9002_v48, %s7075_s8 }
 0x2f3   : > { %v9012_v44 = vpop.permute.xlu1 %4355  ;;  %v9014_v45 = vpop.permute.xlu0 %4357 }
 0x2f4   : > { %13017 = vst [vmem:[#allocation196_spill] sm:$0xff] %v9012_v44  ;;  %13018 = vst [vmem:[#allocation197_spill] sm:$0xff] %v9014_v45 }
 0x2f5   : > { %4599 = vrot.lane.b32.xlu1 %v9017_v9, %s7075_s8  ;;  %4601 = vrot.lane.b32.xlu0 %v9020_v29, %s7075_s8 }
 0x2f7   : > { %v9030_v44 = vpop.permute.xlu1 %4359  ;;  %v9032_v52 = vpop.permute.xlu0 %4361 }
 0x2f8   : > { %13019 = vst [vmem:[#allocation198_spill] sm:$0xff] %v9030_v44  ;;  %13020 = vst [vmem:[#allocation199_spill] sm:$0xff] %v9032_v52 }
 0x2f9   : > { %4603 = vrot.lane.b32.xlu1 %v9035_v23, %s7075_s8  ;;  %4605 = vrot.lane.b32.xlu0 %v9038_v60, %s7075_s8 }
 0x2fb   : > { %v9048_v46 = vpop.permute.xlu1 %4363  ;;  %v9050_v52 = vpop.permute.xlu0 %4365 }
 0x2fc   : > { %13021 = vst [vmem:[#allocation200_spill] sm:$0xff] %v9048_v46  ;;  %13022 = vst [vmem:[#allocation201_spill] sm:$0xff] %v9050_v52 }
 0x2fd   : > { %4607 = vrot.lane.b32.xlu1 %v9053_v12, %s7075_s8  ;;  %4609 = vrot.lane.b32.xlu0 %v9056_v55, %s7075_s8 }
 0x2ff   : > { %v9066_v46 = vpop.permute.xlu1 %4367  ;;  %v9068_v58 = vpop.permute.xlu0 %4369 }
 0x300   : > { %13023 = vst [vmem:[#allocation202_spill] sm:$0xff] %v9066_v46  ;;  %13024 = vst [vmem:[#allocation203_spill] sm:$0xff] %v9068_v58 }
 0x301   : > { %4611 = vrot.lane.b32.xlu1 %v9071_v37, %s7075_s8  ;;  %4613 = vrot.lane.b32.xlu0 %v9074_v24, %s7075_s8 }
 0x303   : > { %v9084_v43 = vpop.permute.xlu1 %4371  ;;  %v9086_v58 = vpop.permute.xlu0 %4373 }
 0x304   : > { %13025 = vst [vmem:[#allocation204_spill] sm:$0xff] %v9084_v43  ;;  %13026 = vst [vmem:[#allocation205_spill] sm:$0xff] %v9086_v58  ;;  %v2959_v43 = vcombine.high %v13027_v39, %v12976_v35  ;;  %v13031_v39 = vld [vmem:[#allocation60_spill] sm:$0xff] }
 0x305   : > { %4615 = vrot.lane.b32.xlu1 %v9089_v5, %s7075_s8  ;;  %4617 = vrot.lane.b32.xlu0 %v9092_v7, %s7075_s8  ;;  %v3155_v4 = vcombine.high %v13031_v39, %v12976_v35  ;;  %v13035_v39 = vld [vmem:[#allocation65_spill] sm:$0xff] }
 0x306   : > { %v9128_v25 = vrot.slane %v2959_v43, %v7469_v49 }
 0x307   : > { %v9102_v10 = vpop.permute.xlu1 %4375  ;;  %v9104_v28 = vpop.permute.xlu0 %4377  ;;  %v9146_v43 = vrot.slane %v3155_v4, %v7469_v49 }
 0x308   : > { %13028 = vst [vmem:[#allocation54_spill] sm:$0xff] %v9102_v10  ;;  %13029 = vst [vmem:[#allocation206_spill] sm:$0xff] %v9104_v28  ;;  %v3645_v10 = vcombine.high %v13040_v41, %v12976_v35  ;;  %v13044_v41 = vld [vmem:[#allocation151_spill] sm:$0xff] }
 0x309   : > { %4619 = vrot.lane.b32.xlu1 %v9107_v42, %s7075_s8  ;;  %4621 = vrot.lane.b32.xlu0 %v9110_v34, %s7075_s8  ;;  %v3841_v46 = vcombine.high %v13044_v41, %v12976_v35 }
 0x30b   : > { %v9120_v38 = vpop.permute.xlu1 %4379  ;;  %v9122_v28 = vpop.permute.xlu0 %4381  ;;  %v9209_v41 = vrot.slane %v3841_v46, %v7469_v49  ;;  %v1017_v46 = vcombine.high %v8948_v6, %v12976_v35 }
 0x30c   : > { %13032 = vst [vmem:[#allocation144_spill] sm:$0xff] %v9120_v38  ;;  %13033 = vst [vmem:[#allocation60_spill] sm:$0xff] %v9122_v28  ;;  %v3351_v38 = vcombine.high %v13035_v39, %v12976_v35  ;;  %v3547_v39 = vcombine.high %v8692_v20, %v12976_v35  ;;  %v13041_v20 = vld [vmem:[#allocation149_spill] sm:$0xff] }
 0x30d   : > { %4623 = vrot.lane.b32.xlu1 %v9125_v22, %s7075_s8  ;;  %4625 = vrot.lane.b32.xlu0 %v9128_v25, %s7075_s8  ;;  %v3743_v54 = vcombine.high %v13041_v20, %v12976_v35 }
 0x30e   : > { %v9164_v4 = vrot.slane %v3351_v38, %v7469_v49  ;;  %v9182_v38 = vrot.slane %v3547_v39, %v7469_v49 }
 0x30f   : > { %v9138_v50 = vpop.permute.xlu1 %4383  ;;  %v9140_v28 = vpop.permute.xlu0 %4385  ;;  %v9198_v11 = vrot.slane %v3743_v54, %v7469_v49 }
 0x310   : > { %13036 = vst [vmem:[#allocation146_spill] sm:$0xff] %v9138_v50  ;;  %13037 = vst [vmem:[#allocation65_spill] sm:$0xff] %v9140_v28  ;;  %v13117_v28 = vld [vmem:[#allocation63_spill] sm:$0xff] }
 0x311   : > { %4627 = vrot.lane.b32.xlu1 %v9143_v40, %s7075_s8  ;;  %4629 = vrot.lane.b32.xlu0 %v9146_v43, %s7075_s8 }
 0x313   : > { %v9156_v50 = vpop.permute.xlu1 %4387  ;;  %v9158_v31 = vpop.permute.xlu0 %4453 }
 0x314   : > { %13038 = vst [vmem:[#allocation207_spill] sm:$0xff] %v9156_v50  ;;  %13039 = vst [vmem:[#allocation208_spill] sm:$0xff] %v9158_v31  ;;  %v13113_v31 = vld [vmem:[#allocation55_spill] sm:$0xff] }
 0x315   : > { %4631 = vrot.lane.b32.xlu1 %v9161_v1, %s7075_s8  ;;  %4633 = vrot.lane.b32.xlu0 %v9164_v4, %s7075_s8 }
 0x317   : > { %v9174_v58 = vpop.permute.xlu1 %4455  ;;  %v9176_v26 = vpop.permute.xlu0 %4457 }
 0x318   : > { %13042 = vst [vmem:[#allocation148_spill] sm:$0xff] %v9174_v58  ;;  %13043 = vst [vmem:[#allocation149_spill] sm:$0xff] %v9176_v26  ;;  %v9195_v26 = vrot.slane %v3645_v10, %v7469_v49  ;;  %v821_v10 = vcombine.high %v8931_v15, %v12976_v35 }
 0x319   : > { %4635 = vrot.lane.b32.xlu1 %v9179_v3, %s7075_s8  ;;  %4637 = vrot.lane.b32.xlu0 %v9182_v38, %s7075_s8 }
 0x31b   : > { %v9190_v20 = vpop.permute.xlu1 %4459  ;;  %v9192_v13 = vpop.permute.xlu0 %4461 }
 0x31c   : > { %13045 = vst [vmem:[#allocation151_spill] sm:$0xff] %v9190_v20  ;;  %13046 = vst [vmem:[#allocation209_spill] sm:$0xff] %v9192_v13  ;;  %v13109_v13 = vld [vmem:[#allocation48_spill] sm:$0xff] }
 0x31d   : > { %4639 = vrot.lane.b32.xlu1 %v9195_v26, %s7075_s8  ;;  %4641 = vrot.lane.b32.xlu0 %v9198_v11, %s7075_s8 }
 0x31f   : > { %v9204_v39 = vpop.permute.xlu1 %4463  ;;  %v9206_v52 = vpop.permute.xlu0 %4465 }
 0x320   : > { %13047 = vst [vmem:[#allocation210_spill] sm:$0xff] %v9204_v39  ;;  %13048 = vst [vmem:[#allocation211_spill] sm:$0xff] %v9206_v52 }
 0x321   : > { %4643 = vrot.lane.b32.xlu1 %v9209_v41, %s7075_s8  ;;  %4709 = vrot.lane.b32.xlu0 %v821_v10, %s7076_s5  ;;  %v1115_v10 = vcombine.high %v8963_v63, %v12976_v35 }
 0x323   : > { %v9216_v54 = vpop.permute.xlu1 %4467  ;;  %v9218_v20 = vpop.permute.xlu0 %4469 }
 0x324   : > { %13049 = vst [vmem:[#allocation212_spill] sm:$0xff] %v9216_v54  ;;  %13050 = vst [vmem:[#allocation213_spill] sm:$0xff] %v9218_v20  ;;  %v1213_v54 = vcombine.high %v8966_v51, %v12976_v35 }
 0x325   : > { %4711 = vrot.lane.b32.xlu1 %v919_v33, %s7076_s5  ;;  %4713 = vrot.lane.b32.xlu0 %v1017_v46, %s7076_s5  ;;  %v1311_v33 = vcombine.high %v8981_v53, %v12976_v35  ;;  %v1409_v46 = vcombine.high %v8984_v17, %v12976_v35 }
 0x327   : > { %v9226_v15 = vpop.permute.xlu1 %4471  ;;  %v9228_v52 = vpop.permute.xlu0 %4473 }
 0x328   : > { %13051 = vst [vmem:[#allocation214_spill] sm:$0xff] %v9226_v15  ;;  %13052 = vst [vmem:[#allocation215_spill] sm:$0xff] %v9228_v52 }
 0x329   : > { %4715 = vrot.lane.b32.xlu1 %v1115_v10, %s7076_s5  ;;  %4717 = vrot.lane.b32.xlu0 %v1213_v54, %s7076_s5  ;;  %v1507_v54 = vcombine.high %v8999_v61, %v12976_v35  ;;  %v1605_v10 = vcombine.high %v9002_v48, %v12976_v35 }
 0x32b   : > { %v9236_v56 = vpop.permute.xlu1 %4475  ;;  %v9238_v6 = vpop.permute.xlu0 %4477 }
 0x32c   : > { %13053 = vst [vmem:[#allocation216_spill] sm:$0xff] %v9236_v56  ;;  %13054 = vst [vmem:[#allocation217_spill] sm:$0xff] %v9238_v6 }
 0x32d   : > { %4719 = vrot.lane.b32.xlu1 %v1311_v33, %s7076_s5  ;;  %4721 = vrot.lane.b32.xlu0 %v1409_v46, %s7076_s5  ;;  %v1703_v33 = vcombine.high %v9017_v9, %v12976_v35  ;;  %v1801_v46 = vcombine.high %v9020_v29, %v12976_v35 }
 0x32f   : > { %v9246_v63 = vpop.permute.xlu1 %4479  ;;  %v9248_v51 = vpop.permute.xlu0 %4481 }
 0x330   : > { %13055 = vst [vmem:[#allocation218_spill] sm:$0xff] %v9246_v63  ;;  %13056 = vst [vmem:[#allocation219_spill] sm:$0xff] %v9248_v51  ;;  %v13097_v63 = vld [vmem:[#allocation33_spill] sm:$0xff] }
 0x331   : > { %4723 = vrot.lane.b32.xlu1 %v1507_v54, %s7076_s5  ;;  %4725 = vrot.lane.b32.xlu0 %v1605_v10, %s7076_s5  ;;  %v1899_v54 = vcombine.high %v9035_v23, %v12976_v35  ;;  %v1997_v10 = vcombine.high %v9038_v60, %v12976_v35 }
 0x333   : > { %v9256_v53 = vpop.permute.xlu1 %4483  ;;  %v9258_v17 = vpop.permute.xlu0 %4485 }
 0x334   : > { %13057 = vst [vmem:[#allocation220_spill] sm:$0xff] %v9256_v53  ;;  %13058 = vst [vmem:[#allocation221_spill] sm:$0xff] %v9258_v17 }
 0x335   : > { %4727 = vrot.lane.b32.xlu1 %v1703_v33, %s7076_s5  ;;  %4729 = vrot.lane.b32.xlu0 %v1801_v46, %s7076_s5  ;;  %v2095_v33 = vcombine.high %v9053_v12, %v12976_v35  ;;  %v2193_v46 = vcombine.high %v9056_v55, %v12976_v35 }
 0x337   : > { %v9266_v61 = vpop.permute.xlu1 %4487  ;;  %v9268_v48 = vpop.permute.xlu0 %4489 }
 0x338   : > { %13059 = vst [vmem:[#allocation222_spill] sm:$0xff] %v9266_v61  ;;  %13060 = vst [vmem:[#allocation223_spill] sm:$0xff] %v9268_v48  ;;  %v13085_v48 = vld [vmem:[#allocation19_spill] sm:$0xff] }
 0x339   : > { %4731 = vrot.lane.b32.xlu1 %v1899_v54, %s7076_s5  ;;  %4733 = vrot.lane.b32.xlu0 %v1997_v10, %s7076_s5  ;;  %v2291_v54 = vcombine.high %v9071_v37, %v12976_v35  ;;  %v2389_v10 = vcombine.high %v9074_v24, %v12976_v35 }
 0x33b   : > { %v9276_v9 = vpop.permute.xlu1 %4491  ;;  %v9278_v29 = vpop.permute.xlu0 %4493 }
 0x33c   : > { %13061 = vst [vmem:[#allocation224_spill] sm:$0xff] %v9276_v9  ;;  %13062 = vst [vmem:[#allocation225_spill] sm:$0xff] %v9278_v29  ;;  %v13093_v29 = vld [vmem:[#allocation28_spill] sm:$0xff] }
 0x33d   : > { %4735 = vrot.lane.b32.xlu1 %v2095_v33, %s7076_s5  ;;  %4737 = vrot.lane.b32.xlu0 %v2193_v46, %s7076_s5  ;;  %v2487_v33 = vcombine.high %v9089_v5, %v12976_v35  ;;  %v2585_v46 = vcombine.high %v9092_v7, %v12976_v35 }
 0x33f   : > { %v9286_v23 = vpop.permute.xlu1 %4495  ;;  %v9288_v60 = vpop.permute.xlu0 %4497 }
 0x340   : > { %13063 = vst [vmem:[#allocation226_spill] sm:$0xff] %v9286_v23  ;;  %13064 = vst [vmem:[#allocation227_spill] sm:$0xff] %v9288_v60 }
 0x341   : > { %4739 = vrot.lane.b32.xlu1 %v2291_v54, %s7076_s5  ;;  %4741 = vrot.lane.b32.xlu0 %v2389_v10, %s7076_s5  ;;  %v2683_v54 = vcombine.high %v9107_v42, %v12976_v35  ;;  %v2781_v10 = vcombine.high %v9110_v34, %v12976_v35 }
 0x343   : > { %v9296_v12 = vpop.permute.xlu1 %4499  ;;  %v9298_v55 = vpop.permute.xlu0 %4501 }
 0x344   : > { %13065 = vst [vmem:[#allocation228_spill] sm:$0xff] %v9296_v12  ;;  %13066 = vst [vmem:[#allocation229_spill] sm:$0xff] %v9298_v55  ;;  %v13082_v12 = vld [vmem:[#allocation17_spill] sm:$0xff] }
 0x345   : > { %4743 = vrot.lane.b32.xlu1 %v2487_v33, %s7076_s5  ;;  %4745 = vrot.lane.b32.xlu0 %v2585_v46, %s7076_s5  ;;  %v2879_v33 = vcombine.high %v9125_v22, %v12976_v35  ;;  %v2977_v46 = vcombine.high %v9128_v25, %v12976_v35 }
 0x347   : > { %v9306_v37 = vpop.permute.xlu1 %4503  ;;  %v9308_v24 = vpop.permute.xlu0 %4505 }
 0x348   : > { %13067 = vst [vmem:[#allocation230_spill] sm:$0xff] %v9306_v37  ;;  %13068 = vst [vmem:[#allocation231_spill] sm:$0xff] %v9308_v24  ;;  %v3663_v24 = vcombine.high %v9195_v26, %v12976_v35 }
 0x349   : > { %4747 = vrot.lane.b32.xlu1 %v2683_v54, %s7076_s5  ;;  %4749 = vrot.lane.b32.xlu0 %v2781_v10, %s7076_s5  ;;  %v3075_v54 = vcombine.high %v9143_v40, %v12976_v35  ;;  %v3173_v10 = vcombine.high %v9146_v43, %v12976_v35 }
 0x34b   : > { %v9316_v5 = vpop.permute.xlu1 %4507  ;;  %v9318_v7 = vpop.permute.xlu0 %4509 }
 0x34c   : > { %13069 = vst [vmem:[#allocation232_spill] sm:$0xff] %v9316_v5  ;;  %13070 = vst [vmem:[#allocation233_spill] sm:$0xff] %v9318_v7 }
 0x34d   : > { %4751 = vrot.lane.b32.xlu1 %v2879_v33, %s7076_s5  ;;  %4753 = vrot.lane.b32.xlu0 %v2977_v46, %s7076_s5  ;;  %v3271_v33 = vcombine.high %v9161_v1, %v12976_v35  ;;  %v3369_v46 = vcombine.high %v9164_v4, %v12976_v35  ;;  %v13077_v1 = vld [vmem:[#allocation12_spill] sm:$0xff]  ;;  %v13078_v4 = vld [vmem:[#allocation13_spill] sm:$0xff] }
 0x34e   : > { %v9358_v5 = vrot.slane %v13078_v4, %v13077_v1  ;;  %v9380_v60 = vrot.slane %v13082_v12, %v13077_v1  ;;  %v9449_v61 = vrot.slane %v13093_v29, %v13077_v1  ;;  %v9473_v27 = vrot.slane %v13097_v63, %v13077_v1 }
 0x34f   : > { %v9326_v42 = vpop.permute.xlu1 %4511  ;;  %v9328_v34 = vpop.permute.xlu0 %4513  ;;  %v9521_v0 = vrot.slane %v13105_v14, %v13077_v1  ;;  %v9545_v59 = vrot.slane %v13109_v13, %v13077_v1  ;;  %v9569_v50 = vrot.slane %v13113_v31, %v13077_v1  ;;  %v9593_v2 = vrot.slane %v13117_v28, %v13077_v1 }
 0x350   : > { %13071 = vst [vmem:[#allocation234_spill] sm:$0xff] %v9326_v42  ;;  %13072 = vst [vmem:[#allocation235_spill] sm:$0xff] %v9328_v34  ;;  %v9465_v45 = vrot.slane %v9449_v61, %v7469_v49  ;;  %v9489_v62 = vrot.slane %v9473_v27, %v7469_v49 }
 0x351   : > { %4755 = vrot.lane.b32.xlu1 %v3075_v54, %s7076_s5  ;;  %4757 = vrot.lane.b32.xlu0 %v3173_v10, %s7076_s5  ;;  %v3467_v54 = vcombine.high %v9179_v3, %v12976_v35  ;;  %v3565_v10 = vcombine.high %v9182_v38, %v12976_v35  ;;  %v3761_v3 = vcombine.high %v9198_v11, %v12976_v35 }
 0x352   : > { %v9372_v38 = vrot.slane %v9358_v5, %v7469_v49  ;;  %v3859_v11 = vcombine.high %v9209_v41, %v12976_v35  ;;  %v13086_v41 = vld [vmem:[#allocation21_spill] sm:$0xff]  ;;  %v9537_v21 = vrot.slane %v9521_v0, %v7469_v49  ;;  %v9585_v32 = vrot.slane %v9569_v50, %v7469_v49 }
 0x353   : > { %v9336_v22 = vpop.permute.xlu1 %4515  ;;  %v9338_v25 = vpop.permute.xlu0 %4581  ;;  %v9405_v53 = vrot.slane %v13086_v41, %v13077_v1 }
 0x354   : > { %13073 = vst [vmem:[#allocation236_spill] sm:$0xff] %v9336_v22  ;;  %13074 = vst [vmem:[#allocation237_spill] sm:$0xff] %v9338_v25  ;;  %v9561_v22 = vrot.slane %v9545_v59, %v7469_v49 }
 0x355   : > { %4759 = vrot.lane.b32.xlu1 %v3271_v33, %s7076_s5  ;;  %4761 = vrot.lane.b32.xlu0 %v3369_v46, %s7076_s5  ;;  %v9421_v52 = vrot.slane %v9405_v53, %v7469_v49 }
 0x357   : > { %v9346_v40 = vpop.permute.xlu1 %4583  ;;  %v9348_v43 = vpop.permute.xlu0 %4585 }
 0x358   : > { %13075 = vst [vmem:[#allocation238_spill] sm:$0xff] %v9346_v40  ;;  %13076 = vst [vmem:[#allocation239_spill] sm:$0xff] %v9348_v43 }
 0x359   : > { %4763 = vrot.lane.b32.xlu1 %v3467_v54, %s7076_s5  ;;  %4765 = vrot.lane.b32.xlu0 %v3565_v10, %s7076_s5  ;;  %v13081_v54 = vld [vmem:[#allocation14_spill] sm:$0xff] }
 0x35a   : > { %v9376_v10 = vrot.slane %v13081_v54, %v13077_v1 }
 0x35b   : > { %v9360_v33 = vpop.permute.xlu1 %4587  ;;  %v9362_v46 = vpop.permute.xlu0 %4589 }
 0x35c   : > { %13079 = vst [vmem:[#allocation240_spill] sm:$0xff] %v9360_v33  ;;  %13080 = vst [vmem:[#allocation241_spill] sm:$0xff] %v9362_v46  ;;  %v13089_v33 = vld [vmem:[#allocation23_spill] sm:$0xff] }
 0x35d   : > { %4767 = vrot.lane.b32.xlu1 %v3663_v24, %s7076_s5  ;;  %4769 = vrot.lane.b32.xlu0 %v3761_v3, %s7076_s5  ;;  %v9393_v24 = vrot.slane %v9376_v10, %v7469_v49  ;;  %v9397_v3 = vrot.slane %v9380_v60, %v7469_v49  ;;  %v9425_v43 = vrot.slane %v13089_v33, %v13077_v1 }
 0x35f   : > { %v9382_v26 = vpop.permute.xlu1 %4591  ;;  %v9384_v9 = vpop.permute.xlu0 %4593  ;;  %v9441_v55 = vrot.slane %v9425_v43, %v7469_v49 }
 0x360   : > { %13083 = vst [vmem:[#allocation242_spill] sm:$0xff] %v9382_v26  ;;  %13084 = vst [vmem:[#allocation243_spill] sm:$0xff] %v9384_v9  ;;  %v9401_v9 = vrot.slane %v13085_v48, %v13077_v1 }
 0x361   : > { %4771 = vrot.lane.b32.xlu1 %v3859_v11, %s7076_s5  ;;  %4837 = vrot.lane.b32.xlu0 %v9372_v38, %s7077_s9 }
 0x362   : > { %v9417_v56 = vrot.slane %v9401_v9, %v7469_v49 }
 0x363   : > { %v9407_v11 = vpop.permute.xlu1 %4595  ;;  %v9409_v51 = vpop.permute.xlu0 %4597 }
 0x364   : > { %13087 = vst [vmem:[#allocation244_spill] sm:$0xff] %v9407_v11  ;;  %13088 = vst [vmem:[#allocation245_spill] sm:$0xff] %v9409_v51  ;;  %v13090_v11 = vld [vmem:[#allocation25_spill] sm:$0xff] }
 0x365   : > { %4839 = vrot.lane.b32.xlu1 %v9393_v24, %s7077_s9  ;;  %4841 = vrot.lane.b32.xlu0 %v9397_v3, %s7077_s9  ;;  %v9429_v42 = vrot.slane %v13090_v11, %v13077_v1 }
 0x367   : > { %v9431_v7 = vpop.permute.xlu1 %4599  ;;  %v9433_v37 = vpop.permute.xlu0 %4601  ;;  %v9445_v23 = vrot.slane %v9429_v42, %v7469_v49 }
 0x368   : > { %13091 = vst [vmem:[#allocation246_spill] sm:$0xff] %v9431_v7  ;;  %13092 = vst [vmem:[#allocation247_spill] sm:$0xff] %v9433_v37  ;;  %v13094_v37 = vld [vmem:[#allocation30_spill] sm:$0xff] }
 0x369   : > { %4843 = vrot.lane.b32.xlu1 %v9417_v56, %s7077_s9  ;;  %4845 = vrot.lane.b32.xlu0 %v9421_v52, %s7077_s9  ;;  %v9453_v44 = vrot.slane %v13094_v37, %v13077_v1  ;;  %v13101_v7 = vld [vmem:[#allocation38_spill] sm:$0xff] }
 0x36a   : > { %v9497_v15 = vrot.slane %v13101_v7, %v13077_v1 }
 0x36b   : > { %v9455_v30 = vpop.permute.xlu1 %4603  ;;  %v9457_v17 = vpop.permute.xlu0 %4605  ;;  %v9469_v18 = vrot.slane %v9453_v44, %v7469_v49 }
 0x36c   : > { %13095 = vst [vmem:[#allocation248_spill] sm:$0xff] %v9455_v30  ;;  %13096 = vst [vmem:[#allocation249_spill] sm:$0xff] %v9457_v17  ;;  %v13098_v30 = vld [vmem:[#allocation35_spill] sm:$0xff]  ;;  %v9513_v51 = vrot.slane %v9497_v15, %v7469_v49 }
 0x36d   : > { %4847 = vrot.lane.b32.xlu1 %v9441_v55, %s7077_s9  ;;  %4849 = vrot.lane.b32.xlu0 %v9445_v23, %s7077_s9  ;;  %v9477_v16 = vrot.slane %v13098_v30, %v13077_v1 }
 0x36f   : > { %v9479_v17 = vpop.permute.xlu1 %4607  ;;  %v9481_v6 = vpop.permute.xlu0 %4609  ;;  %v9493_v57 = vrot.slane %v9477_v16, %v7469_v49 }
 0x370   : > { %13099 = vst [vmem:[#allocation250_spill] sm:$0xff] %v9479_v17  ;;  %13100 = vst [vmem:[#allocation251_spill] sm:$0xff] %v9481_v6  ;;  %v13102_v6 = vld [vmem:[#allocation40_spill] sm:$0xff] }
 0x371   : > { %4851 = vrot.lane.b32.xlu1 %v9465_v45, %s7077_s9  ;;  %4853 = vrot.lane.b32.xlu0 %v9469_v18, %s7077_s9  ;;  %v9501_v17 = vrot.slane %v13102_v6, %v13077_v1 }
 0x373   : > { %v9503_v19 = vpop.permute.xlu1 %4611  ;;  %v9505_v8 = vpop.permute.xlu0 %4613  ;;  %v9517_v20 = vrot.slane %v9501_v17, %v7469_v49 }
 0x374   : > { %13103 = vst [vmem:[#allocation252_spill] sm:$0xff] %v9503_v19  ;;  %13104 = vst [vmem:[#allocation253_spill] sm:$0xff] %v9505_v8  ;;  %v13106_v19 = vld [vmem:[#allocation45_spill] sm:$0xff] }
 0x375   : > { %4855 = vrot.lane.b32.xlu1 %v9489_v62, %s7077_s9  ;;  %4857 = vrot.lane.b32.xlu0 %v9493_v57, %s7077_s9  ;;  %v9525_v8 = vrot.slane %v13106_v19, %v13077_v1 }
 0x377   : > { %v9527_v26 = vpop.permute.xlu1 %4615  ;;  %v9529_v39 = vpop.permute.xlu0 %4617  ;;  %v9541_v46 = vrot.slane %v9525_v8, %v7469_v49 }
 0x378   : > { %13107 = vst [vmem:[#allocation254_spill] sm:$0xff] %v9527_v26  ;;  %13108 = vst [vmem:[#allocation255_spill] sm:$0xff] %v9529_v39  ;;  %v13110_v39 = vld [vmem:[#allocation50_spill] sm:$0xff] }
 0x379   : > { %4859 = vrot.lane.b32.xlu1 %v9513_v51, %s7077_s9  ;;  %4861 = vrot.lane.b32.xlu0 %v9517_v20, %s7077_s9  ;;  %v9549_v26 = vrot.slane %v13110_v39, %v13077_v1  ;;  %v9609_v39 = vrot.slane %v9593_v2, %v7469_v49 }
 0x37b   : > { %v9551_v40 = vpop.permute.xlu1 %4619  ;;  %v9553_v25 = vpop.permute.xlu0 %4621  ;;  %v9565_v58 = vrot.slane %v9549_v26, %v7469_v49 }
 0x37c   : > { %13111 = vst [vmem:[#allocation256_spill] sm:$0xff] %v9551_v40  ;;  %13112 = vst [vmem:[#allocation257_spill] sm:$0xff] %v9553_v25  ;;  %v13114_v40 = vld [vmem:[#allocation58_spill] sm:$0xff] }
 0x37d   : > { %4863 = vrot.lane.b32.xlu1 %v9537_v21, %s7077_s9  ;;  %4865 = vrot.lane.b32.xlu0 %v9541_v46, %s7077_s9  ;;  %v9573_v25 = vrot.slane %v13114_v40, %v13077_v1 }
 0x37f   : > { %v9575_v47 = vpop.permute.xlu1 %4623  ;;  %v9577_v36 = vpop.permute.xlu0 %4625  ;;  %v9589_v34 = vrot.slane %v9573_v25, %v7469_v49 }
 0x380   : > { %13115 = vst [vmem:[#allocation258_spill] sm:$0xff] %v9575_v47  ;;  %13116 = vst [vmem:[#allocation259_spill] sm:$0xff] %v9577_v36  ;;  %v13118_v36 = vld [vmem:[#allocation66_spill] sm:$0xff] }
 0x381   : > { %4867 = vrot.lane.b32.xlu1 %v9561_v22, %s7077_s9  ;;  %4869 = vrot.lane.b32.xlu0 %v9565_v58, %s7077_s9  ;;  %v9597_v47 = vrot.slane %v13118_v36, %v13077_v1  ;;  %v13121_v36 = vld [vmem:[#allocation71_spill] sm:$0xff] }
 0x382   : > { %v9617_v13 = vrot.slane %v13121_v36, %v13077_v1 }
 0x383   : > { %v9599_v40 = vpop.permute.xlu1 %4627  ;;  %v9601_v31 = vpop.permute.xlu0 %4629  ;;  %v9613_v28 = vrot.slane %v9597_v47, %v7469_v49 }
 0x384   : > { %13119 = vst [vmem:[#allocation260_spill] sm:$0xff] %v9599_v40  ;;  %13120 = vst [vmem:[#allocation261_spill] sm:$0xff] %v9601_v31  ;;  %v13122_v40 = vld [vmem:[#allocation74_spill] sm:$0xff]  ;;  %v9633_v6 = vrot.slane %v9617_v13, %v7469_v49 }
 0x385   : > { %4871 = vrot.lane.b32.xlu1 %v9585_v32, %s7077_s9  ;;  %4873 = vrot.lane.b32.xlu0 %v9589_v34, %s7077_s9  ;;  %v9621_v31 = vrot.slane %v13122_v40, %v13077_v1  ;;  %v13125_v40 = vld [vmem:[#allocation78_spill] sm:$0xff] }
 0x386   : > { %v9641_v7 = vrot.slane %v13125_v40, %v13077_v1 }
 0x387   : > { %v9623_v19 = vpop.permute.xlu1 %4631  ;;  %v9625_v14 = vpop.permute.xlu0 %4633  ;;  %v9637_v36 = vrot.slane %v9621_v31, %v7469_v49 }
 0x388   : > { %13123 = vst [vmem:[#allocation262_spill] sm:$0xff] %v9623_v19  ;;  %13124 = vst [vmem:[#allocation263_spill] sm:$0xff] %v9625_v14  ;;  %v13127_v14 = vld [vmem:[#allocation79_spill] sm:$0xff]  ;;  %v9657_v37 = vrot.slane %v9641_v7, %v7469_v49 }
 0x389   : > { %4875 = vrot.lane.b32.xlu1 %v9609_v39, %s7077_s9  ;;  %4877 = vrot.lane.b32.xlu0 %v9613_v28, %s7077_s9  ;;  %13126 = vst [vmem:[#allocation264_spill] sm:$0xff] %v9641_v7  ;;  %v9645_v19 = vrot.slane %v13127_v14, %v13077_v1  ;;  %v13131_v14 = vld [vmem:[#allocation80_spill] sm:$0xff] }
 0x38a   : > { %v9665_v29 = vrot.slane %v13131_v14, %v13077_v1 }
 0x38b   : > { %13128 = vst [vmem:[#allocation265_spill] sm:$0xff] %v9645_v19  ;;  %v9647_v30 = vpop.permute.xlu1 %4635  ;;  %v9649_v63 = vpop.permute.xlu0 %4637  ;;  %v9661_v40 = vrot.slane %v9645_v19, %v7469_v49 }
 0x38c   : > { %13129 = vst [vmem:[#allocation266_spill] sm:$0xff] %v9647_v30  ;;  %13130 = vst [vmem:[#allocation267_spill] sm:$0xff] %v9649_v63  ;;  %v13133_v30 = vld [vmem:[#allocation81_spill] sm:$0xff]  ;;  %v9681_v41 = vrot.slane %v9665_v29, %v7469_v49 }
 0x38d   : > { %4879 = vrot.lane.b32.xlu1 %v9633_v6, %s7077_s9  ;;  %4881 = vrot.lane.b32.xlu0 %v9637_v36, %s7077_s9  ;;  %13132 = vst [vmem:[#allocation268_spill] sm:$0xff] %v9665_v29  ;;  %v9669_v63 = vrot.slane %v13133_v30, %v13077_v1  ;;  %v13137_v30 = vld [vmem:[#allocation82_spill] sm:$0xff] }
 0x38e   : > { %v9689_v48 = vrot.slane %v13137_v30, %v13077_v1 }
 0x38f   : > { %13134 = vst [vmem:[#allocation269_spill] sm:$0xff] %v9669_v63  ;;  %v9671_v11 = vpop.permute.xlu1 %4639  ;;  %v9673_v33 = vpop.permute.xlu0 %4641  ;;  %v9685_v14 = vrot.slane %v9669_v63, %v7469_v49 }
 0x390   : > { %13135 = vst [vmem:[#allocation270_spill] sm:$0xff] %v9671_v11  ;;  %13136 = vst [vmem:[#allocation271_spill] sm:$0xff] %v9673_v33  ;;  %v13139_v11 = vld [vmem:[#allocation83_spill] sm:$0xff]  ;;  %v9705_v4 = vrot.slane %v9689_v48, %v7469_v49 }
 0x391   : > { %4883 = vrot.lane.b32.xlu1 %v9657_v37, %s7077_s9  ;;  %4885 = vrot.lane.b32.xlu0 %v9661_v40, %s7077_s9  ;;  %13138 = vst [vmem:[#allocation272_spill] sm:$0xff] %v9689_v48  ;;  %v9693_v33 = vrot.slane %v13139_v11, %v13077_v1  ;;  %v13143_v11 = vld [vmem:[#allocation84_spill] sm:$0xff] }
 0x392   : > { %v9713_v63 = vrot.slane %v13143_v11, %v13077_v1 }
 0x393   : > { %13140 = vst [vmem:[#allocation273_spill] sm:$0xff] %v9693_v33  ;;  %v9695_v12 = vpop.permute.xlu1 %4643  ;;  %v9697_v54 = vpop.permute.xlu0 %4709  ;;  %v9709_v30 = vrot.slane %v9693_v33, %v7469_v49 }
 0x394   : > { %13141 = vst [vmem:[#allocation274_spill] sm:$0xff] %v9695_v12  ;;  %13142 = vst [vmem:[#allocation275_spill] sm:$0xff] %v9697_v54  ;;  %v13145_v54 = vld [vmem:[#allocation85_spill] sm:$0xff]  ;;  %v9729_v33 = vrot.slane %v9713_v63, %v7469_v49 }
 0x395   : > { %4887 = vrot.lane.b32.xlu1 %v9681_v41, %s7077_s9  ;;  %4889 = vrot.lane.b32.xlu0 %v9685_v14, %s7077_s9  ;;  %13144 = vst [vmem:[#allocation276_spill] sm:$0xff] %v9713_v63  ;;  %v9717_v12 = vrot.slane %v13145_v54, %v13077_v1  ;;  %v13149_v54 = vld [vmem:[#allocation86_spill] sm:$0xff] }
 0x396   : > { %v9737_v48 = vrot.slane %v13149_v54, %v13077_v1  ;;  %v867_v54 = vcombine.high %v9372_v38, %v12976_v35  ;;  %v965_v1 = vcombine.high %v9393_v24, %v12976_v35 }
 0x397   : > { %13146 = vst [vmem:[#allocation277_spill] sm:$0xff] %v9717_v12  ;;  %v9719_v29 = vpop.permute.xlu1 %4711  ;;  %v9721_v19 = vpop.permute.xlu0 %4713  ;;  %v9733_v11 = vrot.slane %v9717_v12, %v7469_v49 }
 0x398   : > { %13147 = vst [vmem:[#allocation278_spill] sm:$0xff] %v9719_v29  ;;  %13148 = vst [vmem:[#allocation279_spill] sm:$0xff] %v9721_v19  ;;  %v9749_v63 = vrot.slane %v9737_v48, %v7469_v49 }
 0x399   : > { %4891 = vrot.lane.b32.xlu1 %v9705_v4, %s7077_s9  ;;  %4893 = vrot.lane.b32.xlu0 %v9709_v30, %s7077_s9 }
 0x39b   : > { %v9739_v29 = vpop.permute.xlu1 %4715  ;;  %v9741_v19 = vpop.permute.xlu0 %4717 }
 0x39c   : > { %13150 = vst [vmem:[#allocation280_spill] sm:$0xff] %v9739_v29  ;;  %13151 = vst [vmem:[#allocation281_spill] sm:$0xff] %v9741_v19 }
 0x39d   : > { %4895 = vrot.lane.b32.xlu1 %v9729_v33, %s7077_s9  ;;  %4897 = vrot.lane.b32.xlu0 %v9733_v11, %s7077_s9 }
 0x39f   : > { %v9751_v12 = vpop.permute.xlu1 %4719  ;;  %v9753_v7 = vpop.permute.xlu0 %4721 }
 0x3a0   : > { %13152 = vst [vmem:[#allocation282_spill] sm:$0xff] %v9751_v12  ;;  %13153 = vst [vmem:[#allocation283_spill] sm:$0xff] %v9753_v7  ;;  %v1063_v12 = vcombine.high %v9397_v3, %v12976_v35 }
 0x3a1   : > { %4899 = vrot.lane.b32.xlu1 %v9749_v63, %s7077_s9  ;;  %4965 = vrot.lane.b32.xlu0 %v867_v54, %s7078_s11  ;;  %v1161_v54 = vcombine.high %v9417_v56, %v12976_v35 }
 0x3a3   : > { %v9760_v29 = vpop.permute.xlu1 %4723  ;;  %v9762_v19 = vpop.permute.xlu0 %4725 }
 0x3a4   : > { %13154 = vst [vmem:[#allocation284_spill] sm:$0xff] %v9760_v29  ;;  %13155 = vst [vmem:[#allocation285_spill] sm:$0xff] %v9762_v19  ;;  %v1259_v29 = vcombine.high %v9421_v52, %v12976_v35 }
 0x3a5   : > { %4967 = vrot.lane.b32.xlu1 %v965_v1, %s7078_s11  ;;  %4969 = vrot.lane.b32.xlu0 %v1063_v12, %s7078_s11  ;;  %v1357_v12 = vcombine.high %v9441_v55, %v12976_v35  ;;  %v1455_v1 = vcombine.high %v9445_v23, %v12976_v35 }
 0x3a7   : > { %v9770_v38 = vpop.permute.xlu1 %4727  ;;  %v9772_v7 = vpop.permute.xlu0 %4729 }
 0x3a8   : > { %13156 = vst [vmem:[#allocation286_spill] sm:$0xff] %v9770_v38  ;;  %13157 = vst [vmem:[#allocation287_spill] sm:$0xff] %v9772_v7 }
 0x3a9   : > { %4971 = vrot.lane.b32.xlu1 %v1161_v54, %s7078_s11  ;;  %4973 = vrot.lane.b32.xlu0 %v1259_v29, %s7078_s11  ;;  %v1553_v29 = vcombine.high %v9465_v45, %v12976_v35  ;;  %v1651_v54 = vcombine.high %v9469_v18, %v12976_v35 }
 0x3ab   : > { %v9780_v24 = vpop.permute.xlu1 %4731  ;;  %v9782_v3 = vpop.permute.xlu0 %4733 }
 0x3ac   : > { %13158 = vst [vmem:[#allocation288_spill] sm:$0xff] %v9780_v24  ;;  %13159 = vst [vmem:[#allocation289_spill] sm:$0xff] %v9782_v3 }
 0x3ad   : > { %4975 = vrot.lane.b32.xlu1 %v1357_v12, %s7078_s11  ;;  %4977 = vrot.lane.b32.xlu0 %v1455_v1, %s7078_s11  ;;  %v1749_v12 = vcombine.high %v9489_v62, %v12976_v35  ;;  %v1847_v1 = vcombine.high %v9493_v57, %v12976_v35 }
 0x3af   : > { %v9790_v56 = vpop.permute.xlu1 %4735  ;;  %v9792_v52 = vpop.permute.xlu0 %4737 }
 0x3b0   : > { %13160 = vst [vmem:[#allocation290_spill] sm:$0xff] %v9790_v56  ;;  %13161 = vst [vmem:[#allocation291_spill] sm:$0xff] %v9792_v52 }
 0x3b1   : > { %4979 = vrot.lane.b32.xlu1 %v1553_v29, %s7078_s11  ;;  %4981 = vrot.lane.b32.xlu0 %v1651_v54, %s7078_s11  ;;  %v1945_v29 = vcombine.high %v9513_v51, %v12976_v35  ;;  %v2043_v54 = vcombine.high %v9517_v20, %v12976_v35 }
 0x3b3   : > { %v9800_v55 = vpop.permute.xlu1 %4739  ;;  %v9802_v23 = vpop.permute.xlu0 %4741 }
 0x3b4   : > { %13162 = vst [vmem:[#allocation292_spill] sm:$0xff] %v9800_v55  ;;  %13163 = vst [vmem:[#allocation293_spill] sm:$0xff] %v9802_v23  ;;  %v13281_v23 = vld [vmem:[#allocation45_spill] sm:$0xff] }
 0x3b5   : > { %4983 = vrot.lane.b32.xlu1 %v1749_v12, %s7078_s11  ;;  %4985 = vrot.lane.b32.xlu0 %v1847_v1, %s7078_s11  ;;  %v2141_v12 = vcombine.high %v9537_v21, %v12976_v35  ;;  %v2239_v1 = vcombine.high %v9541_v46, %v12976_v35 }
 0x3b7   : > { %v9810_v45 = vpop.permute.xlu1 %4743  ;;  %v9812_v18 = vpop.permute.xlu0 %4745 }
 0x3b8   : > { %13164 = vst [vmem:[#allocation294_spill] sm:$0xff] %v9810_v45  ;;  %13165 = vst [vmem:[#allocation295_spill] sm:$0xff] %v9812_v18 }
 0x3b9   : > { %4987 = vrot.lane.b32.xlu1 %v1945_v29, %s7078_s11  ;;  %4989 = vrot.lane.b32.xlu0 %v2043_v54, %s7078_s11  ;;  %v2337_v29 = vcombine.high %v9561_v22, %v12976_v35  ;;  %v2435_v54 = vcombine.high %v9565_v58, %v12976_v35 }
 0x3bb   : > { %v9820_v62 = vpop.permute.xlu1 %4747  ;;  %v9822_v57 = vpop.permute.xlu0 %4749 }
 0x3bc   : > { %13166 = vst [vmem:[#allocation296_spill] sm:$0xff] %v9820_v62  ;;  %13167 = vst [vmem:[#allocation297_spill] sm:$0xff] %v9822_v57 }
 0x3bd   : > { %4991 = vrot.lane.b32.xlu1 %v2141_v12, %s7078_s11  ;;  %4993 = vrot.lane.b32.xlu0 %v2239_v1, %s7078_s11  ;;  %v2533_v12 = vcombine.high %v9585_v32, %v12976_v35  ;;  %v2631_v1 = vcombine.high %v9589_v34, %v12976_v35 }
 0x3bf   : > { %v9830_v51 = vpop.permute.xlu1 %4751  ;;  %v9832_v20 = vpop.permute.xlu0 %4753 }
 0x3c0   : > { %13168 = vst [vmem:[#allocation298_spill] sm:$0xff] %v9830_v51  ;;  %13169 = vst [vmem:[#allocation299_spill] sm:$0xff] %v9832_v20 }
 0x3c1   : > { %4995 = vrot.lane.b32.xlu1 %v2337_v29, %s7078_s11  ;;  %4997 = vrot.lane.b32.xlu0 %v2435_v54, %s7078_s11  ;;  %v2729_v29 = vcombine.high %v9609_v39, %v12976_v35  ;;  %v2827_v54 = vcombine.high %v9613_v28, %v12976_v35 }
 0x3c3   : > { %v9840_v21 = vpop.permute.xlu1 %4755  ;;  %v9842_v46 = vpop.permute.xlu0 %4757 }
 0x3c4   : > { %13170 = vst [vmem:[#allocation300_spill] sm:$0xff] %v9840_v21  ;;  %13171 = vst [vmem:[#allocation301_spill] sm:$0xff] %v9842_v46 }
 0x3c5   : > { %4999 = vrot.lane.b32.xlu1 %v2533_v12, %s7078_s11  ;;  %5001 = vrot.lane.b32.xlu0 %v2631_v1, %s7078_s11  ;;  %v2925_v12 = vcombine.high %v9633_v6, %v12976_v35  ;;  %v3023_v1 = vcombine.high %v9637_v36, %v12976_v35 }
 0x3c7   : > { %v9850_v22 = vpop.permute.xlu1 %4759  ;;  %v9852_v58 = vpop.permute.xlu0 %4761 }
 0x3c8   : > { %13172 = vst [vmem:[#allocation302_spill] sm:$0xff] %v9850_v22  ;;  %13173 = vst [vmem:[#allocation303_spill] sm:$0xff] %v9852_v58 }
 0x3c9   : > { %5003 = vrot.lane.b32.xlu1 %v2729_v29, %s7078_s11  ;;  %5005 = vrot.lane.b32.xlu0 %v2827_v54, %s7078_s11  ;;  %v3121_v29 = vcombine.high %v9657_v37, %v12976_v35  ;;  %v3219_v54 = vcombine.high %v9661_v40, %v12976_v35 }
 0x3cb   : > { %v9860_v32 = vpop.permute.xlu1 %4763  ;;  %v9862_v34 = vpop.permute.xlu0 %4765 }
 0x3cc   : > { %13174 = vst [vmem:[#allocation304_spill] sm:$0xff] %v9860_v32  ;;  %13175 = vst [vmem:[#allocation305_spill] sm:$0xff] %v9862_v34 }
 0x3cd   : > { %5007 = vrot.lane.b32.xlu1 %v2925_v12, %s7078_s11  ;;  %5009 = vrot.lane.b32.xlu0 %v3023_v1, %s7078_s11  ;;  %v3317_v12 = vcombine.high %v9681_v41, %v12976_v35  ;;  %v3415_v1 = vcombine.high %v9685_v14, %v12976_v35  ;;  %v837_v14 = vcombine.high %v9358_v5, %v12976_v35 }
 0x3ce   : > { %v1033_v5 = vcombine.high %v9380_v60, %v12976_v35  ;;  %v1229_v60 = vcombine.high %v9405_v53, %v12976_v35  ;;  %v1425_v53 = vcombine.high %v9429_v42, %v12976_v35  ;;  %v1621_v42 = vcombine.high %v9453_v44, %v12976_v35 }
 0x3cf   : > { %v9870_v39 = vpop.permute.xlu1 %4767  ;;  %v9872_v28 = vpop.permute.xlu0 %4769  ;;  %v9923_v32 = vrot.slane %v837_v14, %v7469_v49  ;;  %v1817_v44 = vcombine.high %v9477_v16, %v12976_v35  ;;  %v2013_v16 = vcombine.high %v9501_v17, %v12976_v35  ;;  %v2209_v17 = vcombine.high %v9525_v8, %v12976_v35 }
 0x3d0   : > { %13176 = vst [vmem:[#allocation306_spill] sm:$0xff] %v9870_v39  ;;  %13177 = vst [vmem:[#allocation307_spill] sm:$0xff] %v9872_v28  ;;  %v9940_v14 = vrot.slane %v1033_v5, %v7469_v49  ;;  %v9958_v5 = vrot.slane %v1229_v60, %v7469_v49  ;;  %v9976_v60 = vrot.slane %v1425_v53, %v7469_v49 }
 0x3d1   : > { %5011 = vrot.lane.b32.xlu1 %v3121_v29, %s7078_s11  ;;  %5013 = vrot.lane.b32.xlu0 %v3219_v54, %s7078_s11  ;;  %v3513_v29 = vcombine.high %v9705_v4, %v12976_v35  ;;  %v3611_v54 = vcombine.high %v9709_v30, %v12976_v35  ;;  %v3807_v4 = vcombine.high %v9733_v11, %v12976_v35 }
 0x3d2   : > { %v935_v30 = vcombine.high %v9376_v10, %v12976_v35  ;;  %v1131_v10 = vcombine.high %v9401_v9, %v12976_v35  ;;  %v1327_v9 = vcombine.high %v9425_v43, %v12976_v35  ;;  %v1523_v43 = vcombine.high %v9449_v61, %v12976_v35 }
 0x3d3   : > { %v9880_v6 = vpop.permute.xlu1 %4771  ;;  %v9882_v36 = vpop.permute.xlu0 %4837  ;;  %v1719_v61 = vcombine.high %v9473_v27, %v12976_v35  ;;  %v9994_v53 = vrot.slane %v1621_v42, %v7469_v49  ;;  %v1915_v27 = vcombine.high %v9497_v15, %v12976_v35  ;;  %v10012_v42 = vrot.slane %v1817_v44, %v7469_v49 }
 0x3d4   : > { %13178 = vst [vmem:[#allocation308_spill] sm:$0xff] %v9880_v6  ;;  %13179 = vst [vmem:[#allocation309_spill] sm:$0xff] %v9882_v36  ;;  %v2111_v15 = vcombine.high %v9521_v0, %v12976_v35  ;;  %v10030_v44 = vrot.slane %v2013_v16, %v7469_v49  ;;  %v2307_v0 = vcombine.high %v9545_v59, %v12976_v35 }
 0x3d5   : > { %5015 = vrot.lane.b32.xlu1 %v3317_v12, %s7078_s11  ;;  %5017 = vrot.lane.b32.xlu0 %v3415_v1, %s7078_s11  ;;  %v3709_v1 = vcombine.high %v9729_v33, %v12976_v35  ;;  %v3905_v33 = vcombine.high %v9749_v63, %v12976_v35  ;;  %v9937_v63 = vrot.slane %v935_v30, %v7469_v49 }
 0x3d6   : > { %v9955_v30 = vrot.slane %v1131_v10, %v7469_v49  ;;  %v9973_v10 = vrot.slane %v1327_v9, %v7469_v49  ;;  %v9991_v9 = vrot.slane %v1523_v43, %v7469_v49  ;;  %v10009_v43 = vrot.slane %v1719_v61, %v7469_v49 }
 0x3d7   : > { %v9890_v37 = vpop.permute.xlu1 %4839  ;;  %v9892_v40 = vpop.permute.xlu0 %4841  ;;  %v10027_v61 = vrot.slane %v1915_v27, %v7469_v49  ;;  %v2405_v8 = vcombine.high %v9549_v26, %v12976_v35  ;;  %v10045_v27 = vrot.slane %v2111_v15, %v7469_v49  ;;  %v10048_v16 = vrot.slane %v2209_v17, %v7469_v49 }
 0x3d8   : > { %13180 = vst [vmem:[#allocation310_spill] sm:$0xff] %v9890_v37  ;;  %13181 = vst [vmem:[#allocation311_spill] sm:$0xff] %v9892_v40  ;;  %v2503_v59 = vcombine.high %v9569_v50, %v12976_v35  ;;  %v2601_v26 = vcombine.high %v9573_v25, %v12976_v35  ;;  %v10063_v15 = vrot.slane %v2307_v0, %v7469_v49 }
 0x3d9   : > { %5019 = vrot.lane.b32.xlu1 %v3513_v29, %s7078_s11  ;;  %5021 = vrot.lane.b32.xlu0 %v3611_v54, %s7078_s11  ;;  %v10066_v17 = vrot.slane %v2405_v8, %v7469_v49  ;;  %v2699_v50 = vcombine.high %v9593_v2, %v12976_v35  ;;  %v2797_v25 = vcombine.high %v9597_v47, %v12976_v35 }
 0x3da   : > { %v10081_v0 = vrot.slane %v2503_v59, %v7469_v49  ;;  %v10084_v8 = vrot.slane %v2601_v26, %v7469_v49  ;;  %v2895_v2 = vcombine.high %v9617_v13, %v12976_v35  ;;  %v2993_v47 = vcombine.high %v9621_v31, %v12976_v35  ;;  %v13206_v13 = vld [vmem:[#allocation264_spill] sm:$0xff]  ;;  %v13207_v31 = vld [vmem:[#allocation265_spill] sm:$0xff] }
 0x3db   : > { %v9902_v41 = vpop.permute.xlu1 %4843  ;;  %v9904_v12 = vpop.permute.xlu0 %4845  ;;  %v10099_v59 = vrot.slane %v2699_v50, %v7469_v49  ;;  %v10102_v26 = vrot.slane %v2797_v25, %v7469_v49  ;;  %v3091_v7 = vcombine.high %v13206_v13, %v12976_v35  ;;  %v13210_v13 = vld [vmem:[#allocation268_spill] sm:$0xff]  ;;  %v966_v57 = vcombine.high %v9937_v63, %v12976_v35 }
 0x3dc   : > { %13182 = vst [vmem:[#allocation312_spill] sm:$0xff] %v9902_v41  ;;  %13183 = vst [vmem:[#allocation313_spill] sm:$0xff] %v9904_v12  ;;  %v10117_v50 = vrot.slane %v2895_v2, %v7469_v49  ;;  %v10120_v25 = vrot.slane %v2993_v47, %v7469_v49  ;;  %v3287_v41 = vcombine.high %v13210_v13, %v12976_v35  ;;  %v13214_v13 = vld [vmem:[#allocation272_spill] sm:$0xff] }
 0x3dd   : > { %5023 = vrot.lane.b32.xlu1 %v3709_v1, %s7078_s11  ;;  %5025 = vrot.lane.b32.xlu0 %v3807_v4, %s7078_s11  ;;  %v10135_v2 = vrot.slane %v3091_v7, %v7469_v49 }
 0x3de   : > { %v10153_v7 = vrot.slane %v3287_v41, %v7469_v49 }
 0x3df   : > { %v9916_v29 = vpop.permute.xlu1 %4847  ;;  %v9918_v54 = vpop.permute.xlu0 %4849 }
 0x3e0   : > { %13184 = vst [vmem:[#allocation314_spill] sm:$0xff] %v9916_v29  ;;  %13185 = vst [vmem:[#allocation315_spill] sm:$0xff] %v9918_v54 }
 0x3e1   : > { %5027 = vrot.lane.b32.xlu1 %v3905_v33, %s7078_s11  ;;  %5093 = vrot.lane.b32.xlu0 %v9923_v32, %s7079_s24  ;;  %s6655_s11 = scalar_lea.sflag [#allocation4], %s7280_s14 }
 0x3e3   : > { %v9932_v11 = vpop.permute.xlu1 %4851  ;;  %v9934_v1 = vpop.permute.xlu0 %4853 }
 0x3e4   : > { %13186 = vst [vmem:[#allocation316_spill] sm:$0xff] %v9932_v11  ;;  %13187 = vst [vmem:[#allocation317_spill] sm:$0xff] %v9934_v1  ;;  %v3189_v11 = vcombine.high %v13207_v31, %v12976_v35  ;;  %v13211_v31 = vld [vmem:[#allocation269_spill] sm:$0xff] }
 0x3e5   : > { %5095 = vrot.lane.b32.xlu1 %v9937_v63, %s7079_s24  ;;  %5097 = vrot.lane.b32.xlu0 %v9940_v14, %s7079_s24 }
 0x3e6   : > { %v10138_v47 = vrot.slane %v3189_v11, %v7469_v49 }
 0x3e7   : > { %v9950_v4 = vpop.permute.xlu1 %4855  ;;  %v9952_v33 = vpop.permute.xlu0 %4857 }
 0x3e8   : > { %13188 = vst [vmem:[#allocation318_spill] sm:$0xff] %v9950_v4  ;;  %13189 = vst [vmem:[#allocation319_spill] sm:$0xff] %v9952_v33 }
 0x3e9   : > { %5099 = vrot.lane.b32.xlu1 %v9955_v30, %s7079_s24  ;;  %5101 = vrot.lane.b32.xlu0 %v9958_v5, %s7079_s24 }
 0x3eb   : > { %v9968_v58 = vpop.permute.xlu1 %4859  ;;  %v9970_v21 = vpop.permute.xlu0 %4861 }
 0x3ec   : > { %13190 = vst [vmem:[#allocation320_spill] sm:$0xff] %v9968_v58  ;;  %13191 = vst [vmem:[#allocation321_spill] sm:$0xff] %v9970_v21 }
 0x3ed   : > { %5103 = vrot.lane.b32.xlu1 %v9973_v10, %s7079_s24  ;;  %5105 = vrot.lane.b32.xlu0 %v9976_v60, %s7079_s24 }
 0x3ef   : > { %v9986_v20 = vpop.permute.xlu1 %4863  ;;  %v9988_v62 = vpop.permute.xlu0 %4865 }
 0x3f0   : > { %13192 = vst [vmem:[#allocation322_spill] sm:$0xff] %v9986_v20  ;;  %13193 = vst [vmem:[#allocation323_spill] sm:$0xff] %v9988_v62 }
 0x3f1   : > { %5107 = vrot.lane.b32.xlu1 %v9991_v9, %s7079_s24  ;;  %5109 = vrot.lane.b32.xlu0 %v9994_v53, %s7079_s24 }
 0x3f3   : > { %v10004_v18 = vpop.permute.xlu1 %4867  ;;  %v10006_v62 = vpop.permute.xlu0 %4869 }
 0x3f4   : > { %13194 = vst [vmem:[#allocation324_spill] sm:$0xff] %v10004_v18  ;;  %13195 = vst [vmem:[#allocation325_spill] sm:$0xff] %v10006_v62 }
 0x3f5   : > { %5111 = vrot.lane.b32.xlu1 %v10009_v43, %s7079_s24  ;;  %5113 = vrot.lane.b32.xlu0 %v10012_v42, %s7079_s24 }
 0x3f7   : > { %v10022_v18 = vpop.permute.xlu1 %4871  ;;  %v10024_v55 = vpop.permute.xlu0 %4873 }
 0x3f8   : > { %13196 = vst [vmem:[#allocation326_spill] sm:$0xff] %v10022_v18  ;;  %13197 = vst [vmem:[#allocation327_spill] sm:$0xff] %v10024_v55 }
 0x3f9   : > { %5115 = vrot.lane.b32.xlu1 %v10027_v61, %s7079_s24  ;;  %5117 = vrot.lane.b32.xlu0 %v10030_v44, %s7079_s24 }
 0x3fb   : > { %v10040_v52 = vpop.permute.xlu1 %4875  ;;  %v10042_v55 = vpop.permute.xlu0 %4877 }
 0x3fc   : > { %13198 = vst [vmem:[#allocation328_spill] sm:$0xff] %v10040_v52  ;;  %13199 = vst [vmem:[#allocation329_spill] sm:$0xff] %v10042_v55 }
 0x3fd   : > { %5119 = vrot.lane.b32.xlu1 %v10045_v27, %s7079_s24  ;;  %5121 = vrot.lane.b32.xlu0 %v10048_v16, %s7079_s24 }
 0x3ff   : > { %v10058_v52 = vpop.permute.xlu1 %4879  ;;  %v10060_v58 = vpop.permute.xlu0 %4881 }
 0x400   : > { %13200 = vst [vmem:[#allocation330_spill] sm:$0xff] %v10058_v52  ;;  %13201 = vst [vmem:[#allocation331_spill] sm:$0xff] %v10060_v58 }
 0x401   : > { %5123 = vrot.lane.b32.xlu1 %v10063_v15, %s7079_s24  ;;  %5125 = vrot.lane.b32.xlu0 %v10066_v17, %s7079_s24 }
 0x403   : > { %v10076_v33 = vpop.permute.xlu1 %4883  ;;  %v10078_v58 = vpop.permute.xlu0 %4885 }
 0x404   : > { %13202 = vst [vmem:[#allocation332_spill] sm:$0xff] %v10076_v33  ;;  %13203 = vst [vmem:[#allocation333_spill] sm:$0xff] %v10078_v58 }
 0x405   : > { %5127 = vrot.lane.b32.xlu1 %v10081_v0, %s7079_s24  ;;  %5129 = vrot.lane.b32.xlu0 %v10084_v8, %s7079_s24 }
 0x407   : > { %v10094_v33 = vpop.permute.xlu1 %4887  ;;  %v10096_v24 = vpop.permute.xlu0 %4889 }
 0x408   : > { %13204 = vst [vmem:[#allocation334_spill] sm:$0xff] %v10094_v33  ;;  %13205 = vst [vmem:[#allocation335_spill] sm:$0xff] %v10096_v24 }
 0x409   : > { %5131 = vrot.lane.b32.xlu1 %v10099_v59, %s7079_s24  ;;  %5133 = vrot.lane.b32.xlu0 %v10102_v26, %s7079_s24 }
 0x40b   : > { %v10112_v54 = vpop.permute.xlu1 %4891  ;;  %v10114_v24 = vpop.permute.xlu0 %4893 }
 0x40c   : > { %13208 = vst [vmem:[#allocation264_spill] sm:$0xff] %v10112_v54  ;;  %13209 = vst [vmem:[#allocation265_spill] sm:$0xff] %v10114_v24  ;;  %v3385_v54 = vcombine.high %v13211_v31, %v12976_v35  ;;  %v3483_v24 = vcombine.high %v13214_v13, %v12976_v35  ;;  %v13215_v31 = vld [vmem:[#allocation273_spill] sm:$0xff]  ;;  %v13218_v13 = vld [vmem:[#allocation276_spill] sm:$0xff] }
 0x40d   : > { %5135 = vrot.lane.b32.xlu1 %v10117_v50, %s7079_s24  ;;  %5137 = vrot.lane.b32.xlu0 %v10120_v25, %s7079_s24  ;;  %v3679_v22 = vcombine.high %v13218_v13, %v12976_v35  ;;  %v3875_v13 = vcombine.high %v9737_v48, %v12976_v35 }
 0x40e   : > { %v10156_v11 = vrot.slane %v3385_v54, %v7469_v49  ;;  %v10171_v41 = vrot.slane %v3483_v24, %v7469_v49 }
 0x40f   : > { %v10130_v40 = vpop.permute.xlu1 %4895  ;;  %v10132_v39 = vpop.permute.xlu0 %4897  ;;  %v10201_v48 = vrot.slane %v3875_v13, %v7469_v49  ;;  %v1064_v13 = vcombine.high %v9940_v14, %v12976_v35 }
 0x410   : > { %13212 = vst [vmem:[#allocation268_spill] sm:$0xff] %v10130_v40  ;;  %13213 = vst [vmem:[#allocation269_spill] sm:$0xff] %v10132_v39  ;;  %v3581_v40 = vcombine.high %v13215_v31, %v12976_v35  ;;  %v13219_v31 = vld [vmem:[#allocation277_spill] sm:$0xff] }
 0x411   : > { %5139 = vrot.lane.b32.xlu1 %v10135_v2, %s7079_s24  ;;  %5141 = vrot.lane.b32.xlu0 %v10138_v47, %s7079_s24  ;;  %v3777_v58 = vcombine.high %v13219_v31, %v12976_v35 }
 0x412   : > { %v10174_v54 = vrot.slane %v3581_v40, %v7469_v49 }
 0x413   : > { %v10148_v34 = vpop.permute.xlu1 %4899  ;;  %v10150_v33 = vpop.permute.xlu0 %4965  ;;  %v10190_v24 = vrot.slane %v3777_v58, %v7469_v49 }
 0x414   : > { %13216 = vst [vmem:[#allocation272_spill] sm:$0xff] %v10148_v34  ;;  %13217 = vst [vmem:[#allocation273_spill] sm:$0xff] %v10150_v33 }
 0x415   : > { %5143 = vrot.lane.b32.xlu1 %v10153_v7, %s7079_s24  ;;  %5145 = vrot.lane.b32.xlu0 %v10156_v11, %s7079_s24 }
 0x417   : > { %v10166_v46 = vpop.permute.xlu1 %4967  ;;  %v10168_v52 = vpop.permute.xlu0 %4969 }
 0x418   : > { %13220 = vst [vmem:[#allocation276_spill] sm:$0xff] %v10166_v46  ;;  %13221 = vst [vmem:[#allocation277_spill] sm:$0xff] %v10168_v52  ;;  %v10187_v52 = vrot.slane %v3679_v22, %v7469_v49  ;;  %v868_v22 = vcombine.high %v9923_v32, %v12976_v35 }
 0x419   : > { %5147 = vrot.lane.b32.xlu1 %v10171_v41, %s7079_s24  ;;  %5149 = vrot.lane.b32.xlu0 %v10174_v54, %s7079_s24 }
 0x41b   : > { %v10182_v31 = vpop.permute.xlu1 %4971  ;;  %v10184_v51 = vpop.permute.xlu0 %4973 }
 0x41c   : > { %13222 = vst [vmem:[#allocation336_spill] sm:$0xff] %v10182_v31  ;;  %13223 = vst [vmem:[#allocation337_spill] sm:$0xff] %v10184_v51 }
 0x41d   : > { %5151 = vrot.lane.b32.xlu1 %v10187_v52, %s7079_s24  ;;  %5153 = vrot.lane.b32.xlu0 %v10190_v24, %s7079_s24 }
 0x41f   : > { %v10196_v40 = vpop.permute.xlu1 %4975  ;;  %v10198_v55 = vpop.permute.xlu0 %4977 }
 0x420   : > { %13224 = vst [vmem:[#allocation338_spill] sm:$0xff] %v10196_v40  ;;  %13225 = vst [vmem:[#allocation339_spill] sm:$0xff] %v10198_v55 }
 0x421   : > { %5155 = vrot.lane.b32.xlu1 %v10201_v48, %s7079_s24  ;;  %5221 = vrot.lane.b32.xlu0 %v868_v22, %s7080_s10  ;;  %v1162_v22 = vcombine.high %v9955_v30, %v12976_v35  ;;  %s7085_s24 = smov [#allocation7]  }
 0x423   : > { %v10208_v58 = vpop.permute.xlu1 %4979  ;;  %v10210_v31 = vpop.permute.xlu0 %4981 }
 0x424   : > { %13226 = vst [vmem:[#allocation340_spill] sm:$0xff] %v10208_v58  ;;  %13227 = vst [vmem:[#allocation341_spill] sm:$0xff] %v10210_v31  ;;  %v1260_v58 = vcombine.high %v9958_v5, %v12976_v35 }
 0x425   : > { %5223 = vrot.lane.b32.xlu1 %v966_v57, %s7080_s10  ;;  %5225 = vrot.lane.b32.xlu0 %v1064_v13, %s7080_s10  ;;  %v1358_v57 = vcombine.high %v9973_v10, %v12976_v35  ;;  %v1456_v13 = vcombine.high %v9976_v60, %v12976_v35 }
 0x427   : > { %v10218_v32 = vpop.permute.xlu1 %4983  ;;  %v10220_v55 = vpop.permute.xlu0 %4985 }
 0x428   : > { %13228 = vst [vmem:[#allocation342_spill] sm:$0xff] %v10218_v32  ;;  %13229 = vst [vmem:[#allocation343_spill] sm:$0xff] %v10220_v55 }
 0x429   : > { %5227 = vrot.lane.b32.xlu1 %v1162_v22, %s7080_s10  ;;  %5229 = vrot.lane.b32.xlu0 %v1260_v58, %s7080_s10  ;;  %v1554_v58 = vcombine.high %v9991_v9, %v12976_v35  ;;  %v1652_v22 = vcombine.high %v9994_v53, %v12976_v35 }
 0x42b   : > { %v10228_v63 = vpop.permute.xlu1 %4987  ;;  %v10230_v14 = vpop.permute.xlu0 %4989 }
 0x42c   : > { %13230 = vst [vmem:[#allocation344_spill] sm:$0xff] %v10228_v63  ;;  %13231 = vst [vmem:[#allocation345_spill] sm:$0xff] %v10230_v14 }
 0x42d   : > { %5231 = vrot.lane.b32.xlu1 %v1358_v57, %s7080_s10  ;;  %5233 = vrot.lane.b32.xlu0 %v1456_v13, %s7080_s10  ;;  %v1750_v57 = vcombine.high %v10009_v43, %v12976_v35  ;;  %v1848_v13 = vcombine.high %v10012_v42, %v12976_v35 }
 0x42f   : > { %v10238_v30 = vpop.permute.xlu1 %4991  ;;  %v10240_v5 = vpop.permute.xlu0 %4993 }
 0x430   : > { %13232 = vst [vmem:[#allocation346_spill] sm:$0xff] %v10238_v30  ;;  %13233 = vst [vmem:[#allocation347_spill] sm:$0xff] %v10240_v5 }
 0x431   : > { %5235 = vrot.lane.b32.xlu1 %v1554_v58, %s7080_s10  ;;  %5237 = vrot.lane.b32.xlu0 %v1652_v22, %s7080_s10  ;;  %v1946_v58 = vcombine.high %v10027_v61, %v12976_v35  ;;  %v2044_v22 = vcombine.high %v10030_v44, %v12976_v35 }
 0x433   : > { %v10248_v10 = vpop.permute.xlu1 %4995  ;;  %v10250_v60 = vpop.permute.xlu0 %4997 }
 0x434   : > { %13234 = vst [vmem:[#allocation348_spill] sm:$0xff] %v10248_v10  ;;  %13235 = vst [vmem:[#allocation349_spill] sm:$0xff] %v10250_v60 }
 0x435   : > { %5239 = vrot.lane.b32.xlu1 %v1750_v57, %s7080_s10  ;;  %5241 = vrot.lane.b32.xlu0 %v1848_v13, %s7080_s10  ;;  %v2142_v57 = vcombine.high %v10045_v27, %v12976_v35  ;;  %v2240_v13 = vcombine.high %v10048_v16, %v12976_v35 }
 0x437   : > { %v10258_v9 = vpop.permute.xlu1 %4999  ;;  %v10260_v53 = vpop.permute.xlu0 %5001 }
 0x438   : > { %13236 = vst [vmem:[#allocation350_spill] sm:$0xff] %v10258_v9  ;;  %13237 = vst [vmem:[#allocation351_spill] sm:$0xff] %v10260_v53  ;;  %v13277_v9 = vld [vmem:[#allocation40_spill] sm:$0xff] }
 0x439   : > { %5243 = vrot.lane.b32.xlu1 %v1946_v58, %s7080_s10  ;;  %5245 = vrot.lane.b32.xlu0 %v2044_v22, %s7080_s10  ;;  %v2338_v58 = vcombine.high %v10063_v15, %v12976_v35  ;;  %v2436_v22 = vcombine.high %v10066_v17, %v12976_v35  ;;  %v1998_v18 = vcombine.high %v13277_v9, %v12976_v35 }
 0x43b   : > { %v10268_v43 = vpop.permute.xlu1 %5003  ;;  %v10270_v42 = vpop.permute.xlu0 %5005 }
 0x43c   : > { %13238 = vst [vmem:[#allocation352_spill] sm:$0xff] %v10268_v43  ;;  %13239 = vst [vmem:[#allocation353_spill] sm:$0xff] %v10270_v42 }
 0x43d   : > { %5247 = vrot.lane.b32.xlu1 %v2142_v57, %s7080_s10  ;;  %5249 = vrot.lane.b32.xlu0 %v2240_v13, %s7080_s10  ;;  %v2534_v57 = vcombine.high %v10081_v0, %v12976_v35  ;;  %v2632_v13 = vcombine.high %v10084_v8, %v12976_v35 }
 0x43f   : > { %v10278_v61 = vpop.permute.xlu1 %5007  ;;  %v10280_v44 = vpop.permute.xlu0 %5009 }
 0x440   : > { %13240 = vst [vmem:[#allocation354_spill] sm:$0xff] %v10278_v61  ;;  %13241 = vst [vmem:[#allocation355_spill] sm:$0xff] %v10280_v44 }
 0x441   : > { %5251 = vrot.lane.b32.xlu1 %v2338_v58, %s7080_s10  ;;  %5253 = vrot.lane.b32.xlu0 %v2436_v22, %s7080_s10  ;;  %v2730_v58 = vcombine.high %v10099_v59, %v12976_v35  ;;  %v2828_v22 = vcombine.high %v10102_v26, %v12976_v35 }
 0x443   : > { %v10288_v27 = vpop.permute.xlu1 %5011  ;;  %v10290_v16 = vpop.permute.xlu0 %5013 }
 0x444   : > { %13242 = vst [vmem:[#allocation356_spill] sm:$0xff] %v10288_v27  ;;  %13243 = vst [vmem:[#allocation357_spill] sm:$0xff] %v10290_v16 }
 0x445   : > { %5255 = vrot.lane.b32.xlu1 %v2534_v57, %s7080_s10  ;;  %5257 = vrot.lane.b32.xlu0 %v2632_v13, %s7080_s10  ;;  %v2926_v57 = vcombine.high %v10117_v50, %v12976_v35  ;;  %v3024_v13 = vcombine.high %v10120_v25, %v12976_v35 }
 0x447   : > { %v10298_v15 = vpop.permute.xlu1 %5015  ;;  %v10300_v17 = vpop.permute.xlu0 %5017 }
 0x448   : > { %13244 = vst [vmem:[#allocation358_spill] sm:$0xff] %v10298_v15  ;;  %13245 = vst [vmem:[#allocation359_spill] sm:$0xff] %v10300_v17 }
 0x449   : > { %5259 = vrot.lane.b32.xlu1 %v2730_v58, %s7080_s10  ;;  %5261 = vrot.lane.b32.xlu0 %v2828_v22, %s7080_s10  ;;  %v3122_v58 = vcombine.high %v10135_v2, %v12976_v35  ;;  %v3220_v22 = vcombine.high %v10138_v47, %v12976_v35  ;;  %v13252_v2 = vld [vmem:[#allocation13_spill] sm:$0xff] }
 0x44a   : > { %v822_v47 = vcombine.high %v13252_v2, %v12976_v35  ;;  %v13257_v2 = vld [vmem:[#allocation17_spill] sm:$0xff] }
 0x44b   : > { %v10308_v0 = vpop.permute.xlu1 %5019  ;;  %v10310_v8 = vpop.permute.xlu0 %5021  ;;  %v1018_v27 = vcombine.high %v13257_v2, %v12976_v35  ;;  %v13261_v2 = vld [vmem:[#allocation21_spill] sm:$0xff] }
 0x44c   : > { %13246 = vst [vmem:[#allocation360_spill] sm:$0xff] %v10308_v0  ;;  %13247 = vst [vmem:[#allocation361_spill] sm:$0xff] %v10310_v8  ;;  %v3514_v0 = vcombine.high %v10171_v41, %v12976_v35  ;;  %v3710_v41 = vcombine.high %v10187_v52, %v12976_v35  ;;  %v1214_v53 = vcombine.high %v13261_v2, %v12976_v35  ;;  %v13273_v8 = vld [vmem:[#allocation35_spill] sm:$0xff] }
 0x44d   : > { %5263 = vrot.lane.b32.xlu1 %v2926_v57, %s7080_s10  ;;  %5265 = vrot.lane.b32.xlu0 %v3024_v13, %s7080_s10  ;;  %v3318_v57 = vcombine.high %v10153_v7, %v12976_v35  ;;  %v3416_v13 = vcombine.high %v10156_v11, %v12976_v35  ;;  %v3612_v7 = vcombine.high %v10174_v54, %v12976_v35  ;;  %v13255_v11 = vld [vmem:[#allocation14_spill] sm:$0xff] }
 0x44e   : > { %v3808_v54 = vcombine.high %v10190_v24, %v12976_v35  ;;  %v3906_v24 = vcombine.high %v10201_v48, %v12976_v35  ;;  %v13265_v48 = vld [vmem:[#allocation25_spill] sm:$0xff]  ;;  %v1802_v15 = vcombine.high %v13273_v8, %v12976_v35  ;;  %v13276_v8 = vld [vmem:[#allocation38_spill] sm:$0xff] }
 0x44f   : > { %v10318_v59 = vpop.permute.xlu1 %5023  ;;  %v10320_v26 = vpop.permute.xlu0 %5025  ;;  %v1410_v2 = vcombine.high %v13265_v48, %v12976_v35 }
 0x450   : > { %13248 = vst [vmem:[#allocation362_spill] sm:$0xff] %v10318_v59  ;;  %13249 = vst [vmem:[#allocation363_spill] sm:$0xff] %v10320_v26 }
 0x451   : > { %5267 = vrot.lane.b32.xlu1 %v3122_v58, %s7080_s10  ;;  %5269 = vrot.lane.b32.xlu0 %v3220_v22, %s7080_s10 }
 0x453   : > { %v10328_v50 = vpop.permute.xlu1 %5027  ;;  %v10330_v25 = vpop.permute.xlu0 %5093 }
 0x454   : > { %13250 = vst [vmem:[#allocation364_spill] sm:$0xff] %v10328_v50  ;;  %13251 = vst [vmem:[#allocation365_spill] sm:$0xff] %v10330_v25 }
 0x455   : > { %5271 = vrot.lane.b32.xlu1 %v3318_v57, %s7080_s10  ;;  %5273 = vrot.lane.b32.xlu0 %v3416_v13, %s7080_s10  ;;  %v920_v57 = vcombine.high %v13255_v11, %v12976_v35  ;;  %v13256_v13 = vld [vmem:[#allocation12_spill] sm:$0xff] }
 0x456   : > { %v10353_v17 = vrot.slane %v822_v47, %v13256_v13  ;;  %v13260_v47 = vld [vmem:[#allocation19_spill] sm:$0xff]  ;;  %v10373_v11 = vrot.slane %v1018_v27, %v13256_v13  ;;  %v10422_v55 = vrot.slane %v1410_v2, %v13256_v13  ;;  %v13272_v2 = vld [vmem:[#allocation33_spill] sm:$0xff] }
 0x457   : > { %v10340_v58 = vpop.permute.xlu1 %5095  ;;  %v10342_v22 = vpop.permute.xlu0 %5097 }
 0x458   : > { %13253 = vst [vmem:[#allocation13_spill] sm:$0xff] %v10340_v58  ;;  %13254 = vst [vmem:[#allocation366_spill] sm:$0xff] %v10342_v22 }
 0x459   : > { %5275 = vrot.lane.b32.xlu1 %v3514_v0, %s7080_s10  ;;  %5277 = vrot.lane.b32.xlu0 %v3612_v7, %s7080_s10  ;;  %v10368_v0 = vrot.slane %v920_v57, %v13256_v13  ;;  %v1116_v7 = vcombine.high %v13260_v47, %v12976_v35  ;;  %v10385_v57 = vrot.slane %v10353_v17, %v7469_v49 }
 0x45a   : > { %v10396_v47 = vrot.slane %v1214_v53, %v13256_v13 }
 0x45b   : > { %v10357_v44 = vpop.permute.xlu1 %5099  ;;  %v10359_v43 = vpop.permute.xlu0 %5101  ;;  %v10391_v27 = vrot.slane %v1116_v7, %v13256_v13  ;;  %v10410_v7 = vrot.slane %v10373_v11, %v7469_v49 }
 0x45c   : > { %13258 = vst [vmem:[#allocation14_spill] sm:$0xff] %v10357_v44  ;;  %13259 = vst [vmem:[#allocation17_spill] sm:$0xff] %v10359_v43 }
 0x45d   : > { %5279 = vrot.lane.b32.xlu1 %v3710_v41, %s7080_s10  ;;  %5281 = vrot.lane.b32.xlu0 %v3808_v54, %s7080_s10  ;;  %v13264_v41 = vld [vmem:[#allocation23_spill] sm:$0xff]  ;;  %v10432_v59 = vrot.slane %v10391_v27, %v7469_v49 }
 0x45e   : > { %v1312_v54 = vcombine.high %v13264_v41, %v12976_v35  ;;  %v13268_v41 = vld [vmem:[#allocation28_spill] sm:$0xff] }
 0x45f   : > { %v10377_v52 = vpop.permute.xlu1 %5103  ;;  %v10379_v10 = vpop.permute.xlu0 %5105  ;;  %v1508_v48 = vcombine.high %v13268_v41, %v12976_v35  ;;  %v1704_v41 = vcombine.high %v13272_v2, %v12976_v35  ;;  %v1900_v2 = vcombine.high %v13276_v8, %v12976_v35 }
 0x460   : > { %13262 = vst [vmem:[#allocation19_spill] sm:$0xff] %v10377_v52  ;;  %13263 = vst [vmem:[#allocation21_spill] sm:$0xff] %v10379_v10  ;;  %v10417_v53 = vrot.slane %v1312_v54, %v13256_v13  ;;  %v10436_v54 = vrot.slane %v10396_v47, %v7469_v49 }
 0x461   : > { %5283 = vrot.lane.b32.xlu1 %v3906_v24, %s7080_s10  ;;  %5349 = vrot.lane.b32.xlu0 %v10385_v57, %s7081_s6  ;;  %v10406_v24 = vrot.slane %v10368_v0, %v7469_v49  ;;  %v10495_v9 = vrot.slane %v1900_v2, %v13256_v13  ;;  %s6978_s10 = sshll.u32 %s7085_s24, 4  ;;  %s6979_s10 = int_to_ptr.vmem [resolvable:$false] %s6978_s10 }
 0x462   : > { %v10458_v42 = vrot.slane %v10417_v53, %v7469_v49  ;;  %p6981_p7 = scmp.lt.s32.totalorder %s12636_s26, %s6979_s10 }
 0x463   : > { %v10400_v5 = vpop.permute.xlu1 %5107  ;;  %v10402_v63 = vpop.permute.xlu0 %5109  ;;  %v10536_v3 = vrot.slane %v10495_v9, %v7469_v49 }
 0x464   : > { %13266 = vst [vmem:[#allocation23_spill] sm:$0xff] %v10400_v5  ;;  %13267 = vst [vmem:[#allocation25_spill] sm:$0xff] %v10402_v63  ;;  %v13269_v5 = vld [vmem:[#allocation30_spill] sm:$0xff] }
 0x465   : > { %5351 = vrot.lane.b32.xlu1 %v10406_v24, %s7081_s6  ;;  %5353 = vrot.lane.b32.xlu0 %v10410_v7, %s7081_s6  ;;  %v1606_v10 = vcombine.high %v13269_v5, %v12976_v35  ;;  %v10443_v5 = vrot.slane %v1508_v48, %v13256_v13  ;;  %v10462_v48 = vrot.slane %v10422_v55, %v7469_v49 }
 0x467   : > { %v10426_v44 = vpop.permute.xlu1 %5111  ;;  %v10428_v22 = vpop.permute.xlu0 %5113  ;;  %v10484_v62 = vrot.slane %v10443_v5, %v7469_v49 }
 0x468   : > { %13270 = vst [vmem:[#allocation28_spill] sm:$0xff] %v10426_v44  ;;  %13271 = vst [vmem:[#allocation30_spill] sm:$0xff] %v10428_v22  ;;  %v10448_v22 = vrot.slane %v1606_v10, %v13256_v13  ;;  %v10469_v10 = vrot.slane %v1704_v41, %v13256_v13 }
 0x469   : > { %5355 = vrot.lane.b32.xlu1 %v10432_v59, %s7081_s6  ;;  %5357 = vrot.lane.b32.xlu0 %v10436_v54, %s7081_s6 }
 0x46a   : > { %v10488_v41 = vrot.slane %v10448_v22, %v7469_v49  ;;  %v10510_v56 = vrot.slane %v10469_v10, %v7469_v49 }
 0x46b   : > { %v10452_v16 = vpop.permute.xlu1 %5115  ;;  %v10454_v61 = vpop.permute.xlu0 %5117 }
 0x46c   : > { %13274 = vst [vmem:[#allocation33_spill] sm:$0xff] %v10452_v16  ;;  %13275 = vst [vmem:[#allocation35_spill] sm:$0xff] %v10454_v61  ;;  %v10474_v16 = vrot.slane %v1802_v15, %v13256_v13  ;;  %v13280_v15 = vld [vmem:[#allocation43_spill] sm:$0xff] }
 0x46d   : > { %5359 = vrot.lane.b32.xlu1 %v10458_v42, %s7081_s6  ;;  %5361 = vrot.lane.b32.xlu0 %v10462_v48, %s7081_s6  ;;  %v2096_v8 = vcombine.high %v13280_v15, %v12976_v35 }
 0x46e   : > { %v10514_v2 = vrot.slane %v10474_v16, %v7469_v49 }
 0x46f   : > { %v10478_v45 = vpop.permute.xlu1 %5119  ;;  %v10480_v60 = vpop.permute.xlu0 %5121 }
 0x470   : > { %13278 = vst [vmem:[#allocation38_spill] sm:$0xff] %v10478_v45  ;;  %13279 = vst [vmem:[#allocation40_spill] sm:$0xff] %v10480_v60  ;;  %v10500_v60 = vrot.slane %v1998_v18, %v13256_v13  ;;  %v2194_v45 = vcombine.high %v13281_v23, %v12976_v35  ;;  %v10521_v23 = vrot.slane %v2096_v8, %v13256_v13  ;;  %v13284_v18 = vld [vmem:[#allocation48_spill] sm:$0xff] }
 0x471   : > { %5363 = vrot.lane.b32.xlu1 %v10484_v62, %s7081_s6  ;;  %5365 = vrot.lane.b32.xlu0 %v10488_v41, %s7081_s6  ;;  %v2292_v15 = vcombine.high %v13284_v18, %v12976_v35 }
 0x472   : > { %v10540_v8 = vrot.slane %v10500_v60, %v7469_v49  ;;  %v10562_v38 = vrot.slane %v10521_v23, %v7469_v49 }
 0x473   : > { %v10504_v30 = vpop.permute.xlu1 %5123  ;;  %v10506_v20 = vpop.permute.xlu0 %5125 }
 0x474   : > { %13282 = vst [vmem:[#allocation43_spill] sm:$0xff] %v10504_v30  ;;  %13283 = vst [vmem:[#allocation45_spill] sm:$0xff] %v10506_v20  ;;  %v10526_v30 = vrot.slane %v2194_v45, %v13256_v13  ;;  %v13285_v20 = vld [vmem:[#allocation50_spill] sm:$0xff]  ;;  %v10547_v45 = vrot.slane %v2292_v15, %v13256_v13 }
 0x475   : > { %5367 = vrot.lane.b32.xlu1 %v10510_v56, %s7081_s6  ;;  %5369 = vrot.lane.b32.xlu0 %v10514_v2, %s7081_s6  ;;  %v2390_v61 = vcombine.high %v13285_v20, %v12976_v35  ;;  %v13288_v20 = vld [vmem:[#allocation55_spill] sm:$0xff] }
 0x476   : > { %v2488_v18 = vcombine.high %v13288_v20, %v12976_v35  ;;  %v10566_v15 = vrot.slane %v10526_v30, %v7469_v49  ;;  %v10588_v19 = vrot.slane %v10547_v45, %v7469_v49 }
 0x477   : > { %v10530_v14 = vpop.permute.xlu1 %5127  ;;  %v10532_v21 = vpop.permute.xlu0 %5129 }
 0x478   : > { %13286 = vst [vmem:[#allocation48_spill] sm:$0xff] %v10530_v14  ;;  %13287 = vst [vmem:[#allocation50_spill] sm:$0xff] %v10532_v21  ;;  %v10552_v21 = vrot.slane %v2390_v61, %v13256_v13  ;;  %v13289_v14 = vld [vmem:[#allocation58_spill] sm:$0xff]  ;;  %v13292_v61 = vld [vmem:[#allocation63_spill] sm:$0xff] }
 0x479   : > { %5371 = vrot.lane.b32.xlu1 %v10536_v3, %s7081_s6  ;;  %5373 = vrot.lane.b32.xlu0 %v10540_v8, %s7081_s6  ;;  %v2586_v44 = vcombine.high %v13289_v14, %v12976_v35  ;;  %v10573_v14 = vrot.slane %v2488_v18, %v13256_v13  ;;  %v2684_v20 = vcombine.high %v13292_v61, %v12976_v35 }
 0x47a   : > { %v10592_v18 = vrot.slane %v10552_v21, %v7469_v49 }
 0x47b   : > { %v10556_v32 = vpop.permute.xlu1 %5131  ;;  %v10558_v4 = vpop.permute.xlu0 %5133  ;;  %v10614_v43 = vrot.slane %v10573_v14, %v7469_v49 }
 0x47c   : > { %13290 = vst [vmem:[#allocation55_spill] sm:$0xff] %v10556_v32  ;;  %13291 = vst [vmem:[#allocation58_spill] sm:$0xff] %v10558_v4  ;;  %v10578_v32 = vrot.slane %v2586_v44, %v13256_v13  ;;  %v13293_v4 = vld [vmem:[#allocation66_spill] sm:$0xff]  ;;  %v13296_v44 = vld [vmem:[#allocation71_spill] sm:$0xff] }
 0x47d   : > { %5375 = vrot.lane.b32.xlu1 %v10562_v38, %s7081_s6  ;;  %5377 = vrot.lane.b32.xlu0 %v10566_v15, %s7081_s6  ;;  %v2782_v63 = vcombine.high %v13293_v4, %v12976_v35  ;;  %v10599_v4 = vrot.slane %v2684_v20, %v13256_v13  ;;  %v2880_v61 = vcombine.high %v13296_v44, %v12976_v35 }
 0x47e   : > { %v10618_v20 = vrot.slane %v10578_v32, %v7469_v49 }
 0x47f   : > { %v10582_v31 = vpop.permute.xlu1 %5135  ;;  %v10584_v1 = vpop.permute.xlu0 %5137  ;;  %v10640_v46 = vrot.slane %v10599_v4, %v7469_v49 }
 0x480   : > { %13294 = vst [vmem:[#allocation63_spill] sm:$0xff] %v10582_v31  ;;  %13295 = vst [vmem:[#allocation66_spill] sm:$0xff] %v10584_v1  ;;  %v10604_v1 = vrot.slane %v2782_v63, %v13256_v13  ;;  %v13297_v31 = vld [vmem:[#allocation74_spill] sm:$0xff] }
 0x481   : > { %5379 = vrot.lane.b32.xlu1 %v10588_v19, %s7081_s6  ;;  %5381 = vrot.lane.b32.xlu0 %v10592_v18, %s7081_s6  ;;  %v2978_v52 = vcombine.high %v13297_v31, %v12976_v35  ;;  %v10625_v31 = vrot.slane %v2880_v61, %v13256_v13  ;;  %v13300_v63 = vld [vmem:[#allocation78_spill] sm:$0xff] }
 0x482   : > { %v3076_v44 = vcombine.high %v13300_v63, %v12976_v35  ;;  %v10644_v61 = vrot.slane %v10604_v1, %v7469_v49 }
 0x483   : > { %v10608_v40 = vpop.permute.xlu1 %5139  ;;  %v10610_v29 = vpop.permute.xlu0 %5141  ;;  %v10666_v33 = vrot.slane %v10625_v31, %v7469_v49 }
 0x484   : > { %13298 = vst [vmem:[#allocation71_spill] sm:$0xff] %v10608_v40  ;;  %13299 = vst [vmem:[#allocation74_spill] sm:$0xff] %v10610_v29  ;;  %v10630_v40 = vrot.slane %v2978_v52, %v13256_v13  ;;  %v13302_v29 = vld [vmem:[#allocation79_spill] sm:$0xff]  ;;  %v13306_v52 = vld [vmem:[#allocation80_spill] sm:$0xff] }
 0x485   : > { %5383 = vrot.lane.b32.xlu1 %v10614_v43, %s7081_s6  ;;  %5385 = vrot.lane.b32.xlu0 %v10618_v20, %s7081_s6  ;;  %v3174_v51 = vcombine.high %v13302_v29, %v12976_v35  ;;  %v10651_v29 = vrot.slane %v3076_v44, %v13256_v13  ;;  %v3272_v63 = vcombine.high %v13306_v52, %v12976_v35 }
 0x486   : > { %13301 = vst [vmem:[#allocation78_spill] sm:$0xff] %v10630_v40  ;;  %v10670_v44 = vrot.slane %v10630_v40, %v7469_v49 }
 0x487   : > { %v10634_v12 = vpop.permute.xlu1 %5143  ;;  %v10636_v58 = vpop.permute.xlu0 %5145  ;;  %13305 = vst [vmem:[#allocation368_spill] sm:$0xff] %v10651_v29  ;;  %v10692_v26 = vrot.slane %v10651_v29, %v7469_v49 }
 0x488   : > { %13303 = vst [vmem:[#allocation79_spill] sm:$0xff] %v10634_v12  ;;  %13304 = vst [vmem:[#allocation367_spill] sm:$0xff] %v10636_v58  ;;  %v10656_v58 = vrot.slane %v3174_v51, %v13256_v13  ;;  %v13308_v12 = vld [vmem:[#allocation81_spill] sm:$0xff]  ;;  %v10677_v51 = vrot.slane %v3272_v63, %v13256_v13 }
 0x489   : > { %5387 = vrot.lane.b32.xlu1 %v10640_v46, %s7081_s6  ;;  %5389 = vrot.lane.b32.xlu0 %v10644_v61, %s7081_s6  ;;  %v3370_v37 = vcombine.high %v13308_v12, %v12976_v35  ;;  %v13312_v12 = vld [vmem:[#allocation82_spill] sm:$0xff] }
 0x48a   : > { %13307 = vst [vmem:[#allocation80_spill] sm:$0xff] %v10656_v58  ;;  %13311 = vst [vmem:[#allocation370_spill] sm:$0xff] %v10677_v51  ;;  %v3468_v52 = vcombine.high %v13312_v12, %v12976_v35  ;;  %v10696_v63 = vrot.slane %v10656_v58, %v7469_v49  ;;  %v10718_v29 = vrot.slane %v10677_v51, %v7469_v49 }
 0x48b   : > { %v10660_v25 = vpop.permute.xlu1 %5147  ;;  %v10662_v50 = vpop.permute.xlu0 %5149 }
 0x48c   : > { %13309 = vst [vmem:[#allocation81_spill] sm:$0xff] %v10660_v25  ;;  %13310 = vst [vmem:[#allocation369_spill] sm:$0xff] %v10662_v50  ;;  %v10682_v25 = vrot.slane %v3370_v37, %v13256_v13  ;;  %v13314_v50 = vld [vmem:[#allocation83_spill] sm:$0xff]  ;;  %v10703_v37 = vrot.slane %v3468_v52, %v13256_v13 }
 0x48d   : > { %5391 = vrot.lane.b32.xlu1 %v10666_v33, %s7081_s6  ;;  %5393 = vrot.lane.b32.xlu0 %v10670_v44, %s7081_s6  ;;  %v3566_v34 = vcombine.high %v13314_v50, %v12976_v35  ;;  %v13317_v50 = vld [vmem:[#allocation84_spill] sm:$0xff] }
 0x48e   : > { %13313 = vst [vmem:[#allocation82_spill] sm:$0xff] %v10682_v25  ;;  %v3664_v12 = vcombine.high %v13317_v50, %v12976_v35  ;;  %v10722_v52 = vrot.slane %v10682_v25, %v7469_v49  ;;  %v13323_v50 = vld [vmem:[#allocation86_spill] sm:$0xff]  ;;  %v10742_v25 = vrot.slane %v10703_v37, %v7469_v49 }
 0x48f   : > { %v10686_v36 = vpop.permute.xlu1 %5151  ;;  %v10688_v6 = vpop.permute.xlu0 %5153 }
 0x490   : > { %13315 = vst [vmem:[#allocation83_spill] sm:$0xff] %v10686_v36  ;;  %13316 = vst [vmem:[#allocation371_spill] sm:$0xff] %v10688_v6  ;;  %v10708_v36 = vrot.slane %v3566_v34, %v13256_v13  ;;  %v13318_v6 = vld [vmem:[#allocation85_spill] sm:$0xff]  ;;  %v10729_v34 = vrot.slane %v3664_v12, %v13256_v13 }
 0x491   : > { %5395 = vrot.lane.b32.xlu1 %v10692_v26, %s7081_s6  ;;  %5397 = vrot.lane.b32.xlu0 %v10696_v63, %s7081_s6  ;;  %v3762_v39 = vcombine.high %v13318_v6, %v12976_v35 }
 0x492   : > { %13321 = vst [vmem:[#allocation372_spill] sm:$0xff] %v10729_v34  ;;  %v10746_v40 = vrot.slane %v10708_v36, %v7469_v49 }
 0x493   : > { %v10712_v28 = vpop.permute.xlu1 %5155  ;;  %v10714_v58 = vpop.permute.xlu0 %5221  ;;  %v10732_v6 = vrot.slane %v3762_v39, %v13256_v13 }
 0x494   : > { %13319 = vst [vmem:[#allocation84_spill] sm:$0xff] %v10712_v28  ;;  %13320 = vst [vmem:[#allocation85_spill] sm:$0xff] %v10714_v58  ;;  %v3860_v58 = vcombine.high %v13323_v50, %v12976_v35 }
 0x495   : > { %5399 = vrot.lane.b32.xlu1 %v10718_v29, %s7081_s6  ;;  %5401 = vrot.lane.b32.xlu0 %v10722_v52, %s7081_s6  ;;  %13322 = vst [vmem:[#allocation373_spill] sm:$0xff] %v10732_v6 }
 0x496   : > { %v10753_v39 = vrot.slane %v3860_v58, %v13256_v13 }
 0x497   : > { %v10736_v28 = vpop.permute.xlu1 %5223  ;;  %v10738_v51 = vpop.permute.xlu0 %5225 }
 0x498   : > { %13324 = vst [vmem:[#allocation86_spill] sm:$0xff] %v10736_v28  ;;  %13325 = vst [vmem:[#allocation374_spill] sm:$0xff] %v10738_v51  ;;  %v10761_v51 = vrot.slane %v10729_v34, %v7469_v49  ;;  %v10765_v28 = vrot.slane %v10732_v6, %v7469_v49 }
 0x499   : > { %5403 = vrot.lane.b32.xlu1 %v10742_v25, %s7081_s6  ;;  %5405 = vrot.lane.b32.xlu0 %v10746_v40, %s7081_s6  ;;  %13326 = vst [vmem:[#allocation375_spill] sm:$0xff] %v10753_v39 }
 0x49b   : > { %v10755_v12 = vpop.permute.xlu1 %5227  ;;  %v10757_v50 = vpop.permute.xlu0 %5229 }
 0x49c   : > { %13327 = vst [vmem:[#allocation376_spill] sm:$0xff] %v10755_v12  ;;  %13328 = vst [vmem:[#allocation377_spill] sm:$0xff] %v10757_v50  ;;  %v10777_v12 = vrot.slane %v10753_v39, %v7469_v49  ;;  %v869_v50 = vcombine.high %v10385_v57, %v12976_v35 }
 0x49d   : > { %5407 = vrot.lane.b32.xlu1 %v10761_v51, %s7081_s6  ;;  %5409 = vrot.lane.b32.xlu0 %v10765_v28, %s7081_s6 }
 0x49f   : > { %v10771_v58 = vpop.permute.xlu1 %5231  ;;  %v10773_v13 = vpop.permute.xlu0 %5233 }
 0x4a0   : > { %13329 = vst [vmem:[#allocation378_spill] sm:$0xff] %v10771_v58  ;;  %13330 = vst [vmem:[#allocation379_spill] sm:$0xff] %v10773_v13  ;;  %v967_v13 = vcombine.high %v10406_v24, %v12976_v35  ;;  %v1065_v58 = vcombine.high %v10410_v7, %v12976_v35 }
 0x4a1   : > { %5411 = vrot.lane.b32.xlu1 %v10777_v12, %s7081_s6  ;;  %5477 = vrot.lane.b32.xlu0 %v869_v50, %s7082_s22  ;;  %v1163_v50 = vcombine.high %v10432_v59, %v12976_v35  ;;  %s6980_s6 = scalar_lea.vmem %s6979_s10, 4096 }
 0x4a3   : > { %v10784_v6 = vpop.permute.xlu1 %5235  ;;  %v10786_v34 = vpop.permute.xlu0 %5237 }
 0x4a4   : > { %13331 = vst [vmem:[#allocation380_spill] sm:$0xff] %v10784_v6  ;;  %v1261_v6 = vcombine.high %v10436_v54, %v12976_v35 }
 0x4a5   : > { %5479 = vrot.lane.b32.xlu1 %v967_v13, %s7082_s22  ;;  %5481 = vrot.lane.b32.xlu0 %v1065_v58, %s7082_s22  ;;  %v1359_v13 = vcombine.high %v10458_v42, %v12976_v35  ;;  %v1457_v58 = vcombine.high %v10462_v48, %v12976_v35 }
 0x4a7   : > { %v10794_v57 = vpop.permute.xlu1 %5239  ;;  %v10796_v39 = vpop.permute.xlu0 %5241 }
 0x4a8   : > { %13332 = vst [vmem:[#allocation381_spill] sm:$0xff] %v10796_v39 }
 0x4a9   : > { %5483 = vrot.lane.b32.xlu1 %v1163_v50, %s7082_s22  ;;  %5485 = vrot.lane.b32.xlu0 %v1261_v6, %s7082_s22  ;;  %v1555_v6 = vcombine.high %v10484_v62, %v12976_v35  ;;  %v1653_v50 = vcombine.high %v10488_v41, %v12976_v35 }
 0x4ab   : > { %v10804_v24 = vpop.permute.xlu1 %5243  ;;  %v10806_v7 = vpop.permute.xlu0 %5245 }
 0x4ac   : > { %13333 = vst [vmem:[#allocation382_spill] sm:$0xff] %v10804_v24 }
 0x4ad   : > { %5487 = vrot.lane.b32.xlu1 %v1359_v13, %s7082_s22  ;;  %5489 = vrot.lane.b32.xlu0 %v1457_v58, %s7082_s22  ;;  %v1751_v13 = vcombine.high %v10510_v56, %v12976_v35  ;;  %v1849_v58 = vcombine.high %v10514_v2, %v12976_v35 }
 0x4af   : > { %v10814_v59 = vpop.permute.xlu1 %5247  ;;  %v10816_v54 = vpop.permute.xlu0 %5249 }
 0x4b0   : > { %13334 = vst [vmem:[#allocation383_spill] sm:$0xff] %v10816_v54 }
 0x4b1   : > { %5491 = vrot.lane.b32.xlu1 %v1555_v6, %s7082_s22  ;;  %5493 = vrot.lane.b32.xlu0 %v1653_v50, %s7082_s22  ;;  %v1947_v6 = vcombine.high %v10536_v3, %v12976_v35  ;;  %v2045_v50 = vcombine.high %v10540_v8, %v12976_v35 }
 0x4b3   : > { %v10824_v42 = vpop.permute.xlu1 %5251  ;;  %v10826_v48 = vpop.permute.xlu0 %5253 }
 0x4b4   : > { %13335 = vst [vmem:[#allocation384_spill] sm:$0xff] %v10824_v42 }
 0x4b5   : > { %5495 = vrot.lane.b32.xlu1 %v1751_v13, %s7082_s22  ;;  %5497 = vrot.lane.b32.xlu0 %v1849_v58, %s7082_s22  ;;  %v2143_v13 = vcombine.high %v10562_v38, %v12976_v35  ;;  %v2241_v58 = vcombine.high %v10566_v15, %v12976_v35 }
 0x4b7   : > { %v10834_v62 = vpop.permute.xlu1 %5255  ;;  %v10836_v41 = vpop.permute.xlu0 %5257 }
 0x4b8   : > { %13336 = vst [vmem:[#allocation385_spill] sm:$0xff] %v10834_v62  ;;  %13337 = vst [vmem:[#allocation386_spill] sm:$0xff] %v10836_v41 }
 0x4b9   : > { %5499 = vrot.lane.b32.xlu1 %v1947_v6, %s7082_s22  ;;  %5501 = vrot.lane.b32.xlu0 %v2045_v50, %s7082_s22  ;;  %v2339_v6 = vcombine.high %v10588_v19, %v12976_v35  ;;  %v2437_v50 = vcombine.high %v10592_v18, %v12976_v35 }
 0x4bb   : > { %v10844_v56 = vpop.permute.xlu1 %5259  ;;  %v10846_v2 = vpop.permute.xlu0 %5261 }
 0x4bc   : > { %13338 = vst [vmem:[#allocation387_spill] sm:$0xff] %v10844_v56  ;;  %13339 = vst [vmem:[#allocation388_spill] sm:$0xff] %v10846_v2 }
 0x4bd   : > { %5503 = vrot.lane.b32.xlu1 %v2143_v13, %s7082_s22  ;;  %5505 = vrot.lane.b32.xlu0 %v2241_v58, %s7082_s22  ;;  %v2535_v13 = vcombine.high %v10614_v43, %v12976_v35  ;;  %v2633_v58 = vcombine.high %v10618_v20, %v12976_v35 }
 0x4bf   : > { %v10854_v3 = vpop.permute.xlu1 %5263  ;;  %v10856_v8 = vpop.permute.xlu0 %5265 }
 0x4c0   : > { %13340 = vst [vmem:[#allocation389_spill] sm:$0xff] %v10854_v3  ;;  %13341 = vst [vmem:[#allocation390_spill] sm:$0xff] %v10856_v8 }
 0x4c1   : > { %5507 = vrot.lane.b32.xlu1 %v2339_v6, %s7082_s22  ;;  %5509 = vrot.lane.b32.xlu0 %v2437_v50, %s7082_s22  ;;  %v2731_v6 = vcombine.high %v10640_v46, %v12976_v35  ;;  %v2829_v50 = vcombine.high %v10644_v61, %v12976_v35 }
 0x4c3   : > { %v10864_v38 = vpop.permute.xlu1 %5267  ;;  %v10866_v15 = vpop.permute.xlu0 %5269 }
 0x4c4   : > { %13342 = vst [vmem:[#allocation391_spill] sm:$0xff] %v10864_v38  ;;  %13343 = vst [vmem:[#allocation392_spill] sm:$0xff] %v10866_v15 }
 0x4c5   : > { %5511 = vrot.lane.b32.xlu1 %v2535_v13, %s7082_s22  ;;  %5513 = vrot.lane.b32.xlu0 %v2633_v58, %s7082_s22  ;;  %v2927_v13 = vcombine.high %v10666_v33, %v12976_v35  ;;  %v3025_v58 = vcombine.high %v10670_v44, %v12976_v35 }
 0x4c7   : > { %v10874_v19 = vpop.permute.xlu1 %5271  ;;  %v10876_v18 = vpop.permute.xlu0 %5273 }
 0x4c8   : > { %13344 = vst [vmem:[#allocation393_spill] sm:$0xff] %v10874_v19  ;;  %13345 = vst [vmem:[#allocation394_spill] sm:$0xff] %v10876_v18 }
 0x4c9   : > { %5515 = vrot.lane.b32.xlu1 %v2731_v6, %s7082_s22  ;;  %5517 = vrot.lane.b32.xlu0 %v2829_v50, %s7082_s22  ;;  %v3123_v6 = vcombine.high %v10692_v26, %v12976_v35  ;;  %v3221_v50 = vcombine.high %v10696_v63, %v12976_v35 }
 0x4cb   : > { %v10884_v43 = vpop.permute.xlu1 %5275  ;;  %v10886_v20 = vpop.permute.xlu0 %5277 }
 0x4cc   : > { %13346 = vst [vmem:[#allocation395_spill] sm:$0xff] %v10884_v43  ;;  %13347 = vst [vmem:[#allocation396_spill] sm:$0xff] %v10886_v20 }
 0x4cd   : > { %5519 = vrot.lane.b32.xlu1 %v2927_v13, %s7082_s22  ;;  %5521 = vrot.lane.b32.xlu0 %v3025_v58, %s7082_s22  ;;  %v3319_v13 = vcombine.high %v10718_v29, %v12976_v35  ;;  %v3417_v58 = vcombine.high %v10722_v52, %v12976_v35  ;;  %v852_v29 = vcombine.high %v10353_v17, %v12976_v35 }
 0x4ce   : > { %v1048_v17 = vcombine.high %v10373_v11, %v12976_v35 }
 0x4cf   : > { %v10894_v46 = vpop.permute.xlu1 %5279  ;;  %v10896_v61 = vpop.permute.xlu0 %5281  ;;  %v10947_v43 = vrot.slane %v852_v29, %v7469_v49 }
 0x4d0   : > { %13348 = vst [vmem:[#allocation397_spill] sm:$0xff] %v10894_v46  ;;  %v10964_v29 = vrot.slane %v1048_v17, %v7469_v49 }
 0x4d1   : > { %5523 = vrot.lane.b32.xlu1 %v3123_v6, %s7082_s22  ;;  %5525 = vrot.lane.b32.xlu0 %v3221_v50, %s7082_s22  ;;  %v3515_v6 = vcombine.high %v10742_v25, %v12976_v35  ;;  %v3613_v50 = vcombine.high %v10746_v40, %v12976_v35  ;;  %v3809_v25 = vcombine.high %v10765_v28, %v12976_v35 }
 0x4d2   : > { %v950_v40 = vcombine.high %v10368_v0, %v12976_v35  ;;  %v1146_v28 = vcombine.high %v10391_v27, %v12976_v35  ;;  %v1244_v0 = vcombine.high %v10396_v47, %v12976_v35  ;;  %v1342_v27 = vcombine.high %v10417_v53, %v12976_v35 }
 0x4d3   : > { %v10904_v33 = vpop.permute.xlu1 %5283  ;;  %v10906_v44 = vpop.permute.xlu0 %5349  ;;  %v1440_v47 = vcombine.high %v10422_v55, %v12976_v35  ;;  %v1538_v53 = vcombine.high %v10443_v5, %v12976_v35  ;;  %v1636_v55 = vcombine.high %v10448_v22, %v12976_v35  ;;  %v1734_v5 = vcombine.high %v10469_v10, %v12976_v35 }
 0x4d4   : > { %v10982_v17 = vrot.slane %v1244_v0, %v7469_v49  ;;  %v1832_v22 = vcombine.high %v10474_v16, %v12976_v35  ;;  %v1930_v10 = vcombine.high %v10495_v9, %v12976_v35  ;;  %v2028_v16 = vcombine.high %v10500_v60, %v12976_v35 }
 0x4d5   : > { %5527 = vrot.lane.b32.xlu1 %v3319_v13, %s7082_s22  ;;  %5529 = vrot.lane.b32.xlu0 %v3417_v58, %s7082_s22  ;;  %v3711_v58 = vcombine.high %v10761_v51, %v12976_v35  ;;  %v3907_v51 = vcombine.high %v10777_v12, %v12976_v35  ;;  %v10961_v12 = vrot.slane %v950_v40, %v7469_v49 }
 0x4d6   : > { %v10979_v40 = vrot.slane %v1146_v28, %v7469_v49  ;;  %v10997_v28 = vrot.slane %v1342_v27, %v7469_v49  ;;  %v11000_v0 = vrot.slane %v1440_v47, %v7469_v49  ;;  %v11015_v27 = vrot.slane %v1538_v53, %v7469_v49 }
 0x4d7   : > { %v10914_v26 = vpop.permute.xlu1 %5351  ;;  %v10916_v63 = vpop.permute.xlu0 %5353  ;;  %v11018_v47 = vrot.slane %v1636_v55, %v7469_v49  ;;  %v11033_v53 = vrot.slane %v1734_v5, %v7469_v49  ;;  %v11036_v55 = vrot.slane %v1832_v22, %v7469_v49  ;;  %v2126_v9 = vcombine.high %v10521_v23, %v12976_v35 }
 0x4d8   : > { %13349 = vst [vmem:[#allocation398_spill] sm:$0xff] %v10916_v63  ;;  %v2224_v60 = vcombine.high %v10526_v30, %v12976_v35  ;;  %v11051_v5 = vrot.slane %v1930_v10, %v7469_v49  ;;  %v11054_v22 = vrot.slane %v2028_v16, %v7469_v49  ;;  %v2322_v23 = vcombine.high %v10547_v45, %v12976_v35 }
 0x4d9   : > { %5531 = vrot.lane.b32.xlu1 %v3515_v6, %s7082_s22  ;;  %5533 = vrot.lane.b32.xlu0 %v3613_v50, %s7082_s22  ;;  %v2420_v30 = vcombine.high %v10552_v21, %v12976_v35  ;;  %v11069_v10 = vrot.slane %v2126_v9, %v7469_v49  ;;  %v2518_v45 = vcombine.high %v10573_v14, %v12976_v35 }
 0x4da   : > { %v11072_v16 = vrot.slane %v2224_v60, %v7469_v49  ;;  %v2616_v21 = vcombine.high %v10578_v32, %v12976_v35  ;;  %v11087_v9 = vrot.slane %v2322_v23, %v7469_v49  ;;  %v2714_v14 = vcombine.high %v10599_v4, %v12976_v35 }
 0x4db   : > { %v10926_v52 = vpop.permute.xlu1 %5355  ;;  %v10928_v13 = vpop.permute.xlu0 %5357  ;;  %v11090_v60 = vrot.slane %v2420_v30, %v7469_v49  ;;  %v2812_v32 = vcombine.high %v10604_v1, %v12976_v35  ;;  %v11105_v23 = vrot.slane %v2518_v45, %v7469_v49  ;;  %v2910_v4 = vcombine.high %v10625_v31, %v12976_v35  ;;  %v13366_v1 = vld [vmem:[#allocation78_spill] sm:$0xff]  ;;  %v13369_v31 = vld [vmem:[#allocation368_spill] sm:$0xff] }
 0x4dc   : > { %13350 = vst [vmem:[#allocation399_spill] sm:$0xff] %v10926_v52  ;;  %v11108_v30 = vrot.slane %v2616_v21, %v7469_v49  ;;  %v11123_v45 = vrot.slane %v2714_v14, %v7469_v49  ;;  %v968_v2 = vcombine.high %v10961_v12, %v12976_v35 }
 0x4dd   : > { %5535 = vrot.lane.b32.xlu1 %v3711_v58, %s7082_s22  ;;  %5537 = vrot.lane.b32.xlu0 %v3809_v25, %s7082_s22  ;;  %v11126_v21 = vrot.slane %v2812_v32, %v7469_v49  ;;  %v11141_v14 = vrot.slane %v2910_v4, %v7469_v49 }
 0x4df   : > { %v10940_v6 = vpop.permute.xlu1 %5359  ;;  %v10942_v50 = vpop.permute.xlu0 %5361 }
 0x4e0   : > { %13351 = vst [vmem:[#allocation400_spill] sm:$0xff] %v10942_v50 }
 0x4e1   : > { %5539 = vrot.lane.b32.xlu1 %v3907_v51, %s7082_s22  ;;  %5605 = vrot.lane.b32.xlu0 %v10947_v43, %s7083_s7 }
 0x4e3   : > { %v10956_v11 = vpop.permute.xlu1 %5363  ;;  %v10958_v58 = vpop.permute.xlu0 %5365 }
 0x4e4   : > { %13352 = vst [vmem:[#allocation401_spill] sm:$0xff] %v10956_v11  ;;  %v3106_v11 = vcombine.high %v13369_v31, %v12976_v35  ;;  %v13373_v31 = vld [vmem:[#allocation370_spill] sm:$0xff] }
 0x4e5   : > { %5607 = vrot.lane.b32.xlu1 %v10961_v12, %s7083_s7  ;;  %5609 = vrot.lane.b32.xlu0 %v10964_v29, %s7083_s7  ;;  %v3302_v63 = vcombine.high %v13373_v31, %v12976_v35  ;;  %v3498_v31 = vcombine.high %v10703_v37, %v12976_v35  ;;  %v13376_v37 = vld [vmem:[#allocation372_spill] sm:$0xff] }
 0x4e6   : > { %v11159_v4 = vrot.slane %v3106_v11, %v7469_v49 }
 0x4e7   : > { %v10974_v25 = vpop.permute.xlu1 %5367  ;;  %v10976_v51 = vpop.permute.xlu0 %5369  ;;  %v11177_v11 = vrot.slane %v3302_v63, %v7469_v49  ;;  %v11195_v63 = vrot.slane %v3498_v31, %v7469_v49 }
 0x4e8   : > { %13353 = vst [vmem:[#allocation402_spill] sm:$0xff] %v10976_v51 }
 0x4e9   : > { %5611 = vrot.lane.b32.xlu1 %v10979_v40, %s7083_s7  ;;  %5613 = vrot.lane.b32.xlu0 %v10982_v17, %s7083_s7 }
 0x4eb   : > { %v10992_v18 = vpop.permute.xlu1 %5371  ;;  %v10994_v38 = vpop.permute.xlu0 %5373 }
 0x4ec   : > { %13354 = vst [vmem:[#allocation403_spill] sm:$0xff] %v10992_v18 }
 0x4ed   : > { %5615 = vrot.lane.b32.xlu1 %v10997_v28, %s7083_s7  ;;  %5617 = vrot.lane.b32.xlu0 %v11000_v0, %s7083_s7 }
 0x4ef   : > { %v11010_v8 = vpop.permute.xlu1 %5375  ;;  %v11012_v56 = vpop.permute.xlu0 %5377 }
 0x4f0   : > { %13355 = vst [vmem:[#allocation404_spill] sm:$0xff] %v11012_v56 }
 0x4f1   : > { %5619 = vrot.lane.b32.xlu1 %v11015_v27, %s7083_s7  ;;  %5621 = vrot.lane.b32.xlu0 %v11018_v47, %s7083_s7 }
 0x4f3   : > { %v11028_v41 = vpop.permute.xlu1 %5379  ;;  %v11030_v42 = vpop.permute.xlu0 %5381 }
 0x4f4   : > { %13356 = vst [vmem:[#allocation405_spill] sm:$0xff] %v11028_v41  ;;  %13357 = vst [vmem:[#allocation406_spill] sm:$0xff] %v11030_v42  ;;  %v13428_v42 = vld [vmem:[#allocation39_spill] sm:$0xff] }
 0x4f5   : > { %5623 = vrot.lane.b32.xlu1 %v11033_v53, %s7083_s7  ;;  %5625 = vrot.lane.b32.xlu0 %v11036_v55, %s7083_s7 }
 0x4f7   : > { %v11046_v41 = vpop.permute.xlu1 %5383  ;;  %v11048_v56 = vpop.permute.xlu0 %5385 }
 0x4f8   : > { %13358 = vst [vmem:[#allocation407_spill] sm:$0xff] %v11046_v41  ;;  %13359 = vst [vmem:[#allocation408_spill] sm:$0xff] %v11048_v56 }
 0x4f9   : > { %5627 = vrot.lane.b32.xlu1 %v11051_v5, %s7083_s7  ;;  %5629 = vrot.lane.b32.xlu0 %v11054_v22, %s7083_s7 }
 0x4fb   : > { %v11064_v54 = vpop.permute.xlu1 %5387  ;;  %v11066_v56 = vpop.permute.xlu0 %5389 }
 0x4fc   : > { %13360 = vst [vmem:[#allocation409_spill] sm:$0xff] %v11064_v54  ;;  %13361 = vst [vmem:[#allocation410_spill] sm:$0xff] %v11066_v56 }
 0x4fd   : > { %5631 = vrot.lane.b32.xlu1 %v11069_v10, %s7083_s7  ;;  %5633 = vrot.lane.b32.xlu0 %v11072_v16, %s7083_s7 }
 0x4ff   : > { %v11082_v54 = vpop.permute.xlu1 %5391  ;;  %v11084_v18 = vpop.permute.xlu0 %5393 }
 0x500   : > { %13362 = vst [vmem:[#allocation411_spill] sm:$0xff] %v11082_v54  ;;  %13363 = vst [vmem:[#allocation412_spill] sm:$0xff] %v11084_v18 }
 0x501   : > { %5635 = vrot.lane.b32.xlu1 %v11087_v9, %s7083_s7  ;;  %5637 = vrot.lane.b32.xlu0 %v11090_v60, %s7083_s7 }
 0x503   : > { %v11100_v24 = vpop.permute.xlu1 %5395  ;;  %v11102_v18 = vpop.permute.xlu0 %5397 }
 0x504   : > { %13364 = vst [vmem:[#allocation413_spill] sm:$0xff] %v11100_v24  ;;  %13365 = vst [vmem:[#allocation414_spill] sm:$0xff] %v11102_v18  ;;  %v3008_v24 = vcombine.high %v13366_v1, %v12976_v35  ;;  %v13370_v1 = vld [vmem:[#allocation80_spill] sm:$0xff] }
 0x505   : > { %5639 = vrot.lane.b32.xlu1 %v11105_v23, %s7083_s7  ;;  %5641 = vrot.lane.b32.xlu0 %v11108_v30, %s7083_s7  ;;  %v3204_v50 = vcombine.high %v13370_v1, %v12976_v35  ;;  %v13374_v1 = vld [vmem:[#allocation82_spill] sm:$0xff] }
 0x506   : > { %v11144_v32 = vrot.slane %v3008_v24, %v7469_v49 }
 0x507   : > { %v11118_v51 = vpop.permute.xlu1 %5399  ;;  %v11120_v39 = vpop.permute.xlu0 %5401  ;;  %v11162_v24 = vrot.slane %v3204_v50, %v7469_v49 }
 0x508   : > { %13367 = vst [vmem:[#allocation78_spill] sm:$0xff] %v11118_v51  ;;  %13368 = vst [vmem:[#allocation415_spill] sm:$0xff] %v11120_v39  ;;  %v3694_v51 = vcombine.high %v13376_v37, %v12976_v35  ;;  %v13379_v37 = vld [vmem:[#allocation375_spill] sm:$0xff] }
 0x509   : > { %5643 = vrot.lane.b32.xlu1 %v11123_v45, %s7083_s7  ;;  %5645 = vrot.lane.b32.xlu0 %v11126_v21, %s7083_s7  ;;  %v3890_v54 = vcombine.high %v13379_v37, %v12976_v35 }
 0x50b   : > { %v11136_v52 = vpop.permute.xlu1 %5403  ;;  %v11138_v39 = vpop.permute.xlu0 %5405  ;;  %v11225_v37 = vrot.slane %v3890_v54, %v7469_v49 }
 0x50c   : > { %13371 = vst [vmem:[#allocation368_spill] sm:$0xff] %v11136_v52  ;;  %13372 = vst [vmem:[#allocation80_spill] sm:$0xff] %v11138_v39  ;;  %v3400_v52 = vcombine.high %v13374_v1, %v12976_v35  ;;  %v3596_v1 = vcombine.high %v10708_v36, %v12976_v35  ;;  %v13377_v36 = vld [vmem:[#allocation373_spill] sm:$0xff] }
 0x50d   : > { %5647 = vrot.lane.b32.xlu1 %v11141_v14, %s7083_s7  ;;  %5649 = vrot.lane.b32.xlu0 %v11144_v32, %s7083_s7  ;;  %v3792_v19 = vcombine.high %v13377_v36, %v12976_v35 }
 0x50e   : > { %v11180_v50 = vrot.slane %v3400_v52, %v7469_v49  ;;  %v11198_v52 = vrot.slane %v3596_v1, %v7469_v49 }
 0x50f   : > { %v11154_v46 = vpop.permute.xlu1 %5407  ;;  %v11156_v39 = vpop.permute.xlu0 %5409  ;;  %v11214_v31 = vrot.slane %v3792_v19, %v7469_v49 }
 0x510   : > { %13375 = vst [vmem:[#allocation370_spill] sm:$0xff] %v11154_v46 }
 0x511   : > { %5651 = vrot.lane.b32.xlu1 %v11159_v4, %s7083_s7  ;;  %5653 = vrot.lane.b32.xlu0 %v11162_v24, %s7083_s7 }
 0x513   : > { %v11172_v46 = vpop.permute.xlu1 %5411  ;;  %v11174_v20 = vpop.permute.xlu0 %5477 }
 0x515   : > { %5655 = vrot.lane.b32.xlu1 %v11177_v11, %s7083_s7  ;;  %5657 = vrot.lane.b32.xlu0 %v11180_v50, %s7083_s7 }
 0x517   : > { %v11190_v18 = vpop.permute.xlu1 %5479  ;;  %v11192_v15 = vpop.permute.xlu0 %5481 }
 0x518   : > { %13378 = vst [vmem:[#allocation82_spill] sm:$0xff] %v11192_v15  ;;  %v11211_v15 = vrot.slane %v3694_v51, %v7469_v49  ;;  %v870_v51 = vcombine.high %v10947_v43, %v12976_v35  ;;  %v1066_v49 = vcombine.high %v10964_v29, %v12976_v35 }
 0x519   : > { %5659 = vrot.lane.b32.xlu1 %v11195_v63, %s7083_s7  ;;  %5661 = vrot.lane.b32.xlu0 %v11198_v52, %s7083_s7 }
 0x51b   : > { %v11206_v36 = vpop.permute.xlu1 %5483  ;;  %v11208_v3 = vpop.permute.xlu0 %5485 }
 0x51c   : > { %13380 = vst [vmem:[#allocation372_spill] sm:$0xff] %v11206_v36 }
 0x51d   : > { %5663 = vrot.lane.b32.xlu1 %v11211_v15, %s7083_s7  ;;  %5665 = vrot.lane.b32.xlu0 %v11214_v31, %s7083_s7 }
 0x51f   : > { %v11220_v1 = vpop.permute.xlu1 %5487  ;;  %v11222_v56 = vpop.permute.xlu0 %5489 }
 0x520   : > { %13381 = vst [vmem:[#allocation373_spill] sm:$0xff] %v11222_v56  ;;  %v13401_v56 = vld [vmem:[#allocation91_spill] sm:$0xff] }
 0x521   : > { %5667 = vrot.lane.b32.xlu1 %v11225_v37, %s7083_s7  ;;  %5733 = vrot.lane.b32.xlu0 %v870_v51, %s7084_s13  ;;  %v1164_v51 = vcombine.high %v10979_v40, %v12976_v35 }
 0x523   : > { %v11232_v19 = vpop.permute.xlu1 %5491  ;;  %v11234_v36 = vpop.permute.xlu0 %5493 }
 0x524   : > { %13382 = vst [vmem:[#allocation375_spill] sm:$0xff] %v11232_v19  ;;  %v1262_v19 = vcombine.high %v10982_v17, %v12976_v35 }
 0x525   : > { %5735 = vrot.lane.b32.xlu1 %v968_v2, %s7084_s13  ;;  %5737 = vrot.lane.b32.xlu0 %v1066_v49, %s7084_s13  ;;  %v1360_v2 = vcombine.high %v10997_v28, %v12976_v35  ;;  %v1458_v49 = vcombine.high %v11000_v0, %v12976_v35 }
 0x527   : > { %v11242_v54 = vpop.permute.xlu1 %5495  ;;  %v11244_v43 = vpop.permute.xlu0 %5497 }
 0x528   : > { %13383 = vst [vmem:[#allocation416_spill] sm:$0xff] %v11244_v43  ;;  %v13399_v43 = vld [vmem:[#allocation20_spill] sm:$0xff] }
 0x529   : > { %5739 = vrot.lane.b32.xlu1 %v1164_v51, %s7084_s13  ;;  %5741 = vrot.lane.b32.xlu0 %v1262_v19, %s7084_s13  ;;  %v1556_v19 = vcombine.high %v11015_v27, %v12976_v35  ;;  %v1654_v51 = vcombine.high %v11018_v47, %v12976_v35 }
 0x52b   : > { %v11252_v12 = vpop.permute.xlu1 %5499  ;;  %v11254_v29 = vpop.permute.xlu0 %5501 }
 0x52c   : > { %13384 = vst [vmem:[#allocation417_spill] sm:$0xff] %v11252_v12  ;;  %v13397_v12 = vld [vmem:[#allocation18_spill] sm:$0xff] }
 0x52d   : > { %5743 = vrot.lane.b32.xlu1 %v1360_v2, %s7084_s13  ;;  %5745 = vrot.lane.b32.xlu0 %v1458_v49, %s7084_s13  ;;  %v1752_v2 = vcombine.high %v11033_v53, %v12976_v35  ;;  %v1850_v49 = vcombine.high %v11036_v55, %v12976_v35 }
 0x52f   : > { %v11262_v40 = vpop.permute.xlu1 %5503  ;;  %v11264_v17 = vpop.permute.xlu0 %5505 }
 0x530   : > { %13385 = vst [vmem:[#allocation418_spill] sm:$0xff] %v11264_v17  ;;  %v13395_v17 = vld [vmem:[#allocation15_spill] sm:$0xff] }
 0x531   : > { %5747 = vrot.lane.b32.xlu1 %v1556_v19, %s7084_s13  ;;  %5749 = vrot.lane.b32.xlu0 %v1654_v51, %s7084_s13  ;;  %v1948_v19 = vcombine.high %v11051_v5, %v12976_v35  ;;  %v2046_v51 = vcombine.high %v11054_v22, %v12976_v35  ;;  %v13393_v5 = vld [vmem:[#allocation16_spill] sm:$0xff]  ;;  %v13394_v22 = vld [vmem:[#allocation87_spill] sm:$0xff] }
 0x533   : > { %v11272_v28 = vpop.permute.xlu1 %5507  ;;  %v11274_v0 = vpop.permute.xlu0 %5509 }
 0x534   : > { %13386 = vst [vmem:[#allocation419_spill] sm:$0xff] %v11272_v28  ;;  %13387 = vst [vmem:[#allocation420_spill] sm:$0xff] %v11274_v0 }
 0x535   : > { %5751 = vrot.lane.b32.xlu1 %v1752_v2, %s7084_s13  ;;  %5753 = vrot.lane.b32.xlu0 %v1850_v49, %s7084_s13  ;;  %v2144_v2 = vcombine.high %v11069_v10, %v12976_v35  ;;  %v2242_v49 = vcombine.high %v11072_v16, %v12976_v35  ;;  %v13398_v10 = vld [vmem:[#allocation90_spill] sm:$0xff] }
 0x536   : > { %v11316_v16 = vsel %vm5829_vm0, %v13399_v43, %v13398_v10  ;;  %v13411_v43 = vld [vmem:[#allocation95_spill] sm:$0xff]  ;;  %v13412_v10 = vld [vmem:[#allocation29_spill] sm:$0xff] }
 0x537   : > { %v11282_v27 = vpop.permute.xlu1 %5511  ;;  %v11284_v47 = vpop.permute.xlu0 %5513  ;;  %v11337_v62 = vsel %vm5829_vm0, %v13412_v10, %v13411_v43  ;;  %v13420_v10 = vld [vmem:[#allocation98_spill] sm:$0xff] }
 0x538   : > { %13388 = vst [vmem:[#allocation421_spill] sm:$0xff] %v11282_v27  ;;  %13389 = vst [vmem:[#allocation422_spill] sm:$0xff] %v11284_v47  ;;  %v13392_v47 = vld [vmem:[#allocation88_spill] sm:$0xff]  ;;  %v13405_v27 = vld [vmem:[#allocation93_spill] sm:$0xff] }
 0x539   : > { %5755 = vrot.lane.b32.xlu1 %v1948_v19, %s7084_s13  ;;  %5757 = vrot.lane.b32.xlu0 %v2046_v51, %s7084_s13  ;;  %v5831_v28 = vsel %vm5829_vm0, %v13393_v5, %v13392_v47  ;;  %v5830_v19 = vsel %vm5829_vm0, %v13395_v17, %v13394_v22  ;;  %v13396_v51 = vld [vmem:[#allocation89_spill] sm:$0xff]  ;;  %13400 = vst [vmem:[#allocation88_spill] sm:$0xff] %v11316_v16  ;;  %v13402_v47 = vld [vmem:[#allocation22_spill] sm:$0xff]  ;;  %v13404_v17 = vld [vmem:[#allocation24_spill] sm:$0xff] }
 0x53a   : > { %v5834_v5 = vsel %vm5829_vm0, %v13402_v47, %v13401_v56  ;;  %v13426_v16 = vld [vmem:[#allocation37_spill] sm:$0xff] }
 0x53b   : > { %v11292_v53 = vpop.permute.xlu1 %5515  ;;  %v11294_v55 = vpop.permute.xlu0 %5517 }
 0x53c   : > { %13390 = vst [vmem:[#allocation423_spill] sm:$0xff] %v11292_v53  ;;  %13391 = vst [vmem:[#allocation424_spill] sm:$0xff] %v11294_v55  ;;  %v11309_v53 = vsel %vm5829_vm0, %v13397_v12, %v13396_v51  ;;  %v13403_v55 = vld [vmem:[#allocation92_spill] sm:$0xff]  ;;  %v13406_v12 = vld [vmem:[#allocation26_spill] sm:$0xff] }
 0x53d   : > { %5759 = vrot.lane.b32.xlu1 %v2144_v2, %s7084_s13  ;;  %5761 = vrot.lane.b32.xlu0 %v2242_v49, %s7084_s13  ;;  %v5835_v22 = vsel %vm5829_vm0, %v13404_v17, %v13403_v55  ;;  %v11327_v51 = vsel %vm5829_vm0, %v13406_v12, %v13405_v27  ;;  %v13408_v2 = vld [vmem:[#allocation94_spill] sm:$0xff]  ;;  %v13409_v49 = vld [vmem:[#allocation27_spill] sm:$0xff]  ;;  %v2340_v55 = vcombine.high %v11087_v9, %v12976_v35  ;;  %v13415_v17 = vld [vmem:[#allocation96_spill] sm:$0xff] }
 0x53e   : > { %13407 = vst [vmem:[#allocation16_spill] sm:$0xff] %v11327_v51  ;;  %v11332_v41 = vsel %vm5829_vm0, %v13409_v49, %v13408_v2  ;;  %v2438_v27 = vcombine.high %v11090_v60, %v12976_v35  ;;  %v13416_v12 = vld [vmem:[#allocation31_spill] sm:$0xff]  ;;  %v13417_v49 = vld [vmem:[#allocation97_spill] sm:$0xff]  ;;  %v13424_v9 = vld [vmem:[#allocation36_spill] sm:$0xff] }
 0x53f   : > { %13410 = vst [vmem:[#allocation87_spill] sm:$0xff] %v11332_v41  ;;  %v11339_v56 = vpop.permute.xlu1 %5519  ;;  %v11341_v47 = vpop.permute.xlu0 %5521  ;;  %v11350_v2 = vsel %vm5829_vm0, %v13416_v12, %v13415_v17  ;;  %v13418_v41 = vld [vmem:[#allocation32_spill] sm:$0xff]  ;;  %v13423_v51 = vld [vmem:[#allocation99_spill] sm:$0xff]  ;;  %v13427_v12 = vld [vmem:[#allocation101_spill] sm:$0xff] }
 0x540   : > { %13413 = vst [vmem:[#allocation15_spill] sm:$0xff] %v11339_v56  ;;  %13414 = vst [vmem:[#allocation89_spill] sm:$0xff] %v11341_v47  ;;  %v11355_v43 = vsel %vm5829_vm0, %v13418_v41, %v13417_v49  ;;  %v13421_v56 = vld [vmem:[#allocation34_spill] sm:$0xff]  ;;  %v11365_v0 = vsel %vm5829_vm0, %v13424_v9, %v13423_v51  ;;  %v13425_v60 = vld [vmem:[#allocation100_spill] sm:$0xff]  ;;  %v11375_v41 = vsel %vm5829_vm0, %v13428_v42, %v13427_v12 }
 0x541   : > { %13419 = vst [vmem:[#allocation18_spill] sm:$0xff] %v11355_v43  ;;  %v11360_v47 = vsel %vm5829_vm0, %v13421_v56, %v13420_v10  ;;  %v11370_v17 = vsel %vm5829_vm0, %v13426_v16, %v13425_v60  ;;  %13429 = vst [vmem:[#allocation20_spill] sm:$0xff] %v11375_v41  ;;  %v13430_v49 = vld [vmem:[#allocation102_spill] sm:$0xff]  ;;  %v13431_v43 = vld [vmem:[#allocation41_spill] sm:$0xff]  ;;  %5763 = vrot.lane.b32.xlu1 %v2340_v55, %s7084_s13  ;;  %5765 = vrot.lane.b32.xlu0 %v2438_v27, %s7084_s13 }
 0x542   : > { %13422 = vst [vmem:[#allocation90_spill] sm:$0xff] %v11360_v47  ;;  %v11380_v56 = vsel %vm5829_vm0, %v13431_v43, %v13430_v49  ;;  %v2536_v16 = vcombine.high %v11105_v23, %v12976_v35  ;;  %v2634_v51 = vcombine.high %v11108_v30, %v12976_v35  ;;  %v2732_v42 = vcombine.high %v11123_v45, %v12976_v35  ;;  %v13435_v30 = vld [vmem:[#allocation117_spill] sm:$0xff]  ;;  %v13436_v60 = vld [vmem:[#allocation75_spill] sm:$0xff]  ;;  %v13443_v41 = vld [vmem:[#allocation124_spill] sm:$0xff] }
 0x543   : > { %13432 = vst [vmem:[#allocation91_spill] sm:$0xff] %v11380_v56  ;;  %v11390_v10 = vpop.permute.xlu1 %5523  ;;  %v11392_v9 = vpop.permute.xlu0 %5525  ;;  %v2830_v43 = vcombine.high %v11126_v21, %v12976_v35  ;;  %v2928_v55 = vcombine.high %v11141_v14, %v12976_v35  ;;  %v3026_v27 = vcombine.high %v11144_v32, %v12976_v35  ;;  %v11402_v23 = vcombine.high %v11159_v4, %v12976_v35  ;;  %v13437_v32 = vld [vmem:[#allocation118_spill] sm:$0xff]  ;;  %v13438_v49 = vld [vmem:[#allocation77_spill] sm:$0xff] }
 0x544   : > { %13433 = vst [vmem:[#allocation22_spill] sm:$0xff] %v11390_v10  ;;  %13434 = vst [vmem:[#allocation92_spill] sm:$0xff] %v11392_v9  ;;  %v5860_v45 = vsel %vm5829_vm0, %v13436_v60, %v13435_v30  ;;  %v11409_v12 = vcombine.high %v11162_v24, %v12976_v35  ;;  %v11413_v21 = vcombine.high %v11177_v11, %v12976_v35  ;;  %v13439_v10 = vld [vmem:[#allocation119_spill] sm:$0xff]  ;;  %v13441_v24 = vld [vmem:[#allocation120_spill] sm:$0xff] }
 0x545   : > { %v11417_v14 = vcombine.high %v11180_v50, %v12976_v35  ;;  %v5861_v4 = vsel %vm5829_vm0, %v13438_v49, %v13437_v32  ;;  %v5863_v9 = vsel %vm5862_vm1, %v5830_v19, %v13439_v10  ;;  %v13440_v30 = vld [vmem:[#allocation147_spill] sm:$0xff]  ;;  %5767 = vrot.lane.b32.xlu1 %v2536_v16, %s7084_s13  ;;  %5769 = vrot.lane.b32.xlu0 %v2634_v51, %s7084_s13  ;;  %v13445_v10 = vld [vmem:[#allocation70_spill] sm:$0xff]  ;;  %v13447_v51 = vld [vmem:[#allocation65_spill] sm:$0xff] }
 0x546   : > { %v5893_v60 = vsel %vm5862_vm1, %v5860_v45, %v13440_v30  ;;  %v5864_v11 = vsel %vm5862_vm1, %v5831_v28, %v13441_v24  ;;  %v13442_v50 = vld [vmem:[#allocation123_spill] sm:$0xff]  ;;  %v11434_v32 = vsel %vm5862_vm1, %v5835_v22, %v13443_v41  ;;  %v5894_v45 = vsel %vm5862_vm1, %v5861_v4, %v13445_v10  ;;  %v13446_v30 = vld [vmem:[#allocation73_spill] sm:$0xff]  ;;  %v13448_v24 = vld [vmem:[#allocation76_spill] sm:$0xff] }
 0x547   : > { %v5867_v56 = vsel %vm5862_vm1, %v5834_v5, %v13442_v50  ;;  %v13444_v49 = vld [vmem:[#allocation179_spill] sm:$0xff]  ;;  %v5896_v16 = vsel %vm5895_vm2, %v5863_v9, %v13446_v30  ;;  %v11444_v28 = vpop.permute.xlu1 %5527  ;;  %v11446_v5 = vpop.permute.xlu0 %5529  ;;  %v5897_v22 = vsel %vm5895_vm2, %v5864_v11, %v13448_v24  ;;  %v13449_v41 = vld [vmem:[#allocation153_spill] sm:$0xff]  ;;  %v13454_v11 = vld [vmem:[#allocation182_spill] sm:$0xff] }
 0x548   : > { %v5926_v19 = vsel %vm5895_vm2, %v5893_v60, %v13444_v49  ;;  %v5900_v60 = vsel %vm5895_vm2, %v5867_v56, %v13449_v41  ;;  %v13450_v50 = vld [vmem:[#allocation235_spill] sm:$0xff]  ;;  %v13451_v49 = vld [vmem:[#allocation180_spill] sm:$0xff]  ;;  %v13452_v10 = vld [vmem:[#allocation181_spill] sm:$0xff]  ;;  %v5930_v56 = vsel %vm5928_vm3, %v5897_v22, %v13454_v11 }
 0x549   : > { %v5959_v47 = vsel %vm5928_vm3, %v5926_v19, %v13447_v51  ;;  %v5927_v9 = vsel %vm5895_vm2, %v5894_v45, %v13451_v49  ;;  %v5929_v19 = vsel %vm5928_vm3, %v5896_v16, %v13452_v10  ;;  %v13453_v30 = vld [vmem:[#allocation271_spill] sm:$0xff]  ;;  %5771 = vrot.lane.b32.xlu1 %v2732_v42, %s7084_s13  ;;  %5773 = vrot.lane.b32.xlu0 %v2830_v43, %s7084_s13  ;;  %v13458_v49 = vld [vmem:[#allocation148_spill] sm:$0xff]  ;;  %v13459_v10 = vld [vmem:[#allocation269_spill] sm:$0xff] }
 0x54a   : > { %v5992_v4 = vsel %vm5961_vm4, %v5959_v47, %v13450_v50  ;;  %v13455_v24 = vld [vmem:[#allocation207_spill] sm:$0xff]  ;;  %v13457_v50 = vld [vmem:[#allocation208_spill] sm:$0xff]  ;;  %v13461_v11 = vld [vmem:[#allocation237_spill] sm:$0xff] }
 0x54b   : > { %v6025_v51 = vsel %vm5994_vm5, %v5992_v4, %v13453_v30  ;;  %v5960_v47 = vsel %vm5928_vm3, %v5927_v9, %v13455_v24  ;;  %v13456_v41 = vld [vmem:[#allocation307_spill] sm:$0xff]  ;;  %v5962_v16 = vsel %vm5961_vm4, %v5929_v19, %v13457_v50  ;;  %v5963_v4 = vsel %vm5961_vm4, %v5930_v56, %v13458_v49  ;;  %v11474_v43 = vpop.permute.xlu1 %5531  ;;  %v11476_v22 = vpop.permute.xlu0 %5533  ;;  %v13460_v30 = vld [vmem:[#allocation236_spill] sm:$0xff] }
 0x54c   : > { %v6058_v45 = vsel %vm6027_vm6, %v6025_v51, %v13456_v41  ;;  %v5993_v9 = vsel %vm5961_vm4, %v5960_v47, %v13460_v30  ;;  %v5995_v51 = vsel %vm5994_vm5, %v5962_v16, %v13461_v11  ;;  %v13462_v24 = vld [vmem:[#allocation363_spill] sm:$0xff]  ;;  %v13463_v41 = vld [vmem:[#allocation274_spill] sm:$0xff]  ;;  %v13466_v47 = vld [vmem:[#allocation308_spill] sm:$0xff] }
 0x54d   : > { %v6091_v42 = vsel %vm6060_vm7, %v6058_v45, %v13459_v10  ;;  %v6026_v56 = vsel %vm5994_vm5, %v5993_v9, %v13463_v41  ;;  %v13464_v50 = vld [vmem:[#allocation275_spill] sm:$0xff]  ;;  %5775 = vrot.lane.b32.xlu1 %v2928_v55, %s7084_s13  ;;  %5777 = vrot.lane.b32.xlu0 %v3026_v27, %s7084_s13  ;;  %v13467_v30 = vld [vmem:[#allocation309_spill] sm:$0xff]  ;;  %v13468_v11 = vld [vmem:[#allocation272_spill] sm:$0xff] }
 0x54e   : > { %v6124_v19 = vsel %vm6093_vm8, %v6091_v42, %v13462_v24  ;;  %v6028_v45 = vsel %vm6027_vm6, %v5995_v51, %v13464_v50  ;;  %v13465_v49 = vld [vmem:[#allocation371_spill] sm:$0xff]  ;;  %v6059_v16 = vsel %vm6027_vm6, %v6026_v56, %v13466_v47  ;;  %v13469_v24 = vld [vmem:[#allocation273_spill] sm:$0xff]  ;;  %v13470_v56 = vld [vmem:[#allocation238_spill] sm:$0xff] }
 0x54f   : > { %v6157_v10 = vsel %vm6126_vm9, %v6124_v19, %v13465_v49  ;;  %v6061_v42 = vsel %vm6060_vm7, %v6028_v45, %v13467_v30  ;;  %v6092_v51 = vsel %vm6060_vm7, %v6059_v16, %v13468_v11  ;;  %v11504_v27 = vpop.permute.xlu1 %5535  ;;  %v5538_v41 = vpop.permute.xlu0 %5537  ;;  %v5996_v50 = vsel %vm5994_vm5, %v5963_v4, %v13470_v56  ;;  %v13471_v45 = vld [vmem:[#allocation364_spill] sm:$0xff]  ;;  %v13472_v49 = vld [vmem:[#allocation365_spill] sm:$0xff]  ;;  %v13473_v16 = vld [vmem:[#allocation278_spill] sm:$0xff] }
 0x550   : > { %v6190_v9 = vsel %vm6159_vm10, %v6157_v10, %v10896_v61  ;;  %v6094_v19 = vsel %vm6093_vm8, %v6061_v42, %v13469_v24  ;;  %v6125_v61 = vsel %vm6093_vm8, %v6092_v51, %v13471_v45  ;;  %v6029_v30 = vsel %vm6027_vm6, %v5996_v50, %v13473_v16  ;;  %v13476_v4 = vld [vmem:[#allocation185_spill] sm:$0xff]  ;;  %v13477_v24 = vld [vmem:[#allocation310_spill] sm:$0xff] }
 0x551   : > { %v6223_v55 = vsel %vm6192_vm11, %v6190_v9, %v11156_v39  ;;  %v6127_v10 = vsel %vm6126_vm9, %v6094_v19, %v13472_v49  ;;  %v13474_v39 = vld [vmem:[#allocation84_spill] sm:$0xff]  ;;  %v13475_v9 = vld [vmem:[#allocation85_spill] sm:$0xff]  ;;  %5779 = vrot.lane.b32.xlu1 %v11402_v23, %s7084_s13  ;;  %5781 = vrot.lane.b32.xlu0 %v11409_v12, %s7084_s13  ;;  %v5933_v51 = vsel %vm5928_vm3, %v5900_v60, %v13476_v4 }
 0x552   : > { %v11513_v47 = vsel %vm6225_vm12, %v6223_v55, %v5538_v41  ;;  %v6158_v42 = vsel %vm6126_vm9, %v6125_v61, %v13474_v39  ;;  %v6160_v11 = vsel %vm6159_vm10, %v6127_v10, %v13475_v9  ;;  %v6062_v19 = vsel %vm6060_vm7, %v6029_v30, %v13477_v24  ;;  %v13478_v56 = vld [vmem:[#allocation209_spill] sm:$0xff]  ;;  %v13479_v23 = vld [vmem:[#allocation276_spill] sm:$0xff] }
 0x553   : > { %v6191_v55 = vsel %vm6159_vm10, %v6158_v42, %v10904_v33  ;;  %v6193_v41 = vsel %vm6192_vm11, %v6160_v11, %v10906_v44  ;;  %v5966_v50 = vsel %vm5961_vm4, %v5933_v51, %v13478_v56  ;;  %v6095_v45 = vsel %vm6093_vm8, %v6062_v19, %v13479_v23  ;;  %v5540_v61 = vpop.permute.xlu1 %5539  ;;  %v5606_v49 = vpop.permute.xlu0 %5605  ;;  %v13480_v10 = vld [vmem:[#allocation241_spill] sm:$0xff]  ;;  %v13483_v42 = vld [vmem:[#allocation154_spill] sm:$0xff] }
 0x554   : > { %v6224_v12 = vsel %vm6192_vm11, %v6191_v55, %v11172_v46  ;;  %v6226_v60 = vsel %vm6225_vm12, %v6193_v41, %v11174_v20  ;;  %v5999_v33 = vsel %vm5994_vm5, %v5966_v50, %v13480_v10  ;;  %v13481_v16 = vld [vmem:[#allocation13_spill] sm:$0xff]  ;;  %v5901_v46 = vsel %vm5895_vm2, %v11434_v32, %v13483_v42  ;;  %v13485_v11 = vld [vmem:[#allocation86_spill] sm:$0xff] }
 0x555   : > { %v6128_v44 = vsel %vm6126_vm9, %v6095_v45, %v13481_v16  ;;  %v11546_v30 = vsel %vm6225_vm12, %v6224_v12, %v5540_v61  ;;  %v11549_v39 = vsel %vm6258_vm13, %v6226_v60, %v5606_v49  ;;  %v13484_v9 = vld [vmem:[#allocation281_spill] sm:$0xff]  ;;  %5783 = vrot.lane.b32.xlu1 %v11413_v21, %s7084_s13  ;;  %5785 = vrot.lane.b32.xlu0 %v11417_v14, %s7084_s13  ;;  %v13486_v51 = vld [vmem:[#allocation186_spill] sm:$0xff] }
 0x556   : > { %13482 = vst [vmem:[#allocation24_spill] sm:$0xff] %v11546_v30  ;;  %v6032_v20 = vsel %vm6027_vm6, %v5999_v33, %v13484_v9  ;;  %v6161_v4 = vsel %vm6159_vm10, %v6128_v44, %v13485_v11  ;;  %v5934_v24 = vsel %vm5928_vm3, %v5901_v46, %v13486_v51  ;;  %v13487_v19 = vld [vmem:[#allocation313_spill] sm:$0xff]  ;;  %v3516_v41 = vcombine.high %v11195_v63, %v12976_v35  ;;  %v13488_v56 = vld [vmem:[#allocation210_spill] sm:$0xff] }
 0x557   : > { %v6065_v55 = vsel %vm6060_vm7, %v6032_v20, %v13487_v19  ;;  %v6194_v32 = vsel %vm6192_vm11, %v6161_v4, %v10914_v26  ;;  %v5967_v50 = vsel %vm5961_vm4, %v5934_v24, %v13488_v56  ;;  %v13489_v23 = vld [vmem:[#allocation337_spill] sm:$0xff]  ;;  %v5608_v45 = vpop.permute.xlu1 %5607  ;;  %v11576_v12 = vpop.permute.xlu0 %5609  ;;  %v3614_v60 = vcombine.high %v11198_v52, %v12976_v35  ;;  %v13490_v26 = vld [vmem:[#allocation127_spill] sm:$0xff]  ;;  %v13491_v61 = vld [vmem:[#allocation242_spill] sm:$0xff] }
 0x558   : > { %v6098_v21 = vsel %vm6093_vm8, %v6065_v55, %v13489_v23  ;;  %v6227_v14 = vsel %vm6225_vm12, %v6194_v32, %v11190_v18  ;;  %v5871_v63 = vsel %vm5862_vm1, %v11337_v62, %v13490_v26  ;;  %v6000_v49 = vsel %vm5994_vm5, %v5967_v50, %v13491_v61  ;;  %v13492_v10 = vld [vmem:[#allocation17_spill] sm:$0xff]  ;;  %v13494_v42 = vld [vmem:[#allocation282_spill] sm:$0xff] }
 0x559   : > { %v6131_v33 = vsel %vm6126_vm9, %v6098_v21, %v13492_v10  ;;  %v11588_v16 = vsel %vm6258_vm13, %v6227_v14, %v5608_v45  ;;  %v13493_v18 = vld [vmem:[#allocation157_spill] sm:$0xff]  ;;  %v6033_v46 = vsel %vm6027_vm6, %v6000_v49, %v13494_v42  ;;  %5787 = vrot.lane.b32.xlu1 %v3516_v41, %s7084_s13  ;;  %5789 = vrot.lane.b32.xlu0 %v3614_v60, %s7084_s13  ;;  %v13497_v11 = vld [vmem:[#allocation314_spill] sm:$0xff]  ;;  %v13500_v21 = vld [vmem:[#allocation128_spill] sm:$0xff] }
 0x55a   : > { %v5904_v44 = vsel %vm5895_vm2, %v5871_v63, %v13493_v18  ;;  %v13495_v52 = vld [vmem:[#allocation377_spill] sm:$0xff]  ;;  %v6066_v4 = vsel %vm6060_vm7, %v6033_v46, %v13497_v11  ;;  %v3712_v24 = vcombine.high %v11211_v15, %v12976_v35  ;;  %v13499_v32 = vld [vmem:[#allocation338_spill] sm:$0xff]  ;;  %v5872_v15 = vsel %vm5862_vm1, %v11350_v2, %v13500_v21  ;;  %v13502_v60 = vld [vmem:[#allocation19_spill] sm:$0xff] }
 0x55b   : > { %v6164_v9 = vsel %vm6159_vm10, %v6131_v33, %v13495_v52  ;;  %v13496_v62 = vld [vmem:[#allocation189_spill] sm:$0xff]  ;;  %v6099_v41 = vsel %vm6093_vm8, %v6066_v4, %v13499_v32  ;;  %v11613_v50 = vpop.permute.xlu1 %5611  ;;  %v5614_v23 = vpop.permute.xlu0 %5613  ;;  %v13503_v63 = vld [vmem:[#allocation158_spill] sm:$0xff]  ;;  %v6637_v33 = vld [vmem:[%s7291_s25] sm:$0xff] }
 0x55c   : > { %v5937_v20 = vsel %vm5928_vm3, %v5904_v44, %v13496_v62  ;;  %v6197_v51 = vsel %vm6192_vm11, %v6164_v9, %v10928_v13  ;;  %v13498_v19 = vld [vmem:[#allocation213_spill] sm:$0xff]  ;;  %v3810_v13 = vcombine.high %v11214_v31, %v12976_v35  ;;  %v6132_v26 = vsel %vm6126_vm9, %v6099_v41, %v13502_v60  ;;  %v13505_v10 = vld [vmem:[#allocation378_spill] sm:$0xff]  ;;  %v6638_v18 = vld [vmem:[%s7291_s25 + $0x8] sm:$0xff]  ;;  %6807 = vst.msk [vmem:[%s11651_s21 + $0x40] sm:$0xff] %vm6628_vm14, %v6637_v33 }
 0x55d   : > { %v5970_v55 = vsel %vm5961_vm4, %v5937_v20, %v13498_v19  ;;  %v6230_v56 = vsel %vm6225_vm12, %v6197_v51, %v11208_v3  ;;  %v13501_v14 = vld [vmem:[#allocation245_spill] sm:$0xff]  ;;  %v5905_v61 = vsel %vm5895_vm2, %v5872_v15, %v13503_v63  ;;  %v6165_v2 = vsel %vm6159_vm10, %v6132_v26, %v13505_v10  ;;  %5791 = vrot.lane.b32.xlu1 %v3712_v24, %s7084_s13  ;;  %v13506_v44 = vld [vmem:[#allocation103_spill] sm:$0xff]  ;;  %v13507_v42 = vld [vmem:[#allocation42_spill] sm:$0xff] }
 0x55e   : > { %v6003_v45 = vsel %vm5994_vm5, %v5970_v55, %v13501_v14  ;;  %v11625_v3 = vsel %vm6258_vm13, %v6230_v56, %v5614_v23  ;;  %v13504_v31 = vld [vmem:[#allocation285_spill] sm:$0xff]  ;;  %5793 = vrot.lane.b32.xlu0 %v3810_v13, %s7084_s13  ;;  %v11640_v46 = vsel %vm5829_vm0, %v13507_v42, %v13506_v44  ;;  %v13508_v52 = vld [vmem:[#allocation190_spill] sm:$0xff]  ;;  %v6198_v11 = vsel %vm6192_vm11, %v6165_v2, %v10940_v6  ;;  %v6641_v24 = vld [vmem:[%s7291_s25 + $0x20] sm:$0xff] }
 0x55f   : > { %v6036_v49 = vsel %vm6027_vm6, %v6003_v45, %v13504_v31  ;;  %v5938_v9 = vsel %vm5928_vm3, %v5905_v61, %v13508_v52  ;;  %v13509_v62 = vld [vmem:[#allocation317_spill] sm:$0xff]  ;;  %v6640_v51 = vld [vmem:[%s7291_s25 + $0x18] sm:$0xff]  ;;  %6808 = vst.msk [vmem:[%s11651_s21 + $0x48] sm:$0xff] %vm6628_vm14, %v6638_v18  ;;  %v6231_v41 = vsel %vm6225_vm12, %v6198_v11, %v11220_v1  ;;  %v5616_v56 = vpop.permute.xlu1 %5615  ;;  %v11663_v23 = vpop.permute.xlu0 %5617  ;;  %v3908_v13 = vcombine.high %v11225_v37, %v12976_v35  ;;  %v6642_v21 = vld [vmem:[%s7291_s25 + $0x28] sm:$0xff] }
 0x560   : > { %v6069_v20 = vsel %vm6060_vm7, %v6036_v49, %v13509_v62  ;;  %v6639_v4 = vld [vmem:[%s7291_s25 + $0x10] sm:$0xff]  ;;  %v13510_v19 = vld [vmem:[#allocation214_spill] sm:$0xff]  ;;  %6810 = vst.msk [vmem:[%s11651_s21 + $0x58] sm:$0xff] %vm6628_vm14, %v6640_v51  ;;  %6811 = vst.msk [vmem:[%s11651_s21 + $0x60] sm:$0xff] %vm6628_vm14, %v6641_v24  ;;  %v11684_v35 = vsel %vm6258_vm13, %v6231_v41, %v5616_v56 }
 0x561   : > { %v5971_v55 = vsel %vm5961_vm4, %v5938_v9, %v13510_v19  ;;  %v13511_v32 = vld [vmem:[#allocation341_spill] sm:$0xff]  ;;  %v6644_v14 = vld [vmem:[%s7291_s25 + $0x38] sm:$0xff]  ;;  %6809 = vst.msk [vmem:[%s11651_s21 + $0x50] sm:$0xff] %vm6628_vm14, %v6639_v4  ;;  %v13512_v45 = vld [vmem:[#allocation131_spill] sm:$0xff]  ;;  %5795 = vrot.lane.b32.xlu1 %v3908_v13, %s7084_s13 }
 0x562   : > { %v6102_v6 = vsel %vm6093_vm8, %v6069_v20, %v13511_v32  ;;  %v6643_v15 = vld [vmem:[%s7291_s25 + $0x30] sm:$0xff]  ;;  %v5875_v1 = vsel %vm5862_vm1, %v11365_v0, %v13512_v45  ;;  %v13513_v60 = vld [vmem:[#allocation246_spill] sm:$0xff]  ;;  %6812 = vst.msk [vmem:[%s11651_s21 + $0x68] sm:$0xff] %vm6628_vm14, %v6642_v21  ;;  %6814 = vst.msk [vmem:[%s11651_s21 + $0x78] sm:$0xff] %vm6628_vm14, %v6644_v14  ;;  %s6822_s25 = sshll.u32 %s7052_s18, 11  ;;  %s6974_s18 = scalar_lea.vmem %s12636_s26, 2048 }
 0x563   : > { %v6004_v26 = vsel %vm5994_vm5, %v5971_v55, %v13513_v60  ;;  %v13514_v63 = vld [vmem:[#allocation25_spill] sm:$0xff]  ;;  %6813 = vst.msk [vmem:[%s11651_s21 + $0x70] sm:$0xff] %vm6628_vm14, %v6643_v15  ;;  %v13515_v37 = vld [vmem:[#allocation104_spill] sm:$0xff]  ;;  %v13518_v2 = vld [vmem:[#allocation286_spill] sm:$0xff]  ;;  %v11724_v56 = vpop.permute.xlu1 %5619  ;;  %v5622_v13 = vpop.permute.xlu0 %5621  ;;  %s12634_s9 = scalar_lea.hbm %s12692_s4, %s6822_s25  ;;  %p6975_p0 = scmp.ne.s32.totalorder %s12636_s26, %s6974_s18 }
 0x564   : > { %v6135_v61 = vsel %vm6126_vm9, %v6102_v6, %v13514_v63  ;;  %v13516_v31 = vld [vmem:[#allocation44_spill] sm:$0xff]  ;;  %v13517_v0 = vld [vmem:[#allocation161_spill] sm:$0xff]  ;;  %v6037_v33 = vsel %vm6027_vm6, %v6004_v26, %v13518_v2  ;;  %v13520_v42 = vld [vmem:[#allocation46_spill] sm:$0xff]  ;;  %p6982_p10 = scmp.lt.s32.totalorder %s6980_s6, %s6974_s18 }
 0x565   : > { %v5847_v49 = vsel %vm5829_vm0, %v13516_v31, %v13515_v37  ;;  %v5908_v10 = vsel %vm5895_vm2, %v5875_v1, %v13517_v0  ;;  %v6168_v18 = vsel %vm6159_vm10, %v6135_v61, %v10786_v34  ;;  %v13519_v44 = vld [vmem:[#allocation105_spill] sm:$0xff]  ;;  %v13522_v20 = vld [vmem:[#allocation318_spill] sm:$0xff]  ;;  %v13524_v24 = vld [vmem:[#allocation47_spill] sm:$0xff]  ;;  %p6976_p12 = pnand %p6975_p0, %p13830_p3 }
 0x566   : > { %v11705_v52 = vsel %vm5829_vm0, %v13520_v42, %v13519_v44  ;;  %v13521_v9 = vld [vmem:[#allocation193_spill] sm:$0xff]  ;;  %v6070_v11 = vsel %vm6060_vm7, %v6037_v33, %v13522_v20  ;;  %v6201_v4 = vsel %vm6192_vm11, %v6168_v18, %v10958_v58  ;;  %v13523_v51 = vld [vmem:[#allocation106_spill] sm:$0xff]  ;;  %v13527_v21 = vld [vmem:[#allocation132_spill] sm:$0xff]  ;;  %p6983_p9 = por %p6982_p10, %p6981_p7 }
 0x567   : > { %v5941_v62 = vsel %vm5928_vm3, %v5908_v10, %v13521_v9  ;;  %v11716_v34 = vsel %vm5829_vm0, %v13524_v24, %v13523_v51  ;;  %v13525_v19 = vld [vmem:[#allocation217_spill] sm:$0xff]  ;;  %v13526_v32 = vld [vmem:[#allocation342_spill] sm:$0xff]  ;;  %v6234_v41 = vsel %vm6225_vm12, %v6201_v4, %v11234_v36  ;;  %v5876_v58 = vsel %vm5862_vm1, %v11370_v17, %v13527_v21  ;;  %v13529_v45 = vld [vmem:[#allocation28_spill] sm:$0xff]  ;;  %p6977_p13 = pneg %p6976_p12 }
 0x568   : > { %v5974_v55 = vsel %vm5961_vm4, %v5941_v62, %v13525_v19  ;;  %v6103_v6 = vsel %vm6093_vm8, %v6070_v11, %v13526_v32  ;;  %v13528_v15 = vld [vmem:[#allocation249_spill] sm:$0xff]  ;;  %v11734_v60 = vsel %vm6258_vm13, %v6234_v41, %v5622_v13  ;;  %v13530_v26 = vld [vmem:[#allocation107_spill] sm:$0xff]  ;;  %v13532_v61 = vld [vmem:[#allocation162_spill] sm:$0xff]  ;;  %v5624_v32 = vpop.permute.xlu1 %5623 }
 0x569   : > { %v6007_v14 = vsel %vm5994_vm5, %v5974_v55, %v13528_v15  ;;  %v6136_v1 = vsel %vm6126_vm9, %v6103_v6, %v13529_v45  ;;  %v13531_v63 = vld [vmem:[#allocation49_spill] sm:$0xff]  ;;  %v5909_v37 = vsel %vm5895_vm2, %v5876_v58, %v13532_v61  ;;  %v13534_v10 = vld [vmem:[#allocation108_spill] sm:$0xff]  ;;  %v13535_v2 = vld [vmem:[#allocation51_spill] sm:$0xff]  ;;  %v11767_v6 = vpop.permute.xlu0 %5625  ;;  %p6984_p11 = pnand %p6983_p9, %p6977_p13 }
 0x56a   : > { %v5850_v36 = vsel %vm5829_vm0, %v13531_v63, %v13530_v26  ;;  %v13533_v31 = vld [vmem:[#allocation289_spill] sm:$0xff]  ;;  %v6169_v17 = vsel %vm6159_vm10, %v6136_v1, %v10794_v57  ;;  %v11748_v33 = vsel %vm5829_vm0, %v13535_v2, %v13534_v10  ;;  %v13536_v18 = vld [vmem:[#allocation194_spill] sm:$0xff]  ;;  %v13542_v41 = vld [vmem:[#allocation135_spill] sm:$0xff] }
 0x56b   : > { %v6040_v0 = vsel %vm6027_vm6, %v6007_v14, %v13533_v31  ;;  %v5942_v44 = vsel %vm5928_vm3, %v5909_v37, %v13536_v18  ;;  %v13537_v42 = vld [vmem:[#allocation321_spill] sm:$0xff]  ;;  %v6202_v62 = vsel %vm6192_vm11, %v6169_v17, %v10974_v25  ;;  %v13540_v57 = vld [vmem:[#allocation218_spill] sm:$0xff]  ;;  %v5879_v25 = vsel %vm5862_vm1, %v11640_v46, %v13542_v41  ;;  %v13544_v58 = vld [vmem:[#allocation35_spill] sm:$0xff] }
 0x56c   : > { %v6073_v9 = vsel %vm6060_vm7, %v6040_v0, %v13537_v42  ;;  %v13538_v20 = vld [vmem:[#allocation109_spill] sm:$0xff]  ;;  %v5975_v51 = vsel %vm5961_vm4, %v5942_v44, %v13540_v57  ;;  %v6235_v55 = vsel %vm6225_vm12, %v6202_v62, %v11242_v54  ;;  %v13543_v13 = vld [vmem:[#allocation250_spill] sm:$0xff]  ;;  %v13546_v1 = vld [vmem:[#allocation56_spill] sm:$0xff] }
 0x56d   : > { %v13539_v11 = vld [vmem:[#allocation53_spill] sm:$0xff]  ;;  %v6008_v21 = vsel %vm5994_vm5, %v5975_v51, %v13543_v13  ;;  %v11777_v14 = vsel %vm6258_vm13, %v6235_v55, %v5624_v32  ;;  %v13545_v45 = vld [vmem:[#allocation110_spill] sm:$0xff]  ;;  %v13549_v31 = vld [vmem:[#allocation111_spill] sm:$0xff]  ;;  %v5630_v55 = vpop.permute.xlu0 %5629 }
 0x56e   : > { %v11759_v4 = vsel %vm5829_vm0, %v13539_v11, %v13538_v20  ;;  %v13541_v24 = vld [vmem:[#allocation345_spill] sm:$0xff]  ;;  %v11782_v54 = vsel %vm5829_vm0, %v13546_v1, %v13545_v45  ;;  %v13548_v61 = vld [vmem:[#allocation290_spill] sm:$0xff]  ;;  %v13550_v0 = vld [vmem:[#allocation59_spill] sm:$0xff] }
 0x56f   : > { %v6106_v19 = vsel %vm6093_vm8, %v6073_v9, %v13541_v24  ;;  %v13547_v26 = vld [vmem:[#allocation165_spill] sm:$0xff]  ;;  %v6041_v46 = vsel %vm6027_vm6, %v6008_v21, %v13548_v61  ;;  %v11793_v17 = vsel %vm5829_vm0, %v13550_v0, %v13549_v31  ;;  %v13552_v18 = vld [vmem:[#allocation322_spill] sm:$0xff]  ;;  %v13553_v9 = vld [vmem:[#allocation112_spill] sm:$0xff] }
 0x570   : > { %v6139_v15 = vsel %vm6126_vm9, %v6106_v19, %v13544_v58  ;;  %v5912_v63 = vsel %vm5895_vm2, %v5879_v25, %v13547_v26  ;;  %v13551_v10 = vld [vmem:[#allocation197_spill] sm:$0xff]  ;;  %v6074_v44 = vsel %vm6060_vm7, %v6041_v46, %v13552_v18  ;;  %v13556_v57 = vld [vmem:[#allocation346_spill] sm:$0xff]  ;;  %v11812_v19 = vpop.permute.xlu1 %5627  ;;  %v13557_v32 = vld [vmem:[#allocation136_spill] sm:$0xff] }
 0x571   : > { %v6172_v37 = vsel %vm6159_vm10, %v6139_v15, %v10806_v7  ;;  %v5945_v2 = vsel %vm5928_vm3, %v5912_v63, %v13551_v10  ;;  %v13554_v62 = vld [vmem:[#allocation61_spill] sm:$0xff]  ;;  %v6107_v51 = vsel %vm6093_vm8, %v6074_v44, %v13556_v57  ;;  %v13559_v13 = vld [vmem:[#allocation38_spill] sm:$0xff]  ;;  %v13561_v45 = vld [vmem:[#allocation64_spill] sm:$0xff] }
 0x572   : > { %v6205_v42 = vsel %vm6192_vm11, %v6172_v37, %v10994_v38  ;;  %v11804_v20 = vsel %vm5829_vm0, %v13554_v62, %v13553_v9  ;;  %v13555_v7 = vld [vmem:[#allocation221_spill] sm:$0xff]  ;;  %v5880_v38 = vsel %vm5862_vm1, %v5847_v49, %v13557_v32  ;;  %v6140_v21 = vsel %vm6126_vm9, %v6107_v51, %v13559_v13  ;;  %v13564_v46 = vld [vmem:[#allocation114_spill] sm:$0xff]  ;;  %v13565_v37 = vld [vmem:[#allocation67_spill] sm:$0xff] }
 0x573   : > { %v5978_v11 = vsel %vm5961_vm4, %v5945_v2, %v13555_v7  ;;  %v6238_v24 = vsel %vm6225_vm12, %v6205_v42, %v11254_v29  ;;  %v13558_v41 = vld [vmem:[#allocation253_spill] sm:$0xff]  ;;  %v13562_v29 = vld [vmem:[#allocation166_spill] sm:$0xff]  ;;  %v6173_v61 = vsel %vm6159_vm10, %v6140_v21, %v10814_v59  ;;  %v11837_v31 = vsel %vm5829_vm0, %v13565_v37, %v13564_v46  ;;  %v13568_v42 = vld [vmem:[#allocation115_spill] sm:$0xff] }
 0x574   : > { %v6011_v25 = vsel %vm5994_vm5, %v5978_v11, %v13558_v41  ;;  %v11821_v58 = vsel %vm6258_vm13, %v6238_v24, %v5630_v55  ;;  %v13560_v15 = vld [vmem:[#allocation113_spill] sm:$0xff]  ;;  %v5913_v26 = vsel %vm5895_vm2, %v5880_v38, %v13562_v29  ;;  %v13566_v0 = vld [vmem:[#allocation198_spill] sm:$0xff]  ;;  %v6206_v44 = vsel %vm6192_vm11, %v6173_v61, %v11010_v8  ;;  %v5632_v24 = vpop.permute.xlu1 %5631  ;;  %v11856_v55 = vpop.permute.xlu0 %5633  ;;  %v13572_v32 = vld [vmem:[#allocation139_spill] sm:$0xff] }
 0x575   : > { %v11826_v1 = vsel %vm5829_vm0, %v13561_v45, %v13560_v15  ;;  %v13563_v63 = vld [vmem:[#allocation293_spill] sm:$0xff]  ;;  %v5946_v10 = vsel %vm5928_vm3, %v5913_v26, %v13566_v0  ;;  %v13570_v59 = vld [vmem:[#allocation222_spill] sm:$0xff]  ;;  %v6239_v51 = vsel %vm6225_vm12, %v6206_v44, %v11262_v40  ;;  %v5883_v8 = vsel %vm5862_vm1, %v5850_v36, %v13572_v32  ;;  %v13575_v15 = vld [vmem:[#allocation116_spill] sm:$0xff] }
 0x576   : > { %v6044_v49 = vsel %vm6027_vm6, %v6011_v25, %v13563_v63  ;;  %v13567_v2 = vld [vmem:[#allocation325_spill] sm:$0xff]  ;;  %v5979_v7 = vsel %vm5961_vm4, %v5946_v10, %v13570_v59  ;;  %v13573_v38 = vld [vmem:[#allocation254_spill] sm:$0xff]  ;;  %v11865_v21 = vsel %vm6258_vm13, %v6239_v51, %v5632_v24  ;;  %v13576_v45 = vld [vmem:[#allocation72_spill] sm:$0xff] }
 0x577   : > { %v6077_v18 = vsel %vm6060_vm7, %v6044_v49, %v13567_v2  ;;  %v13569_v9 = vld [vmem:[#allocation69_spill] sm:$0xff]  ;;  %v6012_v41 = vsel %vm5994_vm5, %v5979_v7, %v13573_v38  ;;  %v11870_v29 = vsel %vm5829_vm0, %v13576_v45, %v13575_v15  ;;  %v13578_v63 = vld [vmem:[#allocation294_spill] sm:$0xff] }
 0x578   : > { %v11848_v62 = vsel %vm5829_vm0, %v13569_v9, %v13568_v42  ;;  %v13571_v11 = vld [vmem:[#allocation349_spill] sm:$0xff]  ;;  %v6045_v36 = vsel %vm6027_vm6, %v6012_v41, %v13578_v63  ;;  %v13581_v10 = vld [vmem:[#allocation326_spill] sm:$0xff]  ;;  %v13584_v9 = vld [vmem:[#allocation88_spill] sm:$0xff]  ;;  %v11900_v24 = vpop.permute.xlu1 %5635  ;;  %v5638_v32 = vpop.permute.xlu0 %5637 }
 0x579   : > { %v6110_v57 = vsel %vm6093_vm8, %v6077_v18, %v13571_v11  ;;  %v13574_v25 = vld [vmem:[#allocation45_spill] sm:$0xff]  ;;  %v6078_v2 = vsel %vm6060_vm7, %v6045_v36, %v13581_v10  ;;  %v13582_v18 = vld [vmem:[#allocation406_spill] sm:$0xff] }
 0x57a   : > { %v6143_v13 = vsel %vm6126_vm9, %v6110_v57, %v13574_v25  ;;  %v13577_v40 = vld [vmem:[#allocation169_spill] sm:$0xff]  ;;  %v13583_v42 = vld [vmem:[#allocation122_spill] sm:$0xff]  ;;  %v13587_v57 = vld [vmem:[#allocation420_spill] sm:$0xff] }
 0x57b   : > { %v5916_v26 = vsel %vm5895_vm2, %v5883_v8, %v13577_v40  ;;  %v6176_v49 = vsel %vm6159_vm10, %v6143_v13, %v10826_v48  ;;  %v13579_v61 = vld [vmem:[#allocation121_spill] sm:$0xff]  ;;  %v11892_v59 = vsel %vm5862_vm1, %v13584_v9, %v13583_v42  ;;  %v13586_v11 = vld [vmem:[#allocation350_spill] sm:$0xff]  ;;  %v13588_v8 = vld [vmem:[#allocation140_spill] sm:$0xff] }
 0x57c   : > { %v11881_v46 = vsel %vm5862_vm1, %v11309_v53, %v13579_v61  ;;  %v13580_v37 = vld [vmem:[#allocation201_spill] sm:$0xff]  ;;  %v6209_v44 = vsel %vm6192_vm11, %v6176_v49, %v13582_v18  ;;  %v6111_v53 = vsel %vm6093_vm8, %v6078_v2, %v13586_v11  ;;  %v5884_v38 = vsel %vm5862_vm1, %v11748_v33, %v13588_v8  ;;  %v13590_v13 = vld [vmem:[#allocation48_spill] sm:$0xff]  ;;  %v13593_v36 = vld [vmem:[#allocation170_spill] sm:$0xff] }
 0x57d   : > { %v5949_v0 = vsel %vm5928_vm3, %v5916_v26, %v13580_v37  ;;  %v13585_v48 = vld [vmem:[#allocation225_spill] sm:$0xff]  ;;  %v6242_v51 = vsel %vm6225_vm12, %v6209_v44, %v13587_v57  ;;  %v6144_v15 = vsel %vm6126_vm9, %v6111_v53, %v13590_v13  ;;  %v13592_v26 = vld [vmem:[#allocation16_spill] sm:$0xff]  ;;  %v5917_v49 = vsel %vm5895_vm2, %v5884_v38, %v13593_v36  ;;  %v13596_v10 = vld [vmem:[#allocation126_spill] sm:$0xff] }
 0x57e   : > { %v5982_v7 = vsel %vm5961_vm4, %v5949_v0, %v13585_v48  ;;  %v13589_v41 = vld [vmem:[#allocation257_spill] sm:$0xff]  ;;  %v11910_v45 = vsel %vm6258_vm13, %v6242_v51, %v5638_v32  ;;  %v13597_v2 = vld [vmem:[#allocation87_spill] sm:$0xff]  ;;  %v13598_v44 = vld [vmem:[#allocation202_spill] sm:$0xff] }
 0x57f   : > { %v6015_v25 = vsel %vm5994_vm5, %v5982_v7, %v13589_v41  ;;  %v13591_v40 = vld [vmem:[#allocation125_spill] sm:$0xff]  ;;  %v11926_v18 = vsel %vm5862_vm1, %v13597_v2, %v13596_v10  ;;  %v5950_v42 = vsel %vm5928_vm3, %v5917_v49, %v13598_v44  ;;  %v13600_v7 = vld [vmem:[#allocation407_spill] sm:$0xff]  ;;  %v13602_v57 = vld [vmem:[#allocation18_spill] sm:$0xff] }
 0x580   : > { %v11915_v63 = vsel %vm5862_vm1, %v13592_v26, %v13591_v40  ;;  %v13594_v61 = vld [vmem:[#allocation297_spill] sm:$0xff]  ;;  %v13603_v32 = vld [vmem:[#allocation226_spill] sm:$0xff]  ;;  %v11945_v40 = vpop.permute.xlu0 %5641 }
 0x581   : > { %v6048_v33 = vsel %vm6027_vm6, %v6015_v25, %v13594_v61  ;;  %v13595_v37 = vld [vmem:[#allocation385_spill] sm:$0xff]  ;;  %v5983_v8 = vsel %vm5961_vm4, %v5950_v42, %v13603_v32  ;;  %v13606_v26 = vld [vmem:[#allocation142_spill] sm:$0xff] }
 0x582   : > { %v6177_v0 = vsel %vm6159_vm10, %v6144_v15, %v13595_v37  ;;  %v13599_v9 = vld [vmem:[#allocation329_spill] sm:$0xff]  ;;  %v5640_v15 = vpop.permute.xlu1 %5639  ;;  %v5887_v36 = vsel %vm5862_vm1, %v11793_v17, %v13606_v26  ;;  %v13607_v49 = vld [vmem:[#allocation258_spill] sm:$0xff] }
 0x583   : > { %v6081_v48 = vsel %vm6060_vm7, %v6048_v33, %v13599_v9  ;;  %v6210_v11 = vsel %vm6192_vm11, %v6177_v0, %v13600_v7  ;;  %v13601_v53 = vld [vmem:[#allocation129_spill] sm:$0xff]  ;;  %v6016_v61 = vsel %vm5994_vm5, %v5983_v8, %v13607_v49  ;;  %v13608_v33 = vld [vmem:[#allocation58_spill] sm:$0xff]  ;;  %v13613_v7 = vld [vmem:[#allocation388_spill] sm:$0xff] }
 0x584   : > { %v11937_v51 = vsel %vm5862_vm1, %v13602_v57, %v13601_v53  ;;  %v13604_v38 = vld [vmem:[#allocation353_spill] sm:$0xff]  ;;  %v13609_v10 = vld [vmem:[#allocation130_spill] sm:$0xff]  ;;  %v13615_v57 = vld [vmem:[#allocation20_spill] sm:$0xff] }
 0x585   : > { %v6114_v41 = vsel %vm6093_vm8, %v6081_v48, %v13604_v38  ;;  %v13605_v25 = vld [vmem:[#allocation421_spill] sm:$0xff]  ;;  %v13610_v2 = vld [vmem:[#allocation90_spill] sm:$0xff] }
 0x586   : > { %v6243_v13 = vsel %vm6225_vm12, %v6210_v11, %v13605_v25  ;;  %v6147_v37 = vsel %vm6126_vm9, %v6114_v41, %v13608_v33  ;;  %v11960_v44 = vsel %vm5862_vm1, %v13610_v2, %v13609_v10  ;;  %v13611_v42 = vld [vmem:[#allocation173_spill] sm:$0xff]  ;;  %v13612_v48 = vld [vmem:[#allocation298_spill] sm:$0xff]  ;;  %v13623_v2 = vld [vmem:[#allocation424_spill] sm:$0xff] }
 0x587   : > { %v11955_v0 = vsel %vm6258_vm13, %v6243_v13, %v5640_v15  ;;  %v5920_v9 = vsel %vm5895_vm2, %v5887_v36, %v13611_v42  ;;  %v6049_v17 = vsel %vm6027_vm6, %v6016_v61, %v13612_v48  ;;  %v6180_v11 = vsel %vm6159_vm10, %v6147_v37, %v13613_v7  ;;  %v13614_v53 = vld [vmem:[#allocation133_spill] sm:$0xff]  ;;  %v13617_v41 = vld [vmem:[#allocation330_spill] sm:$0xff]  ;;  %v13620_v36 = vld [vmem:[#allocation91_spill] sm:$0xff]  ;;  %v5646_v48 = vpop.permute.xlu0 %5645 }
 0x588   : > { %v11971_v32 = vsel %vm5862_vm1, %v13615_v57, %v13614_v53  ;;  %v13616_v8 = vld [vmem:[#allocation205_spill] sm:$0xff]  ;;  %v6082_v25 = vsel %vm6060_vm7, %v6049_v17, %v13617_v41  ;;  %v13618_v13 = vld [vmem:[#allocation410_spill] sm:$0xff]  ;;  %v13626_v57 = vld [vmem:[#allocation63_spill] sm:$0xff] }
 0x589   : > { %v5953_v38 = vsel %vm5928_vm3, %v5920_v9, %v13616_v8  ;;  %v6213_v15 = vsel %vm6192_vm11, %v6180_v11, %v13618_v13  ;;  %v13619_v26 = vld [vmem:[#allocation134_spill] sm:$0xff]  ;;  %v13621_v61 = vld [vmem:[#allocation229_spill] sm:$0xff]  ;;  %v11990_v9 = vpop.permute.xlu1 %5643 }
 0x58a   : > { %v11982_v49 = vsel %vm5862_vm1, %v13620_v36, %v13619_v26  ;;  %v5986_v33 = vsel %vm5961_vm4, %v5953_v38, %v13621_v61  ;;  %v13622_v37 = vld [vmem:[#allocation354_spill] sm:$0xff]  ;;  %v6246_v42 = vsel %vm6225_vm12, %v6213_v15, %v13623_v2  ;;  %v13624_v17 = vld [vmem:[#allocation57_spill] sm:$0xff] }
 0x58b   : > { %v6115_v10 = vsel %vm6093_vm8, %v6082_v25, %v13622_v37  ;;  %v5888_v7 = vsel %vm5862_vm1, %v11804_v20, %v13624_v17  ;;  %v13625_v11 = vld [vmem:[#allocation261_spill] sm:$0xff]  ;;  %v12000_v38 = vsel %vm6258_vm13, %v6246_v42, %v5646_v48  ;;  %v13628_v13 = vld [vmem:[#allocation174_spill] sm:$0xff]  ;;  %v13634_v48 = vld [vmem:[#allocation411_spill] sm:$0xff] }
 0x58c   : > { %v6019_v53 = vsel %vm5994_vm5, %v5986_v33, %v13625_v11  ;;  %v6148_v8 = vsel %vm6126_vm9, %v6115_v10, %v13626_v57  ;;  %v13627_v41 = vld [vmem:[#allocation137_spill] sm:$0xff]  ;;  %v5921_v15 = vsel %vm5895_vm2, %v5888_v7, %v13628_v13  ;;  %v13631_v33 = vld [vmem:[#allocation138_spill] sm:$0xff] }
 0x58d   : > { %v12005_v25 = vsel %vm5862_vm1, %v11705_v52, %v13627_v41  ;;  %v13629_v26 = vld [vmem:[#allocation301_spill] sm:$0xff]  ;;  %v5882_v37 = vsel %vm5862_vm1, %v11716_v34, %v13631_v33  ;;  %v13632_v10 = vld [vmem:[#allocation54_spill] sm:$0xff]  ;;  %v13638_v34 = vld [vmem:[#allocation15_spill] sm:$0xff] }
 0x58e   : > { %v6052_v20 = vsel %vm6027_vm6, %v6019_v53, %v13629_v26  ;;  %v13630_v36 = vld [vmem:[#allocation389_spill] sm:$0xff]  ;;  %v5954_v2 = vsel %vm5928_vm3, %v5921_v15, %v13632_v10  ;;  %v13636_v53 = vld [vmem:[#allocation230_spill] sm:$0xff]  ;;  %v5648_v15 = vpop.permute.xlu1 %5647  ;;  %v12031_v26 = vpop.permute.xlu0 %5649 }
 0x58f   : > { %v6181_v61 = vsel %vm6159_vm10, %v6148_v8, %v13630_v36  ;;  %v13633_v42 = vld [vmem:[#allocation333_spill] sm:$0xff]  ;;  %v5987_v57 = vsel %vm5961_vm4, %v5954_v2, %v13636_v53 }
 0x590   : > { %v6085_v52 = vsel %vm6060_vm7, %v6052_v20, %v13633_v42  ;;  %v6214_v17 = vsel %vm6192_vm11, %v6181_v61, %v13634_v48  ;;  %v13635_v7 = vld [vmem:[#allocation141_spill] sm:$0xff]  ;;  %v13640_v61 = vld [vmem:[#allocation262_spill] sm:$0xff]  ;;  %v13642_v42 = vld [vmem:[#allocation52_spill] sm:$0xff] }
 0x591   : > { %v5885_v11 = vsel %vm5862_vm1, %v11759_v4, %v13635_v7  ;;  %v13637_v8 = vld [vmem:[#allocation357_spill] sm:$0xff]  ;;  %v6247_v13 = vsel %vm6225_vm12, %v6214_v17, %v13638_v34  ;;  %v6020_v33 = vsel %vm5994_vm5, %v5987_v57, %v13640_v61  ;;  %v13641_v4 = vld [vmem:[#allocation74_spill] sm:$0xff]  ;;  %v13646_v57 = vld [vmem:[#allocation143_spill] sm:$0xff] }
 0x592   : > { %v6118_v41 = vsel %vm6093_vm8, %v6085_v52, %v13637_v8  ;;  %v13639_v20 = vld [vmem:[#allocation145_spill] sm:$0xff]  ;;  %v12041_v2 = vsel %vm6258_vm13, %v6247_v13, %v5648_v15  ;;  %v5886_v52 = vsel %vm5862_vm1, %v11782_v54, %v13642_v42  ;;  %v13644_v7 = vld [vmem:[#allocation302_spill] sm:$0xff]  ;;  %v13647_v34 = vld [vmem:[#allocation60_spill] sm:$0xff] }
 0x593   : > { %v5891_v36 = vsel %vm5862_vm1, %v11848_v62, %v13639_v20  ;;  %v6151_v10 = vsel %vm6126_vm9, %v6118_v41, %v13641_v4  ;;  %v13643_v48 = vld [vmem:[#allocation177_spill] sm:$0xff]  ;;  %v6053_v53 = vsel %vm6027_vm6, %v6020_v33, %v13644_v7  ;;  %v13645_v62 = vld [vmem:[#allocation392_spill] sm:$0xff]  ;;  %v5889_v41 = vsel %vm5862_vm1, %v11826_v1, %v13646_v57  ;;  %v13648_v15 = vld [vmem:[#allocation334_spill] sm:$0xff] }
 0x594   : > { %v5924_v17 = vsel %vm5895_vm2, %v5891_v36, %v13643_v48  ;;  %v6184_v8 = vsel %vm6159_vm10, %v6151_v10, %v13645_v62  ;;  %v6086_v20 = vsel %vm6060_vm7, %v6053_v53, %v13648_v15  ;;  %v13649_v54 = vld [vmem:[#allocation414_spill] sm:$0xff]  ;;  %v13651_v4 = vld [vmem:[#allocation233_spill] sm:$0xff]  ;;  %v13653_v1 = vld [vmem:[#allocation92_spill] sm:$0xff]  ;;  %v5654_v62 = vpop.permute.xlu0 %5653 }
 0x595   : > { %v5957_v13 = vsel %vm5928_vm3, %v5924_v17, %v13647_v34  ;;  %v6217_v61 = vsel %vm6192_vm11, %v6184_v8, %v13649_v54  ;;  %v13650_v36 = vld [vmem:[#allocation62_spill] sm:$0xff]  ;;  %v12070_v17 = vpop.permute.xlu1 %5651  ;;  %v13654_v53 = vld [vmem:[#allocation68_spill] sm:$0xff]  ;;  %v13655_v57 = vld [vmem:[#allocation267_spill] sm:$0xff] }
 0x596   : > { %v5890_v33 = vsel %vm5862_vm1, %v11837_v31, %v13650_v36  ;;  %v5990_v10 = vsel %vm5961_vm4, %v5957_v13, %v13651_v4  ;;  %v13652_v42 = vld [vmem:[#allocation358_spill] sm:$0xff]  ;;  %v6250_v7 = vsel %vm6225_vm12, %v6217_v61, %v13653_v1  ;;  %v5892_v8 = vsel %vm5862_vm1, %v11870_v29, %v13654_v53  ;;  %v13656_v31 = vld [vmem:[#allocation79_spill] sm:$0xff]  ;;  %v13659_v4 = vld [vmem:[#allocation305_spill] sm:$0xff] }
 0x597   : > { %v6119_v48 = vsel %vm6093_vm8, %v6086_v20, %v13652_v42  ;;  %v6023_v34 = vsel %vm5994_vm5, %v5990_v10, %v13655_v57  ;;  %v12080_v13 = vsel %vm6258_vm13, %v6250_v7, %v5654_v62  ;;  %v13657_v20 = vld [vmem:[#allocation150_spill] sm:$0xff]  ;;  %v13660_v29 = vld [vmem:[#allocation393_spill] sm:$0xff]  ;;  %v13661_v10 = vld [vmem:[#allocation152_spill] sm:$0xff] }
 0x598   : > { %v6152_v15 = vsel %vm6126_vm9, %v6119_v48, %v13656_v31  ;;  %v5898_v54 = vsel %vm5895_vm2, %v11881_v46, %v13657_v20  ;;  %v13658_v61 = vld [vmem:[#allocation178_spill] sm:$0xff]  ;;  %v6056_v42 = vsel %vm6027_vm6, %v6023_v34, %v13659_v4  ;;  %v5899_v48 = vsel %vm5895_vm2, %v11892_v59, %v13661_v10  ;;  %v13663_v62 = vld [vmem:[#allocation265_spill] sm:$0xff] }
 0x599   : > { %v5925_v36 = vsel %vm5895_vm2, %v5892_v8, %v13658_v61  ;;  %v6185_v1 = vsel %vm6159_vm10, %v6152_v15, %v13660_v29  ;;  %v13662_v53 = vld [vmem:[#allocation146_spill] sm:$0xff]  ;;  %v6089_v57 = vsel %vm6060_vm7, %v6056_v42, %v13663_v62  ;;  %v13665_v8 = vld [vmem:[#allocation155_spill] sm:$0xff]  ;;  %v13667_v61 = vld [vmem:[#allocation361_spill] sm:$0xff]  ;;  %v12109_v29 = vpop.permute.xlu0 %5657 }
 0x59a   : > { %v5958_v7 = vsel %vm5928_vm3, %v5925_v36, %v13662_v53  ;;  %v13664_v46 = vld [vmem:[#allocation78_spill] sm:$0xff]  ;;  %v5902_v34 = vsel %vm5895_vm2, %v11915_v63, %v13665_v8  ;;  %v6122_v4 = vsel %vm6093_vm8, %v6089_v57, %v13667_v61  ;;  %v5656_v36 = vpop.permute.xlu1 %5655  ;;  %v13668_v42 = vld [vmem:[#allocation156_spill] sm:$0xff]  ;;  %v13670_v63 = vld [vmem:[#allocation369_spill] sm:$0xff] }
 0x59b   : > { %v6218_v31 = vsel %vm6192_vm11, %v6185_v1, %v13664_v46  ;;  %v13666_v20 = vld [vmem:[#allocation234_spill] sm:$0xff]  ;;  %v5903_v1 = vsel %vm5895_vm2, %v11926_v18, %v13668_v42  ;;  %v6155_v62 = vsel %vm6126_vm9, %v6122_v4, %v13670_v63  ;;  %v13671_v57 = vld [vmem:[#allocation159_spill] sm:$0xff]  ;;  %v13672_v46 = vld [vmem:[#allocation160_spill] sm:$0xff] }
 0x59c   : > { %v5991_v15 = vsel %vm5961_vm4, %v5958_v7, %v13666_v20  ;;  %v6251_v59 = vsel %vm6225_vm12, %v6218_v31, %v11444_v28  ;;  %v13669_v10 = vld [vmem:[#allocation270_spill] sm:$0xff]  ;;  %v5906_v28 = vsel %vm5895_vm2, %v11937_v51, %v13671_v57  ;;  %v5907_v31 = vsel %vm5895_vm2, %v11960_v44, %v13672_v46  ;;  %v13674_v20 = vld [vmem:[#allocation396_spill] sm:$0xff]  ;;  %v13675_v61 = vld [vmem:[#allocation163_spill] sm:$0xff] }
 0x59d   : > { %v6024_v53 = vsel %vm5994_vm5, %v5991_v15, %v13669_v10  ;;  %v12119_v7 = vsel %vm6258_vm13, %v6251_v59, %v5656_v36  ;;  %v13673_v8 = vld [vmem:[#allocation306_spill] sm:$0xff]  ;;  %v6188_v15 = vsel %vm6159_vm10, %v6155_v62, %v13674_v20  ;;  %v5910_v4 = vsel %vm5895_vm2, %v11971_v32, %v13675_v61  ;;  %v13676_v59 = vld [vmem:[#allocation164_spill] sm:$0xff]  ;;  %v13679_v63 = vld [vmem:[#allocation167_spill] sm:$0xff]  ;;  %v5662_v20 = vpop.permute.xlu0 %5661 }
 0x59e   : > { %v6057_v18 = vsel %vm6027_vm6, %v6024_v53, %v13673_v8  ;;  %v5911_v36 = vsel %vm5895_vm2, %v11982_v49, %v13676_v59  ;;  %v13677_v42 = vld [vmem:[#allocation268_spill] sm:$0xff]  ;;  %v5914_v53 = vsel %vm5895_vm2, %v12005_v25, %v13679_v63  ;;  %v13681_v46 = vld [vmem:[#allocation362_spill] sm:$0xff]  ;;  %v12150_v49 = vpop.permute.xlu1 %5659 }
 0x59f   : > { %v6090_v51 = vsel %vm6060_vm7, %v6057_v18, %v13677_v42  ;;  %v13678_v10 = vld [vmem:[#allocation80_spill] sm:$0xff]  ;;  %v13682_v18 = vld [vmem:[#allocation171_spill] sm:$0xff] }
 0x5a0   : > { %v6221_v44 = vsel %vm6192_vm11, %v6188_v15, %v13678_v10  ;;  %v13680_v57 = vld [vmem:[#allocation168_spill] sm:$0xff]  ;;  %v6123_v32 = vsel %vm6093_vm8, %v6090_v51, %v13681_v46  ;;  %v5918_v61 = vsel %vm5895_vm2, %v5885_v11, %v13682_v18  ;;  %v13684_v42 = vld [vmem:[#allocation83_spill] sm:$0xff]  ;;  %v13688_v46 = vld [vmem:[#allocation397_spill] sm:$0xff] }
 0x5a1   : > { %v5915_v62 = vsel %vm5895_vm2, %v5882_v37, %v13680_v57  ;;  %v6254_v8 = vsel %vm6225_vm12, %v6221_v44, %v11476_v22  ;;  %v13683_v15 = vld [vmem:[#allocation172_spill] sm:$0xff]  ;;  %v6156_v25 = vsel %vm6126_vm9, %v6123_v32, %v13684_v42  ;;  %v13685_v10 = vld [vmem:[#allocation175_spill] sm:$0xff]  ;;  %v13692_v42 = vld [vmem:[#allocation370_spill] sm:$0xff] }
 0x5a2   : > { %v5919_v59 = vsel %vm5895_vm2, %v5886_v52, %v13683_v15  ;;  %v12159_v37 = vsel %vm6258_vm13, %v6254_v8, %v5662_v20  ;;  %v5922_v51 = vsel %vm5895_vm2, %v5889_v41, %v13685_v10  ;;  %v13686_v63 = vld [vmem:[#allocation176_spill] sm:$0xff]  ;;  %v13687_v44 = vld [vmem:[#allocation183_spill] sm:$0xff]  ;;  %v6189_v11 = vsel %vm6159_vm10, %v6156_v25, %v13688_v46  ;;  %v5664_v46 = vpop.permute.xlu1 %5663 }
 0x5a3   : > { %v5923_v22 = vsel %vm5895_vm2, %v5890_v33, %v13686_v63  ;;  %v5931_v57 = vsel %vm5928_vm3, %v5898_v54, %v13687_v44  ;;  %v13689_v18 = vld [vmem:[#allocation184_spill] sm:$0xff]  ;;  %v13690_v15 = vld [vmem:[#allocation187_spill] sm:$0xff]  ;;  %v6222_v41 = vsel %vm6192_vm11, %v6189_v11, %v13692_v42 }
 0x5a4   : > { %v5932_v52 = vsel %vm5928_vm3, %v5899_v48, %v13689_v18  ;;  %v5935_v32 = vsel %vm5928_vm3, %v5902_v34, %v13690_v15  ;;  %v13691_v8 = vld [vmem:[#allocation188_spill] sm:$0xff]  ;;  %v13693_v10 = vld [vmem:[#allocation191_spill] sm:$0xff]  ;;  %v6255_v48 = vsel %vm6225_vm12, %v6222_v41, %v11504_v27  ;;  %v12185_v34 = vpop.permute.xlu0 %5665 }
 0x5a5   : > { %v5936_v20 = vsel %vm5928_vm3, %v5903_v1, %v13691_v8  ;;  %v5939_v33 = vsel %vm5928_vm3, %v5906_v28, %v13693_v10  ;;  %v13694_v63 = vld [vmem:[#allocation192_spill] sm:$0xff]  ;;  %v13695_v44 = vld [vmem:[#allocation195_spill] sm:$0xff]  ;;  %v13698_v8 = vld [vmem:[#allocation149_spill] sm:$0xff] }
 0x5a6   : > { %v5940_v54 = vsel %vm5928_vm3, %v5907_v31, %v13694_v63  ;;  %v5943_v25 = vsel %vm5928_vm3, %v5910_v4, %v13695_v44  ;;  %v13696_v18 = vld [vmem:[#allocation196_spill] sm:$0xff]  ;;  %v13697_v15 = vld [vmem:[#allocation199_spill] sm:$0xff]  ;;  %v5964_v28 = vsel %vm5961_vm4, %v5931_v57, %v13698_v8  ;;  %v12194_v31 = vsel %vm6258_vm13, %v6255_v48, %v5664_v46  ;;  %v13703_v44 = vld [vmem:[#allocation206_spill] sm:$0xff] }
 0x5a7   : > { %v5944_v1 = vsel %vm5928_vm3, %v5911_v36, %v13696_v18  ;;  %v5947_v11 = vsel %vm5928_vm3, %v5914_v53, %v13697_v15  ;;  %v13699_v42 = vld [vmem:[#allocation200_spill] sm:$0xff]  ;;  %v13700_v10 = vld [vmem:[#allocation203_spill] sm:$0xff]  ;;  %v12210_v57 = vsel %vm5928_vm3, %v5922_v51, %v13703_v44 }
 0x5a8   : > { %v5948_v4 = vsel %vm5928_vm3, %v5915_v62, %v13699_v42  ;;  %v12200_v27 = vsel %vm5928_vm3, %v5918_v61, %v13700_v10  ;;  %v13701_v41 = vld [vmem:[#allocation204_spill] sm:$0xff]  ;;  %v13702_v36 = vld [vmem:[#allocation239_spill] sm:$0xff] }
 0x5a9   : > { %v12204_v63 = vsel %vm5928_vm3, %v5919_v59, %v13701_v41  ;;  %v5997_v53 = vsel %vm5994_vm5, %v5964_v28, %v13702_v36  ;;  %v13704_v48 = vld [vmem:[#allocation144_spill] sm:$0xff]  ;;  %v13705_v62 = vld [vmem:[#allocation151_spill] sm:$0xff]  ;;  %v12226_v41 = vpop.permute.xlu1 %5667 }
 0x5aa   : > { %v12214_v46 = vsel %vm5928_vm3, %v5923_v22, %v13704_v48  ;;  %v5965_v18 = vsel %vm5961_vm4, %v5932_v52, %v13705_v62  ;;  %v13706_v61 = vld [vmem:[#allocation279_spill] sm:$0xff]  ;;  %v13708_v42 = vld [vmem:[#allocation240_spill] sm:$0xff]  ;;  %v5734_v22 = vpop.permute.xlu0 %5733 }
 0x5ab   : > { %v6030_v15 = vsel %vm6027_vm6, %v5997_v53, %v13706_v61  ;;  %v13707_v8 = vld [vmem:[#allocation211_spill] sm:$0xff]  ;;  %v5998_v28 = vsel %vm5994_vm5, %v5965_v18, %v13708_v42  ;;  %v13710_v36 = vld [vmem:[#allocation212_spill] sm:$0xff] }
 0x5ac   : > { %v5968_v59 = vsel %vm5961_vm4, %v5935_v32, %v13707_v8  ;;  %v13709_v10 = vld [vmem:[#allocation311_spill] sm:$0xff]  ;;  %v5969_v44 = vsel %vm5961_vm4, %v5936_v20, %v13710_v36  ;;  %v13712_v53 = vld [vmem:[#allocation280_spill] sm:$0xff]  ;;  %v13713_v32 = vld [vmem:[#allocation277_spill] sm:$0xff] }
 0x5ad   : > { %v6063_v51 = vsel %vm6060_vm7, %v6030_v15, %v13709_v10  ;;  %v13711_v52 = vld [vmem:[#allocation215_spill] sm:$0xff]  ;;  %v6031_v62 = vsel %vm6027_vm6, %v5998_v28, %v13712_v53  ;;  %v13714_v18 = vld [vmem:[#allocation216_spill] sm:$0xff]  ;;  %v13717_v20 = vld [vmem:[#allocation366_spill] sm:$0xff] }
 0x5ae   : > { %v5972_v48 = vsel %vm5961_vm4, %v5939_v33, %v13711_v52  ;;  %v6096_v61 = vsel %vm6093_vm8, %v6063_v51, %v13713_v32  ;;  %v5973_v8 = vsel %vm5961_vm4, %v5940_v54, %v13714_v18  ;;  %v13715_v15 = vld [vmem:[#allocation219_spill] sm:$0xff]  ;;  %v13716_v10 = vld [vmem:[#allocation312_spill] sm:$0xff]  ;;  %v13720_v53 = vld [vmem:[#allocation374_spill] sm:$0xff] }
 0x5af   : > { %v12240_v42 = vsel %vm5961_vm4, %v5943_v25, %v13715_v15  ;;  %v6064_v30 = vsel %vm6060_vm7, %v6031_v62, %v13716_v10  ;;  %v6129_v36 = vsel %vm6126_vm9, %v6096_v61, %v13717_v20  ;;  %v13718_v33 = vld [vmem:[#allocation220_spill] sm:$0xff]  ;;  %v6292_v25 = vsel %vm6291_vm15, %v11549_v39, %v5734_v22  ;;  %v13721_v32 = vld [vmem:[#allocation223_spill] sm:$0xff]  ;;  %v13723_v15 = vld [vmem:[#allocation14_spill] sm:$0xff] }
 0x5b0   : > { %v12248_v52 = vsel %vm5961_vm4, %v5944_v1, %v13718_v33  ;;  %v13719_v28 = vld [vmem:[#allocation336_spill] sm:$0xff]  ;;  %v6162_v54 = vsel %vm6159_vm10, %v6129_v36, %v13720_v53  ;;  %v12258_v18 = vsel %vm5961_vm4, %v5947_v11, %v13721_v32  ;;  %v13722_v62 = vld [vmem:[#allocation243_spill] sm:$0xff]  ;;  %v13724_v10 = vld [vmem:[#allocation398_spill] sm:$0xff]  ;;  %v5738_v33 = vpop.permute.xlu0 %5737 }
 0x5b1   : > { %v6097_v51 = vsel %vm6093_vm8, %v6064_v30, %v13719_v28  ;;  %v6001_v61 = vsel %vm5994_vm5, %v5968_v59, %v13722_v62  ;;  %v6195_v20 = vsel %vm6192_vm11, %v6162_v54, %v13724_v10  ;;  %v5736_v30 = vpop.permute.xlu1 %5735  ;;  %v13725_v28 = vld [vmem:[#allocation283_spill] sm:$0xff]  ;;  %v13726_v53 = vld [vmem:[#allocation376_spill] sm:$0xff]  ;;  %v13727_v22 = vld [vmem:[#allocation82_spill] sm:$0xff] }
 0x5b2   : > { %v6130_v1 = vsel %vm6126_vm9, %v6097_v51, %v13723_v15  ;;  %v6034_v36 = vsel %vm6027_vm6, %v6001_v61, %v13725_v28  ;;  %v6228_v11 = vsel %vm6225_vm12, %v6195_v20, %v13727_v22  ;;  %v6293_v59 = vsel %vm6291_vm15, %v11588_v16, %v5736_v30  ;;  %v13728_v32 = vld [vmem:[#allocation399_spill] sm:$0xff]  ;;  %v13730_v61 = vld [vmem:[#allocation244_spill] sm:$0xff] }
 0x5b3   : > { %v6163_v39 = vsel %vm6159_vm10, %v6130_v1, %v13726_v53  ;;  %v6261_v54 = vsel %vm6258_vm13, %v6228_v11, %v11576_v12  ;;  %v13729_v62 = vld [vmem:[#allocation11_spill] sm:$0xff]  ;;  %v6002_v28 = vsel %vm5994_vm5, %v5969_v44, %v13730_v61  ;;  %v13732_v20 = vld [vmem:[#allocation372_spill] sm:$0xff] }
 0x5b4   : > { %v6196_v51 = vsel %vm6192_vm11, %v6163_v39, %v13728_v32  ;;  %v6327_v15 = vrot.slane %v6292_v25, %v13729_v62  ;;  %v6331_v10 = vrot.slane %v6293_v59, %v13729_v62  ;;  %v13731_v1 = vld [vmem:[#allocation315_spill] sm:$0xff]  ;;  %v6294_v16 = vsel %vm6291_vm15, %v6261_v54, %v5738_v33  ;;  %v13733_v30 = vld [vmem:[#allocation284_spill] sm:$0xff]  ;;  %v5742_v44 = vpop.permute.xlu0 %5741  ;;  %v13737_v33 = vld [vmem:[#allocation21_spill] sm:$0xff] }
 0x5b5   : > { %v6067_v53 = vsel %vm6060_vm7, %v6034_v36, %v13731_v1  ;;  %v6229_v22 = vsel %vm6225_vm12, %v6196_v51, %v13732_v20  ;;  %v6035_v39 = vsel %vm6027_vm6, %v6002_v28, %v13733_v30  ;;  %v13734_v32 = vld [vmem:[#allocation339_spill] sm:$0xff]  ;;  %v5740_v59 = vpop.permute.xlu1 %5739  ;;  %v13735_v61 = vld [vmem:[#allocation224_spill] sm:$0xff] }
 0x5b6   : > { %v6100_v12 = vsel %vm6093_vm8, %v6067_v53, %v13734_v32  ;;  %v6262_v25 = vsel %vm6258_vm13, %v6229_v22, %v11613_v50  ;;  %v6484_v11 = vcombine.low %v6327_v15, %v6331_v10  ;;  %v12295_v36 = vsel %vm5961_vm4, %v5948_v4, %v13735_v61  ;;  %v13736_v1 = vld [vmem:[#allocation316_spill] sm:$0xff]  ;;  %v13739_v30 = vld [vmem:[#allocation379_spill] sm:$0xff] }
 0x5b7   : > { %v6068_v51 = vsel %vm6060_vm7, %v6035_v39, %v13736_v1  ;;  %v6133_v54 = vsel %vm6126_vm9, %v6100_v12, %v13737_v33  ;;  %v6295_v28 = vsel %vm6291_vm15, %v6262_v25, %v5740_v59  ;;  %v13738_v20 = vld [vmem:[#allocation340_spill] sm:$0xff]  ;;  %v6335_v15 = vrot.slane %v6294_v16, %v13729_v62  ;;  %v13740_v4 = vld [vmem:[#allocation247_spill] sm:$0xff]  ;;  %v13745_v33 = vld [vmem:[#allocation373_spill] sm:$0xff] }
 0x5b8   : > { %v6101_v53 = vsel %vm6093_vm8, %v6068_v51, %v13738_v20  ;;  %v6166_v50 = vsel %vm6159_vm10, %v6133_v54, %v13739_v30  ;;  %v6339_v10 = vrot.slane %v6295_v28, %v13729_v62  ;;  %v6005_v22 = vsel %vm5994_vm5, %v5972_v48, %v13740_v4  ;;  %v13741_v32 = vld [vmem:[#allocation23_spill] sm:$0xff]  ;;  %v13742_v61 = vld [vmem:[#allocation400_spill] sm:$0xff]  ;;  %v5746_v20 = vpop.permute.xlu0 %5745  ;;  %v13747_v4 = vld [vmem:[#allocation401_spill] sm:$0xff] }
 0x5b9   : > { %v6134_v39 = vsel %vm6126_vm9, %v6101_v53, %v13741_v32  ;;  %v6199_v12 = vsel %vm6192_vm11, %v6166_v50, %v13742_v61  ;;  %v6296_v25 = vsel %vm6291_vm15, %v11625_v3, %v5742_v44  ;;  %v13743_v59 = vld [vmem:[#allocation248_spill] sm:$0xff]  ;;  %v5744_v48 = vpop.permute.xlu1 %5743  ;;  %v13746_v30 = vld [vmem:[#allocation287_spill] sm:$0xff] }
 0x5ba   : > { %v6006_v1 = vsel %vm5994_vm5, %v5973_v8, %v13743_v59  ;;  %v13744_v51 = vld [vmem:[#allocation380_spill] sm:$0xff]  ;;  %v6232_v54 = vsel %vm6225_vm12, %v6199_v12, %v13745_v33  ;;  %v6485_v28 = vcombine.low %v6335_v15, %v6339_v10  ;;  %v6038_v53 = vsel %vm6027_vm6, %v6005_v22, %v13746_v30  ;;  %v13750_v12 = vld [vmem:[#allocation319_spill] sm:$0xff] }
 0x5bb   : > { %v6167_v16 = vsel %vm6159_vm10, %v6134_v39, %v13744_v51  ;;  %v6265_v3 = vsel %vm6258_vm13, %v6232_v54, %v11663_v23  ;;  %v6297_v8 = vsel %vm6291_vm15, %v11684_v35, %v5744_v48  ;;  %v13748_v44 = vld [vmem:[#allocation12_spill] sm:$0xff]  ;;  %v6343_v15 = vrot.slane %v6296_v25, %v13729_v62  ;;  %v13751_v51 = vld [vmem:[#allocation375_spill] sm:$0xff] }
 0x5bc   : > { %v6200_v50 = vsel %vm6192_vm11, %v6167_v16, %v13747_v4  ;;  %v6492_v32 = vrot.slane %v6484_v11, %v13748_v44  ;;  %v6499_v39 = vrot.slane %v6485_v28, %v13748_v44  ;;  %v6347_v10 = vrot.slane %v6297_v8, %v13729_v62  ;;  %v13749_v61 = vld [vmem:[#allocation288_spill] sm:$0xff]  ;;  %v13752_v16 = vld [vmem:[#allocation343_spill] sm:$0xff]  ;;  %v5750_v48 = vpop.permute.xlu0 %5749 }
 0x5bd   : > { %v6039_v22 = vsel %vm6027_vm6, %v6006_v1, %v13749_v61  ;;  %v6071_v59 = vsel %vm6060_vm7, %v6038_v53, %v13750_v12  ;;  %v6233_v23 = vsel %vm6225_vm12, %v6200_v50, %v13751_v51  ;;  %v6298_v35 = vsel %vm6291_vm15, %v6265_v3, %v5746_v20  ;;  %v5748_v28 = vpop.permute.xlu1 %5747  ;;  %v13753_v1 = vld [vmem:[#allocation227_spill] sm:$0xff]  ;;  %v13754_v53 = vld [vmem:[#allocation320_spill] sm:$0xff]  ;;  %v13755_v50 = vld [vmem:[#allocation30_spill] sm:$0xff] }
 0x5be   : > { %v6104_v11 = vsel %vm6093_vm8, %v6071_v59, %v13752_v16  ;;  %v6266_v25 = vsel %vm6258_vm13, %v6233_v23, %v11724_v56  ;;  %v6500_v33 = vcombine.low %v6492_v32, %v6499_v39  ;;  %v6501_v54 = vcombine.low %v6343_v15, %v6347_v10  ;;  %v13756_v8 = vld [vmem:[#allocation344_spill] sm:$0xff]  ;;  %v13757_v32 = vld [vmem:[#allocation381_spill] sm:$0xff]  ;;  %v13758_v10 = vld [vmem:[#allocation251_spill] sm:$0xff] }
 0x5bf   : > { %v12348_v30 = vsel %vm5961_vm4, %v12200_v27, %v13753_v1  ;;  %v6072_v4 = vsel %vm6060_vm7, %v6039_v22, %v13754_v53  ;;  %v6137_v20 = vsel %vm6126_vm9, %v6104_v11, %v13755_v50  ;;  %v6299_v3 = vsel %vm6291_vm15, %v6266_v25, %v5748_v28  ;;  %v13759_v22 = vld [vmem:[#allocation33_spill] sm:$0xff]  ;;  %v13760_v59 = vld [vmem:[#allocation402_spill] sm:$0xff]  ;;  %v13761_v16 = vld [vmem:[#allocation252_spill] sm:$0xff] }
 0x5c0   : > { %v6105_v56 = vsel %vm6093_vm8, %v6072_v4, %v13756_v8  ;;  %v6170_v39 = vsel %vm6159_vm10, %v6137_v20, %v13757_v32  ;;  %6629 = vst.msk [vmem:[%s11651_s21] sm:$0xff] %vm6628_vm14, %v6500_v33  ;;  %v6351_v15 = vrot.slane %v6298_v35, %v13729_v62  ;;  %v6355_v27 = vrot.slane %v6299_v3, %v13729_v62  ;;  %v13762_v35 = vld [vmem:[#allocation382_spill] sm:$0xff]  ;;  %v13763_v33 = vld [vmem:[#allocation416_spill] sm:$0xff]  ;;  %v5754_v53 = vpop.permute.xlu0 %5753  ;;  %v13764_v4 = vld [vmem:[#allocation291_spill] sm:$0xff] }
 0x5c1   : > { %v6009_v61 = vsel %vm5994_vm5, %v12240_v42, %v13758_v10  ;;  %v6138_v12 = vsel %vm6126_vm9, %v6105_v56, %v13759_v22  ;;  %v6203_v51 = vsel %vm6192_vm11, %v6170_v39, %v13760_v59  ;;  %v6300_v23 = vsel %vm6291_vm15, %v11734_v60, %v5750_v48  ;;  %v5752_v1 = vpop.permute.xlu1 %5751  ;;  %v13765_v20 = vld [vmem:[#allocation403_spill] sm:$0xff]  ;;  %v13766_v39 = vld [vmem:[#allocation292_spill] sm:$0xff] }
 0x5c2   : > { %v6010_v11 = vsel %vm5994_vm5, %v12248_v52, %v13761_v16  ;;  %v6171_v25 = vsel %vm6159_vm10, %v6138_v12, %v13762_v35  ;;  %v6236_v28 = vsel %vm6225_vm12, %v6203_v51, %v13763_v33  ;;  %v6502_v42 = vcombine.low %v6351_v15, %v6355_v27  ;;  %v13767_v27 = vld [vmem:[#allocation323_spill] sm:$0xff] }
 0x5c3   : > { %v6042_v50 = vsel %vm6027_vm6, %v6009_v61, %v13764_v4  ;;  %v6204_v3 = vsel %vm6192_vm11, %v6171_v25, %v13765_v20  ;;  %v6269_v60 = vsel %vm6258_vm13, %v6236_v28, %v11767_v6  ;;  %v6301_v52 = vsel %vm6291_vm15, %v11777_v14, %v5752_v1  ;;  %v13768_v61 = vld [vmem:[#allocation417_spill] sm:$0xff]  ;;  %v13769_v22 = vld [vmem:[#allocation347_spill] sm:$0xff]  ;;  %v13771_v25 = vld [vmem:[#allocation324_spill] sm:$0xff] }
 0x5c4   : > { %v6509_v48 = vrot.slane %v6501_v54, %v13748_v44  ;;  %v6516_v8 = vrot.slane %v6502_v42, %v13748_v44  ;;  %v6359_v56 = vrot.slane %v6300_v23, %v13729_v62  ;;  %v6363_v32 = vrot.slane %v6301_v52, %v13729_v62  ;;  %v5758_v16 = vpop.permute.xlu0 %5757  ;;  %v13772_v28 = vld [vmem:[#allocation40_spill] sm:$0xff]  ;;  %v13776_v52 = vld [vmem:[#allocation43_spill] sm:$0xff] }
 0x5c5   : > { %v6043_v15 = vsel %vm6027_vm6, %v6010_v11, %v13766_v39  ;;  %v6075_v10 = vsel %vm6060_vm7, %v6042_v50, %v13767_v27  ;;  %v6237_v6 = vsel %vm6225_vm12, %v6204_v3, %v13768_v61  ;;  %v6302_v14 = vsel %vm6291_vm15, %v6269_v60, %v5754_v53  ;;  %v5756_v23 = vpop.permute.xlu1 %5755  ;;  %v13770_v11 = vld [vmem:[#allocation228_spill] sm:$0xff]  ;;  %v13775_v3 = vld [vmem:[#allocation255_spill] sm:$0xff]  ;;  %v13780_v61 = vld [vmem:[#allocation418_spill] sm:$0xff] }
 0x5c6   : > { %v6108_v54 = vsel %vm6093_vm8, %v6075_v10, %v13769_v22  ;;  %v6270_v12 = vsel %vm6258_vm13, %v6237_v6, %v11812_v19  ;;  %v6517_v59 = vcombine.low %v6509_v48, %v6516_v8  ;;  %v6518_v51 = vcombine.low %v6359_v56, %v6363_v32  ;;  %v13773_v53 = vld [vmem:[#allocation348_spill] sm:$0xff]  ;;  %v13774_v19 = vld [vmem:[#allocation383_spill] sm:$0xff] }
 0x5c7   : > { %v5985_v35 = vsel %vm5961_vm4, %v12204_v63, %v13770_v11  ;;  %v6076_v33 = vsel %vm6060_vm7, %v6043_v15, %v13771_v25  ;;  %v6141_v42 = vsel %vm6126_vm9, %v6108_v54, %v13772_v28  ;;  %v6303_v1 = vsel %vm6291_vm15, %v6270_v12, %v5756_v23  ;;  %v13777_v8 = vld [vmem:[#allocation404_spill] sm:$0xff]  ;;  %v13781_v54 = vld [vmem:[#allocation295_spill] sm:$0xff] }
 0x5c8   : > { %v6109_v4 = vsel %vm6093_vm8, %v6076_v33, %v13773_v53  ;;  %v6174_v50 = vsel %vm6159_vm10, %v6141_v42, %v13774_v19  ;;  %6630 = vst.msk [vmem:[%s11651_s21 + $0x8] sm:$0xff] %vm6628_vm14, %v6517_v59  ;;  %v6367_v20 = vrot.slane %v6302_v14, %v13729_v62  ;;  %v6371_v63 = vrot.slane %v6303_v1, %v13729_v62  ;;  %v13778_v39 = vld [vmem:[#allocation256_spill] sm:$0xff]  ;;  %v5762_v22 = vpop.permute.xlu0 %5761  ;;  %v13782_v59 = vld [vmem:[#allocation405_spill] sm:$0xff]  ;;  %v13784_v1 = vld [vmem:[#allocation327_spill] sm:$0xff] }
 0x5c9   : > { %v6013_v60 = vsel %vm5994_vm5, %v12258_v18, %v13775_v3  ;;  %v6142_v48 = vsel %vm6126_vm9, %v6109_v4, %v13776_v52  ;;  %v6207_v56 = vsel %vm6192_vm11, %v6174_v50, %v13777_v8  ;;  %v6304_v32 = vsel %vm6291_vm15, %v11821_v58, %v5758_v16  ;;  %v13779_v27 = vld [vmem:[#allocation384_spill] sm:$0xff]  ;;  %v5760_v14 = vpop.permute.xlu1 %5759  ;;  %v13785_v4 = vld [vmem:[#allocation419_spill] sm:$0xff] }
 0x5ca   : > { %v6014_v15 = vsel %vm5994_vm5, %v12295_v36, %v13778_v39  ;;  %v6175_v10 = vsel %vm6159_vm10, %v6142_v48, %v13779_v27  ;;  %v6240_v6 = vsel %vm6225_vm12, %v6207_v56, %v13780_v61  ;;  %v6519_v18 = vcombine.low %v6367_v20, %v6371_v63  ;;  %v13783_v28 = vld [vmem:[#allocation296_spill] sm:$0xff]  ;;  %v13786_v19 = vld [vmem:[#allocation351_spill] sm:$0xff] }
 0x5cb   : > { %v6046_v12 = vsel %vm6027_vm6, %v6013_v60, %v13781_v54  ;;  %v6208_v23 = vsel %vm6192_vm11, %v6175_v10, %v13782_v59  ;;  %v6273_v58 = vsel %vm6258_vm13, %v6240_v6, %v11856_v55  ;;  %v6305_v36 = vsel %vm6291_vm15, %v11865_v21, %v5760_v14  ;;  %v13787_v52 = vld [vmem:[#allocation231_spill] sm:$0xff]  ;;  %v13788_v8 = vld [vmem:[#allocation328_spill] sm:$0xff] }
 0x5cc   : > { %v6526_v16 = vrot.slane %v6518_v51, %v13748_v44  ;;  %v6533_v11 = vrot.slane %v6519_v18, %v13748_v44  ;;  %v6375_v25 = vrot.slane %v6304_v32, %v13729_v62  ;;  %v6379_v33 = vrot.slane %v6305_v36, %v13729_v62  ;;  %v5766_v60 = vpop.permute.xlu0 %5765  ;;  %v13789_v32 = vld [vmem:[#allocation50_spill] sm:$0xff]  ;;  %v13790_v27 = vld [vmem:[#allocation352_spill] sm:$0xff]  ;;  %v13792_v18 = vld [vmem:[#allocation259_spill] sm:$0xff] }
 0x5cd   : > { %v6047_v42 = vsel %vm6027_vm6, %v6014_v15, %v13783_v28  ;;  %v6079_v53 = vsel %vm6060_vm7, %v6046_v12, %v13784_v1  ;;  %v6241_v55 = vsel %vm6225_vm12, %v6208_v23, %v13785_v4  ;;  %v6306_v21 = vsel %vm6291_vm15, %v6273_v58, %v5762_v22  ;;  %v5764_v3 = vpop.permute.xlu1 %5763  ;;  %v13793_v22 = vld [vmem:[#allocation55_spill] sm:$0xff]  ;;  %v13794_v12 = vld [vmem:[#allocation408_spill] sm:$0xff]  ;;  %v13799_v4 = vld [vmem:[#allocation409_spill] sm:$0xff] }
 0x5ce   : > { %v6112_v51 = vsel %vm6093_vm8, %v6079_v53, %v13786_v19  ;;  %v6274_v50 = vsel %vm6258_vm13, %v6241_v55, %v11900_v24  ;;  %v6534_v20 = vcombine.low %v6526_v16, %v6533_v11  ;;  %v6535_v63 = vcombine.low %v6375_v25, %v6379_v33  ;;  %v13791_v24 = vld [vmem:[#allocation386_spill] sm:$0xff]  ;;  %v13795_v58 = vld [vmem:[#allocation260_spill] sm:$0xff]  ;;  %v13796_v16 = vld [vmem:[#allocation387_spill] sm:$0xff] }
 0x5cf   : > { %v5988_v48 = vsel %vm5961_vm4, %v12210_v57, %v13787_v52  ;;  %v6080_v56 = vsel %vm6060_vm7, %v6047_v42, %v13788_v8  ;;  %v6145_v39 = vsel %vm6126_vm9, %v6112_v51, %v13789_v32  ;;  %v6307_v15 = vsel %vm6291_vm15, %v6274_v50, %v5764_v3  ;;  %v13797_v25 = vld [vmem:[#allocation422_spill] sm:$0xff]  ;;  %v13798_v1 = vld [vmem:[#allocation299_spill] sm:$0xff] }
 0x5d0   : > { %v6113_v10 = vsel %vm6093_vm8, %v6080_v56, %v13790_v27  ;;  %v6178_v61 = vsel %vm6159_vm10, %v6145_v39, %v13791_v24  ;;  %6631 = vst.msk [vmem:[%s11651_s21 + $0x10] sm:$0xff] %vm6628_vm14, %v6534_v20  ;;  %v6383_v6 = vrot.slane %v6306_v21, %v13729_v62  ;;  %v6387_v57 = vrot.slane %v6307_v15, %v13729_v62  ;;  %v5770_v42 = vpop.permute.xlu0 %5769  ;;  %v13800_v20 = vld [vmem:[#allocation300_spill] sm:$0xff]  ;;  %v13802_v8 = vld [vmem:[#allocation423_spill] sm:$0xff] }
 0x5d1   : > { %v6017_v14 = vsel %vm5994_vm5, %v12348_v30, %v13792_v18  ;;  %v6146_v54 = vsel %vm6126_vm9, %v6113_v10, %v13793_v22  ;;  %v6211_v59 = vsel %vm6192_vm11, %v6178_v61, %v13794_v12  ;;  %v6308_v23 = vsel %vm6291_vm15, %v11910_v45, %v5766_v60  ;;  %v5768_v30 = vpop.permute.xlu1 %5767  ;;  %v13801_v60 = vld [vmem:[#allocation331_spill] sm:$0xff]  ;;  %v13804_v24 = vld [vmem:[#allocation232_spill] sm:$0xff]  ;;  %v13806_v18 = vld [vmem:[#allocation66_spill] sm:$0xff] }
 0x5d2   : > { %v6018_v36 = vsel %vm5994_vm5, %v5985_v35, %v13795_v58  ;;  %v6179_v11 = vsel %vm6159_vm10, %v6146_v54, %v13796_v16  ;;  %v6244_v33 = vsel %vm6225_vm12, %v6211_v59, %v13797_v25  ;;  %v6536_v28 = vcombine.low %v6383_v6, %v6387_v57  ;;  %v13803_v56 = vld [vmem:[#allocation355_spill] sm:$0xff]  ;;  %v13805_v6 = vld [vmem:[#allocation332_spill] sm:$0xff] }
 0x5d3   : > { %v6050_v53 = vsel %vm6027_vm6, %v6017_v14, %v13798_v1  ;;  %v6212_v55 = vsel %vm6192_vm11, %v6179_v11, %v13799_v4  ;;  %v6277_v45 = vsel %vm6258_vm13, %v6244_v33, %v11945_v40  ;;  %v6309_v35 = vsel %vm6291_vm15, %v11955_v0, %v5768_v30  ;;  %v13807_v54 = vld [vmem:[#allocation356_spill] sm:$0xff]  ;;  %v13809_v58 = vld [vmem:[#allocation263_spill] sm:$0xff]  ;;  %v13812_v30 = vld [vmem:[#allocation266_spill] sm:$0xff] }
 0x5d4   : > { %v6543_v21 = vrot.slane %v6535_v63, %v13748_v44  ;;  %v6550_v19 = vrot.slane %v6536_v28, %v13748_v44  ;;  %v6391_v51 = vrot.slane %v6308_v23, %v13729_v62  ;;  %v6395_v50 = vrot.slane %v6309_v35, %v13729_v62  ;;  %v5774_v10 = vpop.permute.xlu0 %5773  ;;  %v13810_v16 = vld [vmem:[#allocation71_spill] sm:$0xff]  ;;  %v13811_v25 = vld [vmem:[#allocation412_spill] sm:$0xff]  ;;  %v13814_v4 = vld [vmem:[#allocation89_spill] sm:$0xff] }
 0x5d5   : > { %v6051_v3 = vsel %vm6027_vm6, %v6018_v36, %v13800_v20  ;;  %v6083_v52 = vsel %vm6060_vm7, %v6050_v53, %v13801_v60  ;;  %v6245_v40 = vsel %vm6225_vm12, %v6212_v55, %v13802_v8  ;;  %v6310_v0 = vsel %vm6291_vm15, %v6277_v45, %v5770_v42  ;;  %v5772_v27 = vpop.permute.xlu1 %5771  ;;  %v13813_v1 = vld [vmem:[#allocation391_spill] sm:$0xff] }
 0x5d6   : > { %v6116_v63 = vsel %vm6093_vm8, %v6083_v52, %v13803_v56  ;;  %v6278_v32 = vsel %vm6258_vm13, %v6245_v40, %v11990_v9  ;;  %v6551_v39 = vcombine.low %v6543_v21, %v6550_v19  ;;  %v6552_v15 = vcombine.low %v6391_v51, %v6395_v50  ;;  %v13808_v9 = vld [vmem:[#allocation390_spill] sm:$0xff]  ;;  %v13815_v21 = vld [vmem:[#allocation303_spill] sm:$0xff]  ;;  %v13816_v51 = vld [vmem:[#allocation413_spill] sm:$0xff] }
 0x5d7   : > { %v5989_v61 = vsel %vm5961_vm4, %v12214_v46, %v13804_v24  ;;  %v6084_v57 = vsel %vm6060_vm7, %v6051_v3, %v13805_v6  ;;  %v6149_v14 = vsel %vm6126_vm9, %v6116_v63, %v13806_v18  ;;  %v6311_v22 = vsel %vm6291_vm15, %v6278_v32, %v5772_v27  ;;  %v13817_v40 = vld [vmem:[#allocation304_spill] sm:$0xff]  ;;  %v13818_v56 = vld [vmem:[#allocation335_spill] sm:$0xff]  ;;  %v13819_v32 = vld [vmem:[#allocation22_spill] sm:$0xff] }
 0x5d8   : > { %v6117_v12 = vsel %vm6093_vm8, %v6084_v57, %v13807_v54  ;;  %v6182_v59 = vsel %vm6159_vm10, %v6149_v14, %v13808_v9  ;;  %6632 = vst.msk [vmem:[%s11651_s21 + $0x18] sm:$0xff] %vm6628_vm14, %v6551_v39  ;;  %v6399_v23 = vrot.slane %v6310_v0, %v13729_v62  ;;  %v6403_v46 = vrot.slane %v6311_v22, %v13729_v62  ;;  %v5778_v35 = vpop.permute.xlu0 %5777  ;;  %v13820_v39 = vld [vmem:[#allocation359_spill] sm:$0xff]  ;;  %v13821_v57 = vld [vmem:[#allocation264_spill] sm:$0xff] }
 0x5d9   : > { %v6021_v36 = vsel %vm5994_vm5, %v5988_v48, %v13809_v58  ;;  %v6150_v11 = vsel %vm6126_vm9, %v6117_v12, %v13810_v16  ;;  %v6215_v33 = vsel %vm6192_vm11, %v6182_v59, %v13811_v25  ;;  %v6312_v28 = vsel %vm6291_vm15, %v12000_v38, %v5774_v10  ;;  %v5776_v48 = vpop.permute.xlu1 %5775  ;;  %v13822_v14 = vld [vmem:[#allocation367_spill] sm:$0xff]  ;;  %v13823_v12 = vld [vmem:[#allocation360_spill] sm:$0xff]  ;;  %v13824_v59 = vld [vmem:[#allocation394_spill] sm:$0xff] }
 0x5da   : > { %v6022_v42 = vsel %vm5994_vm5, %v5989_v61, %v13812_v30  ;;  %v6183_v53 = vsel %vm6159_vm10, %v6150_v11, %v13813_v1  ;;  %v6248_v55 = vsel %vm6225_vm12, %v6215_v33, %v13814_v4  ;;  %v6553_v45 = vcombine.low %v6399_v23, %v6403_v46  ;;  %v13825_v58 = vld [vmem:[#allocation81_spill] sm:$0xff]  ;;  %v13826_v16 = vld [vmem:[#allocation415_spill] sm:$0xff]  ;;  %v13828_v4 = vld [vmem:[#allocation368_spill] sm:$0xff] }
 0x5db   : > { %v6054_v19 = vsel %vm6027_vm6, %v6021_v36, %v13815_v21  ;;  %v6216_v50 = vsel %vm6192_vm11, %v6183_v53, %v13816_v51  ;;  %v6281_v38 = vsel %vm6258_vm13, %v6248_v55, %v12031_v26  ;;  %v6313_v20 = vsel %vm6291_vm15, %v12041_v2, %v5776_v48  ;;  %v13827_v33 = vld [vmem:[#allocation395_spill] sm:$0xff] }
 0x5dc   : > { %v6560_v3 = vrot.slane %v6552_v15, %v13748_v44  ;;  %v6567_v60 = vrot.slane %v6553_v45, %v13748_v44  ;;  %v6407_v52 = vrot.slane %v6312_v28, %v13729_v62  ;;  %v6411_v8 = vrot.slane %v6313_v20, %v13729_v62  ;;  %v5782_v6 = vpop.permute.xlu0 %5781 }
 0x5dd   : > { %v6055_v0 = vsel %vm6027_vm6, %v6022_v42, %v13817_v40  ;;  %v6087_v63 = vsel %vm6060_vm7, %v6054_v19, %v13818_v56  ;;  %v6249_v26 = vsel %vm6225_vm12, %v6216_v50, %v13819_v32  ;;  %v6314_v2 = vsel %vm6291_vm15, %v6281_v38, %v5778_v35  ;;  %v5780_v61 = vpop.permute.xlu1 %5779 }
 0x5de   : > { %v6120_v15 = vsel %vm6093_vm8, %v6087_v63, %v13820_v39  ;;  %v6282_v27 = vsel %vm6258_vm13, %v6249_v26, %v12070_v17  ;;  %v6568_v10 = vcombine.low %v6560_v3, %v6567_v60  ;;  %v6569_v24 = vcombine.low %v6407_v52, %v6411_v8  ;;  %v13829_v39 = vld [vmem:[#allocation24_spill] sm:$0xff] }
 0x5df   : > { %v6088_v18 = vsel %vm6060_vm7, %v6055_v0, %v13821_v57  ;;  %v6153_v22 = vsel %vm6126_vm9, %v6120_v15, %v13822_v14  ;;  %v6315_v54 = vsel %vm6291_vm15, %v6282_v27, %v5780_v61  ;;  %v6415_v17 = vrot.slane %v6314_v2, %v13729_v62 }
 0x5e0   : > { %v6121_v9 = vsel %vm6093_vm8, %v6088_v18, %v13823_v12  ;;  %v6186_v23 = vsel %vm6159_vm10, %v6153_v22, %v13824_v59  ;;  %6633 = vst.msk [vmem:[%s11651_s21 + $0x20] sm:$0xff] %vm6628_vm14, %v6568_v10  ;;  %v6419_v46 = vrot.slane %v6315_v54, %v13729_v62  ;;  %v6316_v25 = vsel %vm6291_vm15, %v12080_v13, %v5782_v6  ;;  %v5786_v53 = vpop.permute.xlu0 %5785 }
 0x5e1   : > { %v6154_v36 = vsel %vm6126_vm9, %v6121_v9, %v13825_v58  ;;  %v6219_v11 = vsel %vm6192_vm11, %v6186_v23, %v13826_v16  ;;  %v5784_v1 = vpop.permute.xlu1 %5783  ;;  %v6577_v13 = vrot.slane %v6569_v24, %v13748_v44  ;;  %v6423_v21 = vrot.slane %v6316_v25, %v13729_v62 }
 0x5e2   : > { %v6187_v28 = vsel %vm6159_vm10, %v6154_v36, %v13827_v33  ;;  %v6252_v30 = vsel %vm6225_vm12, %v6219_v11, %v11446_v5  ;;  %v6570_v42 = vcombine.low %v6415_v17, %v6419_v46  ;;  %v6317_v48 = vsel %vm6291_vm15, %v12119_v7, %v5784_v1 }
 0x5e3   : > { %v6220_v55 = vsel %vm6192_vm11, %v6187_v28, %v13828_v4  ;;  %v6285_v45 = vsel %vm6258_vm13, %v6252_v30, %v12109_v29  ;;  %v6427_v5 = vrot.slane %v6317_v48, %v13729_v62  ;;  %v6290_v15 = vsel %vm6258_vm13, %v13829_v39, %v12226_v41 }
 0x5e4   : > { %v6584_v35 = vrot.slane %v6570_v42, %v13748_v44  ;;  %v6253_v19 = vsel %vm6225_vm12, %v6220_v55, %v11474_v43  ;;  %v6318_v51 = vsel %vm6291_vm15, %v6285_v45, %v5786_v53  ;;  %v5790_v7 = vpop.permute.xlu0 %5789 }
 0x5e5   : > { %v6286_v50 = vsel %vm6258_vm13, %v6253_v19, %v12150_v49  ;;  %v6586_v38 = vcombine.low %v6423_v21, %v6427_v5  ;;  %v5788_v20 = vpop.permute.xlu1 %5787  ;;  %v6431_v60 = vrot.slane %v6318_v51, %v13729_v62  ;;  %v6320_v43 = vsel %vm6291_vm15, %v12159_v37, %v5790_v7 }
 0x5e6   : > { %v6585_v29 = vcombine.low %v6577_v13, %v6584_v35  ;;  %v6319_v3 = vsel %vm6291_vm15, %v6286_v50, %v5788_v20  ;;  %v6289_v49 = vsel %vm6258_vm13, %v11513_v47, %v12185_v34  ;;  %v6439_v26 = vrot.slane %v6320_v43, %v13729_v62 }
 0x5e7   : > { %v6435_v52 = vrot.slane %v6319_v3, %v13729_v62  ;;  %v6594_v63 = vrot.slane %v6586_v38, %v13748_v44 }
 0x5e8   : > { %6634 = vst.msk [vmem:[%s11651_s21 + $0x28] sm:$0xff] %vm6628_vm14, %v6585_v29  ;;  %v5794_v0 = vpop.permute.xlu0 %5793 }
 0x5e9   : > { %v6587_v8 = vcombine.low %v6431_v60, %v6435_v52  ;;  %v5792_v40 = vpop.permute.xlu1 %5791  ;;  %v6322_v2 = vsel %vm6291_vm15, %v6289_v49, %v5794_v0 }
 0x5ea   : > { %v6321_v56 = vsel %vm6291_vm15, %v12194_v31, %v5792_v40  ;;  %v6447_v10 = vrot.slane %v6322_v2, %v13729_v62 }
 0x5eb   : > { %v6601_v32 = vrot.slane %v6587_v8, %v13748_v44  ;;  %v6443_v37 = vrot.slane %v6321_v56, %v13729_v62 }
 0x5ed   : > { %v6602_v47 = vcombine.low %v6594_v63, %v6601_v32  ;;  %v6603_v34 = vcombine.low %v6439_v26, %v6443_v37  ;;  %v5796_v31 = vpop.permute.xlu1 %5795 }
 0x5ee   : > { %v6323_v27 = vsel %vm6291_vm15, %v6290_v15, %v5796_v31 }
 0x5ef   : > { %6635 = vst.msk [vmem:[%s11651_s21 + $0x30] sm:$0xff] %vm6628_vm14, %v6602_v47  ;;  %v6451_v24 = vrot.slane %v6323_v27, %v13729_v62  ;;  %v6611_v6 = vrot.slane %v6603_v34, %v13748_v44 }
 0x5f1   : > { %v6604_v61 = vcombine.low %v6447_v10, %v6451_v24 }
 0x5f3   : > { %v6618_v41 = vrot.slane %v6604_v61, %v13748_v44 }
 0x5f5   : > { %v6619_v57 = vcombine.low %v6611_v6, %v6618_v41 }
 0x5f7   : > { %6636 = vst.msk [vmem:[%s11651_s21 + $0x38] sm:$0xff] %vm6628_vm14, %v6619_v57 }
 0x5f8   : > { %6987 = shalt.err (!%p6984_p11)
}
 0x5f9   : > { %s6988_s22 = scalar_lea.hbm %s12634_s9, 2048  ;;  %s6992_s27 = scalar_lea.hbm %s12692_s4, 4096 }
 0x5fa   : > { %p6989_p1 = scmp.ne.s32.totalorder %s12634_s9, %s6988_s22  ;;  %p6993_p5 = scmp.lt.u32.totalorder %s12634_s9, %s12692_s4 }
 0x5fb   : > { %p6994_p4 = scmp.lt.u32.totalorder %s6992_s27, %s6988_s22  ;;  %p6996_p0 = scmp.lt.u32.totalorder %s6988_s22, %s12634_s9 }
 0x5fc   : > { %p6990_p6 = pnand %p6989_p1, %p13830_p3 }
 0x5fd   : > { %p6995_p8 = por %p6994_p4, %p6993_p5 }
 0x5fe   : > { %p6991_p2 = pneg %p6990_p6 }
 0x5ff   : > { %p6997_p12 = por %p6996_p0, %p6995_p8 }
 0x601   : > { %p6998_p13 = pnand %p6997_p12, %p6991_p2 }
 0x603   : > { %7001 = shalt.err (!%p6998_p13)
}
 0x604   : > { %s7086_s8 = smov 128  }
 0x605   : > { %6827 = dma.vmem_to_hbm [thread:$0]  (%p13830_p3), %s12636_s26, 2048, %s12634_s9, %s6655_s11, %s7086_s8, %s7086_s8, %s7073_s12  }
 0x606 PF: > { %s6685_s5 = sand.u32 1, %s7040_s15   ;;  %p13831_p7 = scmp.ne.s32.totalorder %s12805_s30, 0 }
 0x607   : > { %p13832_p10 = scmp.ge.s32.totalorder %s7060_s20, 2  ;;  %s6686_s18 = scalar_lea.sflag [#allocation4], %s6685_s5 }
 0x609   : > { %p6837_p9 = pnand %p13832_p10, %p13831_p7 }
 0x60b   : > { %7035 = dma.done.wait (!%p6837_p9), %s6686_s18, 2048  }
 0x60c   : > { %7037 = vsyncadd (!%p6837_p9), %s6686_s18, 4294965248  ;;  %s23_s20 = sadd.s32 1, %s7060_s20   ;;  %s13833_s15 = smov %s7044_s16 }
 0x60d   : > { %p20_p11 = scmp.ge.s32.totalorder %s23_s20, 4   ;;  %s13834_s16 = smov %s7048_s17 }
 0x60e   : > { %s13835_s17 = smov %s7168_s29  ;;  %s13836_s18 = smov %s7056_s19 }
 0x60f   : > { %s13837_s19 = smov %s13839_s23  ;;  %22 = sbr.rel (!%p20_p11) target bundleno = 8 (0x8), region = 95 }
 0x616   :  { %6691 = vsyncpa [#allocation3], 1 }
 0x617   :  { %6693 = vsyncpa [#allocation3 + $0x1], 1 }
 0x618   :  { %6694 = vsyncpa [#allocation6], 1 }
 0x619   :  { %6696 = vsyncpa [#allocation6 + $0x1], 1 }
 0x61a   :  { %6697 = vsyncpa [#allocation4], 1 }
 0x61b   :  { %6699 = vsyncpa [#allocation4 + $0x1], 1 }

</bundles_post_ra>
